<compile_context>
chip_gen: v6e
topology: v6e:2x2x1
jax: 0.10.0
libtpu: 0.0.40
codegen_flags: <defaults>
</compile_context>

<pallas_src>
import jax
import jax.numpy as jnp
from jax import lax
from jax.experimental import pallas as pl
from jax.experimental.pallas import tpu as pltpu

HIDDEN = 1024                    # flownet state_feature channels (matches .view(-1, 1024))
ACT_DIM = 6                      # pose delta (rotation + translation)
C_IN = 3 + 1 + 1 + 3 + 1 + 1     # concat of [img, depth, mask] x {observed, rendered}
C_AUG = C_IN + 1                 # + constant-1 channel (folds b1, masks the spatial pad)
LANE = 128                       # vreg lane width
CHUNK = 512                      # inner lane chunk: (HIDDEN, CHUNK) f32 activation is ~2 MiB


def _round_up(x, m):
    return (x + m - 1) // m * m


def _chip_config():
    """Per-generation tile/VMEM/elementwise-dtype choices (conservative on unknown)."""
    try:
        kind = jax.devices()[0].device_kind.lower()
    except Exception:
        kind = ""
    if "v7" in kind:     # 64 MiB VMEM / TC, bf16-native VALU, 2 TCs
        return dict(hw_tile_cap=4096, vmem_limit=40 * 1024 * 1024, feat_dtype=jnp.bfloat16)
    if "v6" in kind:     # 128 MiB VMEM, bf16-native VALU
        return dict(hw_tile_cap=8192, vmem_limit=64 * 1024 * 1024, feat_dtype=jnp.bfloat16)
    if "v5" in kind:     # 128 MiB VMEM, no bf16 VALU -> keep elementwise f32
        return dict(hw_tile_cap=8192, vmem_limit=64 * 1024 * 1024, feat_dtype=jnp.float32)
    return dict(hw_tile_cap=4096, vmem_limit=32 * 1024 * 1024, feat_dtype=jnp.float32)


def synthetic(obs_img, obs_d, obs_m, ren_img, ren_d, ren_m, interpolate_ratio):
    """Agent.synthetic(): torch.cat([...], dim=1) over NCHW tensors.

    drender (rasterization) and trim (ROI zoom/crop) are external submodules; their
    outputs are supplied by the caller (stand-ins in __main__)."""
    data = jnp.concatenate([obs_img, obs_d, obs_m, ren_img, ren_d, ren_m], axis=1)
    return data, interpolate_ratio


def agent_forward(data, interpolate_ratio, w1, b1, w2, b2, *, hw_tile=None):
    """state_encoding (flownet 1x1-conv stand-in + global avg pool -> (B, 1024)) fused
    with action_encoding (actor: linear 1024->6, tanh, * interpolate_ratio).

    data: (B, C_IN, H, W) f32; interpolate_ratio: (B,);
    w1: (C_IN, HIDDEN); b1: (HIDDEN,); w2: (HIDDEN, ACT_DIM); b2: (ACT_DIM,).
    """
    B, C, H, W = data.shape
    assert C == C_IN
    HW = H * W

    cfg = _chip_config()
    feat_dtype = cfg["feat_dtype"]
    if hw_tile is None:
        hw_tile = min(cfg["hw_tile_cap"], _round_up(HW, CHUNK))
    assert hw_tile % CHUNK == 0
    hw_pad = _round_up(HW, hw_tile)
    num_k = hw_pad // hw_tile
    num_chunks = hw_tile // CHUNK
    inv_hw = 1.0 / float(HW)          # mean divisor is the TRUE HW (pad contributes 0)

    # ---- input prep (one fused XLA pass): flatten NCHW, append the constant-1 channel
    #      (bias fold + pad mask), cast bf16, pad HW up to a tile multiple with zeros ----
    x = data.reshape(B, C_IN, HW)
    ones = jnp.ones((B, 1, HW), x.dtype)
    x = jnp.concatenate([x, ones], axis=1).astype(jnp.bfloat16)        # (B, C_AUG, HW)
    if hw_pad != HW:
        x = jnp.pad(x, ((0, 0), (0, 0), (0, hw_pad - HW)))             # pad cols: all-0

    # ---- weights: b1 folded into W1^T as an extra column; tiny actor head stays f32 ----
    w1t = jnp.concatenate(
        [jnp.transpose(w1).astype(jnp.float32), b1.reshape(HIDDEN, 1).astype(jnp.float32)],
        axis=1).astype(jnp.bfloat16)                                   # (HIDDEN, C_AUG)
    w2t = jnp.transpose(w2).astype(jnp.float32)                        # (ACT_DIM, HIDDEN)
    b2c = b2.reshape(ACT_DIM, 1).astype(jnp.float32)                   # (ACT_DIM, 1)
    ratio = interpolate_ratio.reshape(B, 1, 1).astype(jnp.float32)     # (B, 1, 1)

    def kernel(ratio_ref, data_ref, w1t_ref, w2t_ref, b2_ref, mu_ref, acc_ref):
        k = pl.program_id(1)

        @pl.when(k == 0)
        def _init():
            acc_ref[...] = jnp.zeros_like(acc_ref)

        w1t_v = w1t_ref[...]                                           # (HIDDEN, C_AUG) bf16

        # Inner chunking (fully unrolled): matmul -> ReLU -> lane-slice accumulate per
        # CHUNK-lane sub-chunk, so the activation is never wider than (HIDDEN, CHUNK).
        acc = acc_ref[...]                                             # (HIDDEN, 128) f32
        for c in range(num_chunks):
            xt = data_ref[:, c * CHUNK:(c + 1) * CHUNK]                # (C_AUG, CHUNK) bf16
            # flownet 1x1 conv over channels (bias folded in): MXU, f32 accumulation
            feat = jnp.dot(w1t_v, xt, preferred_element_type=jnp.float32)
            feat = feat.astype(feat_dtype)                             # bf16 on v6e/v7x
            # lane-dense accumulation: plain vreg adds, no cross-lane XLU in the hot loop
            for s in range(CHUNK // LANE):
                sl = feat[:, s * LANE:(s + 1) * LANE]
                acc = acc + jnp.maximum(sl, 0).astype(jnp.float32)
        acc_ref[...] = acc

        @pl.when(k == pl.num_programs(1) - 1)
        def _finalize():
            # single cross-lane reduce per batch element (hoisted out of the hot loop):
            # F.adaptive_avg_pool2d(., 1).view(-1, 1024)
            pooled = jnp.sum(acc_ref[...], axis=1, keepdims=True) * inv_hw   # (HIDDEN, 1)
            # actor stand-in: linear -> tanh -> scale by interpolate_ratio
            mu = jnp.dot(w2t_ref[...], pooled,
                         preferred_element_type=jnp.float32) + b2_ref[...]   # (ACT_DIM, 1)
            mu_ref[...] = jnp.tanh(mu) * ratio_ref[...]

    mu3 = pl.pallas_call(
        kernel,
        out_shape=jax.ShapeDtypeStruct((B, ACT_DIM, 1), jnp.float32),
        grid_spec=pltpu.PrefetchScalarGridSpec(
            num_scalar_prefetch=0,
            grid=(B, num_k),   # on v7x keep B >= 2 (and even) so both TCs get work
            in_specs=[
                pl.BlockSpec((None, 1, 1), lambda b, k: (b, 0, 0)),            # ratio
                pl.BlockSpec((None, C_AUG, hw_tile), lambda b, k: (b, 0, k)),  # data tile
                pl.BlockSpec((HIDDEN, C_AUG), lambda b, k: (0, 0)),            # W1^T (+b1)
                pl.BlockSpec((ACT_DIM, HIDDEN), lambda b, k: (0, 0)),          # W2^T
                pl.BlockSpec((ACT_DIM, 1), lambda b, k: (0, 0)),               # b2
            ],
            out_specs=pl.BlockSpec((None, ACT_DIM, 1), lambda b, k: (b, 0, 0)),
            scratch_shapes=[pltpu.VMEM((HIDDEN, LANE), jnp.float32)],          # pooled-sum acc
        ),
        compiler_params=pltpu.CompilerParams(
            dimension_semantics=("parallel", "arbitrary"),
            vmem_limit_bytes=cfg["vmem_limit"],
        ),
    )(ratio, x, w1t, w2t, b2c)
    return mu3.reshape(B, ACT_DIM)


if __name__ == "__main__":
    B, H, W = 2, 16, 16
    key = jax.random.PRNGKey(0)
    keys = jax.random.split(key, 9)

    # observed inputs (NCHW, like the PyTorch reference)
    obs_img = jax.random.normal(keys[0], (B, 3, H, W), jnp.float32)
    obs_d = jax.random.normal(keys[1], (B, 1, H, W), jnp.float32)
    obs_m = (jax.random.uniform(keys[2], (B, 1, H, W)) > 0.5).astype(jnp.float32)

    # TODO(synk): drender (mesh rasterization) and trim (ROI zoom/crop) are external
    # submodules with no Pallas equivalent; deterministic "rendered" stand-ins below.
    ren_img = jax.random.normal(keys[3], (B, 3, H, W), jnp.float32)
    ren_d = jax.random.normal(keys[4], (B, 1, H, W), jnp.float32)
    ren_m = (jax.random.uniform(keys[5], (B, 1, H, W)) > 0.5).astype(jnp.float32)
    interpolate_ratio = jax.random.uniform(keys[6], (B,), jnp.float32, 0.5, 1.5)

    # TODO(synk): the real FlowNet / Actor architectures are external submodules;
    # deterministic 1x1-conv + linear stand-ins below.
    w1 = jax.random.normal(keys[7], (C_IN, HIDDEN), jnp.float32) * 0.05
    b1 = jnp.zeros((HIDDEN,), jnp.float32)
    w2 = jax.random.normal(keys[8], (HIDDEN, ACT_DIM), jnp.float32) * 0.05
    b2 = jnp.zeros((ACT_DIM,), jnp.float32)

    data, ratio = synthetic(obs_img, obs_d, obs_m, ren_img, ren_d, ren_m, interpolate_ratio)
    mu = agent_forward(data, ratio, w1, b1, w2, b2)
    jax.block_until_ready(mu)

    # ---- pure-JAX reference (mirrors the kernel's bf16 rounding choices) ----
    feat_dtype = _chip_config()["feat_dtype"]
    x32 = data.reshape(B, C_IN, H * W).astype(jnp.bfloat16).astype(jnp.float32)
    w1_bf = w1.astype(jnp.bfloat16).astype(jnp.float32)
    b1_bf = b1.astype(jnp.bfloat16).astype(jnp.float32)
    pre = jnp.einsum("bcs,ch->bsh", x32, w1_bf,
                     precision=lax.Precision.HIGHEST) + b1_bf[None, None, :]
    pre = pre.astype(feat_dtype).astype(jnp.float32)
    pooled_ref = jnp.mean(jnp.maximum(pre, 0.0), axis=1)                 # (B, HIDDEN)
    mu_pre = jnp.einsum("bh,ha->ba", pooled_ref, w2,
                        precision=lax.Precision.HIGHEST) + b2[None, :]
    mu_ref = jnp.tanh(mu_pre) * interpolate_ratio[:, None]

    assert mu.shape == (B, ACT_DIM)
    assert jnp.allclose(mu, mu_ref, atol=2e-3, rtol=2e-3), (mu, mu_ref)
    print("KERNEL_OK")
</pallas_src>

<mosaic_0001>
module attributes {stable_mosaic.version = 11 : i64} {
  func.func @kernel(%arg0: i32, %arg1: i32, %arg2: memref<1x1x1xf32, #tpu.memory_space<vmem>>, %arg3: memref<1x11x512xbf16, #tpu.memory_space<vmem>>, %arg4: memref<1024x11xbf16, #tpu.memory_space<vmem>>, %arg5: memref<6x1024xf32, #tpu.memory_space<vmem>>, %arg6: memref<6x1xf32, #tpu.memory_space<vmem>>, %arg7: memref<1x6x1xf32, #tpu.memory_space<vmem>>, %arg8: memref<1024x128xf32, #tpu.memory_space<vmem>>) attributes {dimension_semantics = [#tpu.dimension_semantics<parallel>, #tpu.dimension_semantics<arbitrary>], iteration_bounds = array<i64: 2, 1>, scalar_prefetch = 0 : i64, scratch_operands = 1 : i64, tpu.core_type = #tpu.core_type<tc>, window_params = [{transform_indices = @transform_0, window_bounds = array<i64: 1, 1, 1>}, {transform_indices = @transform_1, window_bounds = array<i64: 1, 11, 512>}, {pipeline_mode = #tpu.pipeline_mode<synchronous>, transform_indices = @transform_2, window_bounds = array<i64: 1024, 11>}, {pipeline_mode = #tpu.pipeline_mode<synchronous>, transform_indices = @transform_3, window_bounds = array<i64: 6, 1024>}, {pipeline_mode = #tpu.pipeline_mode<synchronous>, transform_indices = @transform_4, window_bounds = array<i64: 6, 1>}, {transform_indices = @transform_5, window_bounds = array<i64: 1, 6, 1>}]} {
    %c0_i32 = arith.constant 0 : i32
    %0 = arith.cmpi eq, %arg1, %c0_i32 : i32
    %1 = arith.extui %0 : i1 to i32
    %c0_i32_0 = arith.constant 0 : i32
    %2 = arith.cmpi ne, %1, %c0_i32_0 : i32
    scf.if %2 {
      %cst_15 = arith.constant 0.000000e+00 : f32
      %28 = vector.broadcast %cst_15 : f32 to vector<1024x128xf32>
      %c0_16 = arith.constant 0 : index
      %c0_17 = arith.constant 0 : index
      %29 = vector.load %arg8[%c0_16, %c0_17] : memref<1024x128xf32, #tpu.memory_space<vmem>>, vector<1024x128xf32>
      tpu.vector_store %arg8[%c0_16, %c0_17], %28 {strides = array<i32>} : memref<1024x128xf32, #tpu.memory_space<vmem>>, vector<1024x128xf32>,
    } else {
    }
    %c0 = arith.constant 0 : index
    %c0_1 = arith.constant 0 : index
    %3 = vector.load %arg4[%c0, %c0_1] : memref<1024x11xbf16, #tpu.memory_space<vmem>>, vector<1024x11xbf16>
    %c0_2 = arith.constant 0 : index
    %c0_3 = arith.constant 0 : index
    %4 = vector.load %arg8[%c0_2, %c0_3] : memref<1024x128xf32, #tpu.memory_space<vmem>>, vector<1024x128xf32>
    %c0_4 = arith.constant 0 : index
    %c0_5 = arith.constant 0 : index
    %c0_6 = arith.constant 0 : index
    %5 = vector.load %arg3[%c0_4, %c0_5, %c0_6] : memref<1x11x512xbf16, #tpu.memory_space<vmem>>, vector<1x11x512xbf16>
    %6 = vector.shape_cast %5 : vector<1x11x512xbf16> to vector<11x512xbf16>
    %cst = arith.constant dense<0.000000e+00> : vector<1024x512xf32>
    %7 = tpu.matmul %3, %6, %cst {dimension_numbers = #tpu.dot_dimension_numbers<[1], [0], [0], [1], [0, 0, 1, 1], [], []>} : vector<1024x11xbf16>, vector<11x512xbf16>, vector<1024x512xf32> -> vector<1024x512xf32>
    %8 = vector.extract_strided_slice %7 {offsets = [0, 0], sizes = [1024, 128], strides = [1, 1]} : vector<1024x512xf32> to vector<1024x128xf32>
    %cst_7 = arith.constant 0.000000e+00 : f32
    %9 = vector.broadcast %cst_7 : f32 to vector<1024x128xf32>
    %10 = arith.maximumf %8, %9 : vector<1024x128xf32>
    %11 = arith.addf %4, %10 : vector<1024x128xf32>
    %12 = vector.extract_strided_slice %7 {offsets = [0, 128], sizes = [1024, 128], strides = [1, 1]} : vector<1024x512xf32> to vector<1024x128xf32>
    %cst_8 = arith.constant 0.000000e+00 : f32
    %13 = vector.broadcast %cst_8 : f32 to vector<1024x128xf32>
    %14 = arith.maximumf %12, %13 : vector<1024x128xf32>
    %15 = arith.addf %11, %14 : vector<1024x128xf32>
    %16 = vector.extract_strided_slice %7 {offsets = [0, 256], sizes = [1024, 128], strides = [1, 1]} : vector<1024x512xf32> to vector<1024x128xf32>
    %cst_9 = arith.constant 0.000000e+00 : f32
    %17 = vector.broadcast %cst_9 : f32 to vector<1024x128xf32>
    %18 = arith.maximumf %16, %17 : vector<1024x128xf32>
    %19 = arith.addf %15, %18 : vector<1024x128xf32>
    %20 = vector.extract_strided_slice %7 {offsets = [0, 384], sizes = [1024, 128], strides = [1, 1]} : vector<1024x512xf32> to vector<1024x128xf32>
    %cst_10 = arith.constant 0.000000e+00 : f32
    %21 = vector.broadcast %cst_10 : f32 to vector<1024x128xf32>
    %22 = arith.maximumf %20, %21 : vector<1024x128xf32>
    %23 = arith.addf %19, %22 : vector<1024x128xf32>
    %c0_11 = arith.constant 0 : index
    %c0_12 = arith.constant 0 : index
    %24 = vector.load %arg8[%c0_11, %c0_12] : memref<1024x128xf32, #tpu.memory_space<vmem>>, vector<1024x128xf32>
    tpu.vector_store %arg8[%c0_11, %c0_12], %23 {strides = array<i32>} : memref<1024x128xf32, #tpu.memory_space<vmem>>, vector<1024x128xf32>,
    %c0_i32_13 = arith.constant 0 : i32
    %25 = arith.cmpi eq, %arg1, %c0_i32_13 : i32
    %26 = arith.extui %25 : i1 to i32
    %c0_i32_14 = arith.constant 0 : i32
    %27 = arith.cmpi ne, %26, %c0_i32_14 : i32
    scf.if %27 {
      %c0_15 = arith.constant 0 : index
      %c0_16 = arith.constant 0 : index
      %28 = vector.load %arg8[%c0_15, %c0_16] : memref<1024x128xf32, #tpu.memory_space<vmem>>, vector<1024x128xf32>
      %cst_17 = arith.constant dense<0.000000e+00> : vector<1024xf32>
      %29 = vector.multi_reduction <add>, %28, %cst_17 [1] : vector<1024x128xf32> to vector<1024xf32>
      %30 = vector.shape_cast %29 : vector<1024xf32> to vector<1024x1xf32>
      %cst_18 = arith.constant 3.906250e-03 : f32
      %31 = vector.broadcast %cst_18 : f32 to vector<1024x1xf32>
      %32 = arith.mulf %30, %31 : vector<1024x1xf32>
      %c0_19 = arith.constant 0 : index
      %c0_20 = arith.constant 0 : index
      %33 = vector.load %arg5[%c0_19, %c0_20] : memref<6x1024xf32, #tpu.memory_space<vmem>>, vector<6x1024xf32>
      %cst_21 = arith.constant dense<0.000000e+00> : vector<6x1xf32>
      %34 = tpu.matmul %33, %32, %cst_21 {dimension_numbers = #tpu.dot_dimension_numbers<[1], [0], [0], [1], [0, 0, 1, 1], [], []>} : vector<6x1024xf32>, vector<1024x1xf32>, vector<6x1xf32> -> vector<6x1xf32>
      %c0_22 = arith.constant 0 : index
      %c0_23 = arith.constant 0 : index
      %35 = vector.load %arg6[%c0_22, %c0_23] : memref<6x1xf32, #tpu.memory_space<vmem>>, vector<6x1xf32>
      %36 = arith.addf %34, %35 : vector<6x1xf32>
      %37 = math.tanh %36 : vector<6x1xf32>
      %c0_24 = arith.constant 0 : index
      %c0_25 = arith.constant 0 : index
      %c0_26 = arith.constant 0 : index
      %38 = vector.load %arg2[%c0_24, %c0_25, %c0_26] : memref<1x1x1xf32, #tpu.memory_space<vmem>>, vector<1x1x1xf32>
      %39 = vector.shape_cast %38 : vector<1x1x1xf32> to vector<1x1xf32>
      %40 = vector.broadcast %39 : vector<1x1xf32> to vector<6x1xf32>
      %41 = arith.mulf %37, %40 : vector<6x1xf32>
      %c0_27 = arith.constant 0 : index
      %c0_28 = arith.constant 0 : index
      %c0_29 = arith.constant 0 : index
      %42 = vector.load %arg7[%c0_27, %c0_28, %c0_29] : memref<1x6x1xf32, #tpu.memory_space<vmem>>, vector<1x6x1xf32>
      %43 = vector.shape_cast %42 : vector<1x6x1xf32> to vector<6x1xf32>
      %44 = vector.shape_cast %41 : vector<6x1xf32> to vector<1x6x1xf32>
      tpu.vector_store %arg7[%c0_27, %c0_28, %c0_29], %44 {strides = array<i32>} : memref<1x6x1xf32, #tpu.memory_space<vmem>>, vector<1x6x1xf32>,
    } else {
    }
    return
  }
  func.func @transform_0(%arg0: i32, %arg1: i32) -> (i32, i32, i32) {
    %c0_i32 = arith.constant 0 : i32
    %c0_i32_0 = arith.constant 0 : i32
    %c0_i32_1 = arith.constant 0 : i32
    return %arg0, %c0_i32, %c0_i32_0 : i32, i32, i32
  }
  func.func @transform_1(%arg0: i32, %arg1: i32) -> (i32, i32, i32) {
    %c0_i32 = arith.constant 0 : i32
    %c0_i32_0 = arith.constant 0 : i32
    return %arg0, %c0_i32, %arg1 : i32, i32, i32
  }
  func.func @transform_2(%arg0: i32, %arg1: i32) -> (i32, i32) {
    %c0_i32 = arith.constant 0 : i32
    %c0_i32_0 = arith.constant 0 : i32
    %c0_i32_1 = arith.constant 0 : i32
    return %c0_i32, %c0_i32_0 : i32, i32
  }
  func.func @transform_3(%arg0: i32, %arg1: i32) -> (i32, i32) {
    %c0_i32 = arith.constant 0 : i32
    %c0_i32_0 = arith.constant 0 : i32
    %c0_i32_1 = arith.constant 0 : i32
    return %c0_i32, %c0_i32_0 : i32, i32
  }
  func.func @transform_4(%arg0: i32, %arg1: i32) -> (i32, i32) {
    %c0_i32 = arith.constant 0 : i32
    %c0_i32_0 = arith.constant 0 : i32
    %c0_i32_1 = arith.constant 0 : i32
    return %c0_i32, %c0_i32_0 : i32, i32
  }
  func.func @transform_5(%arg0: i32, %arg1: i32) -> (i32, i32, i32) {
    %c0_i32 = arith.constant 0 : i32
    %c0_i32_0 = arith.constant 0 : i32
    %c0_i32_1 = arith.constant 0 : i32
    return %arg0, %c0_i32, %c0_i32_0 : i32, i32, i32
  }
}

</mosaic_0001>

<bundles_post_ra>
// kernel: tpu_custom_call.1
= control target key start
LH: loop header
LB: loop body
LE: loop exit
PB: predicated region body
PF: predicated region fallthrough
CT: control target
= control target key end

     0   :  { %s5094_s18 = smov 0   ;;  %s5096_s19 = smov 0   ;;  %s5952_s0 = inlined_call_operand.vmem [shape: f32[2,1,1], index: 0, kind: input, shape index: {}]   ;;  %s5953_s1 = inlined_call_operand.vmem [shape: bf16[2,11,512], index: 1, kind: input, shape index: {}]   ;;  %s5954_s2 = inlined_call_operand.vmem [shape: bf16[1024,11], index: 2, kind: input, shape index: {}]   ;;  %s5955_s3 = inlined_call_operand.vmem [shape: f32[6,1024], index: 3, kind: input, shape index: {}]   ;;  %s5956_s4 = inlined_call_operand.vmem [shape: f32[6,1], index: 4, kind: input, shape index: {}]   ;;  %s5957_s5 = inlined_call_operand.vmem [shape: f32[2,6,1], index: 5, kind: output, shape index: {}]  }
   0x1   :  { %s5098_s20 = smov 0  }
   0x2 LB: > { %s27_s21 = sadd.s32 1, %s5056_s19  ;;  %p4596_p0 = scmp.ge.s32.totalorder %s5060_s20, 1  ;;  %s5060_s20 = sphi %s5098_s20, %s15_s20   ;;  %s5056_s19 = sphi %s5096_s19, %s5959_s19   ;;  %s5052_s18 = sphi %s5094_s18, %s5958_s18  }
   0x3   : > { %p29_p1 = scmp.ge.s32.totalorder %s27_s21, 2  ;;  %p214_p2 = scmp.lt.s32.totalorder %s5060_s20, 3 }
   0x5   : > { %s5961_s21 = smov (%p29_p1, %s27_s21), 0  ;;  %p215_p3 = pnand %p4596_p0, %p214_p2 }
   0x6   : > { %p248_p4 = scmp.lt.s32.totalorder (!%p215_p3), %s5052_s18, 1 }
   0x7   : > { %218 = sbr.rel (%p215_p3) target bundleno = 1123 (0x463), region = 40 }
   0xc   : > { %vm1187_vm0 = vcmask 1044480   ;;  %vm1188_vm1 = vcmask 1045504   ;;  %v5062_v0 = vmov 0   ;;  %s5963_s18 = smov (!%p248_p4, %s5052_s18), 1  ;;  %v5063_v1 = vmov 65535   ;;  %v4972_v12 = vld [vmem:[%s5954_s2] sm:$0xff]  }
   0xd   : > { %1235 = vmatprep.mubr.bf16.mxu0 %v5062_v0  ;;  %1908 = vmatprep.mubr.bf16.mxu1 %v5062_v0  ;;  %v1189_v2 = vsel %vm1187_vm0, 4294967295, %v5063_v1  ;;  %s4799_s22 = sshll.u32 %s5963_s18, 5  ;;  %vm994_vm2 = vcmask 89088   ;;  %v4973_v13 = vld [vmem:[%s5954_s2 + $0x8] sm:$0xff]   ;;  %v4974_v14 = vld [vmem:[%s5954_s2 + $0x10] sm:$0xff]   ;;  %v4975_v15 = vld [vmem:[%s5954_s2 + $0x18] sm:$0xff]   ;;  %s250_s27 = scalar_lea.vmem %s5952_s0, %s5963_s18 }
   0xe   : > { %s259_s25 = scalar_lea.vmem %s5953_s1, %s4799_s22  ;;  %v1190_v3 = vsel %vm1188_vm1, %v1189_v2, 0  ;;  %v4976_v16 = vld [vmem:[%s5954_s2 + $0x20] sm:$0xff]   ;;  %v4977_v17 = vld [vmem:[%s5954_s2 + $0x28] sm:$0xff]   ;;  %v4978_v18 = vld [vmem:[%s5954_s2 + $0x30] sm:$0xff]   ;;  %s4599_s28 = sshll.u32 %s5963_s18, 3  ;;  %vm4514_vm3 = vcmask 5120  }
   0xf   : > { %v4966_v4 = vld [vmem:[%s259_s25 + $0x4] ss:$16 sps:$4 sm:$0x3f]   ;;  %v4968_v5 = vld [vmem:[%s259_s25 + $0xc] ss:$16 sps:$4 sm:$0x3f]   ;;  %s264_s6 = scalar_lea.vmem %s5957_s5, %s4599_s28 }
  0x10   : > { %v1195_v6 = vand.u32 %v4966_v4, %v1190_v3  ;;  %v4970_v7 = vld [vmem:[%s259_s25] ss:$16 sps:$4 sm:$0x3f]   ;;  %v4971_v8 = vld [vmem:[%s259_s25 + $0x8] ss:$16 sps:$4 sm:$0x3f]   ;;  %v1201_v9 = vand.u32 %v4968_v5, %v1190_v3 }
  0x11   : > { %v1192_v10 = vand.u32 %v4970_v7, %v1190_v3  ;;  %v1198_v11 = vand.u32 %v4971_v8, %v1190_v3  ;;  %v4979_v19 = vld [vmem:[%s5954_s2 + $0x38] sm:$0xff]   ;;  %v4980_v20 = vld [vmem:[%s5954_s2 + $0x40] sm:$0xff]   ;;  %v4981_v21 = vld [vmem:[%s5954_s2 + $0x48] sm:$0xff]  }
  0x12   : > { %1217 = vmatprep.subr.bf16.mxu0 %v1195_v6  ;;  %1890 = vmatprep.subr.bf16.mxu1 %v1201_v9  ;;  %v4982_v22 = vld [vmem:[%s5954_s2 + $0x50] sm:$0xff]   ;;  %v4983_v23 = vld [vmem:[%s5954_s2 + $0x58] sm:$0xff]   ;;  %v4984_v24 = vld [vmem:[%s5954_s2 + $0x60] sm:$0xff]  }
  0x13   : > { %1218 = vmatpush1.bf16.msra.mxu0 %v1192_v10  ;;  %1891 = vmatpush1.bf16.msra.mxu1 %v1198_v11  ;;  %v4985_v25 = vld [vmem:[%s5954_s2 + $0x68] sm:$0xff]   ;;  %v4986_v26 = vld [vmem:[%s5954_s2 + $0x70] sm:$0xff]   ;;  %v4987_v27 = vld [vmem:[%s5954_s2 + $0x78] sm:$0xff]  }
  0x14   : > { %v4988_v28 = vld [vmem:[%s5954_s2 + $0x80] sm:$0xff]   ;;  %v4989_v29 = vld [vmem:[%s5954_s2 + $0x88] sm:$0xff]   ;;  %v4990_v30 = vld [vmem:[%s5954_s2 + $0x90] sm:$0xff]  }
  0x15   : > { %v4991_v31 = vld [vmem:[%s5954_s2 + $0x98] sm:$0xff]   ;;  %v4992_v32 = vld [vmem:[%s5954_s2 + $0xa0] sm:$0xff]   ;;  %v4993_v33 = vld [vmem:[%s5954_s2 + $0xa8] sm:$0xff]  }
  0x16   : > { %4668 = vmatmul.mubr.msk.bf16.vlgmr.msra.gmra.mxu0 %vm994_vm2, %v4972_v12  ;;  %4732 = vmatmul.mubr.msk.bf16.vlgmr.msra.gmra.mxu1 %vm994_vm2, %v4972_v12  ;;  %v4994_v34 = vld [vmem:[%s5954_s2 + $0xb0] sm:$0xff]   ;;  %v4995_v35 = vld [vmem:[%s5954_s2 + $0xb8] sm:$0xff]   ;;  %v4996_v36 = vld [vmem:[%s5954_s2 + $0xc0] sm:$0xff]  }
  0x17   : > { %1245 = vmatprep.mubr.bf16.mxu0 %v5062_v0  ;;  %1918 = vmatprep.mubr.bf16.mxu1 %v5062_v0  ;;  %v4997_v46 = vld [vmem:[%s5954_s2 + $0xc8] sm:$0xff]   ;;  %v4998_v5 = vld [vmem:[%s5954_s2 + $0xd0] sm:$0xff]  }
  0x1e   : > { %4669 = vmatmul.mubr.msk.bf16.gmra.mxu0 %vm994_vm2, %v4973_v13  ;;  %4733 = vmatmul.mubr.msk.bf16.gmra.mxu1 %vm994_vm2, %v4973_v13 }
  0x1f   : > { %1255 = vmatprep.mubr.bf16.mxu0 %v5062_v0  ;;  %1928 = vmatprep.mubr.bf16.mxu1 %v5062_v0 }
  0x26   : > { %4670 = vmatmul.mubr.msk.bf16.gmra.mxu0 %vm994_vm2, %v4974_v14  ;;  %4734 = vmatmul.mubr.msk.bf16.gmra.mxu1 %vm994_vm2, %v4974_v14 }
  0x27   : > { %1265 = vmatprep.mubr.bf16.mxu0 %v5062_v0  ;;  %1938 = vmatprep.mubr.bf16.mxu1 %v5062_v0 }
  0x2e   : > { %4671 = vmatmul.mubr.msk.bf16.gmra.mxu0 %vm994_vm2, %v4975_v15  ;;  %4735 = vmatmul.mubr.msk.bf16.gmra.mxu1 %vm994_vm2, %v4975_v15 }
  0x2f   : > { %1275 = vmatprep.mubr.bf16.mxu0 %v5062_v0  ;;  %1948 = vmatprep.mubr.bf16.mxu1 %v5062_v0 }
  0x36   : > { %4672 = vmatmul.mubr.msk.bf16.gmra.mxu0 %vm994_vm2, %v4976_v16  ;;  %4736 = vmatmul.mubr.msk.bf16.gmra.mxu1 %vm994_vm2, %v4976_v16 }
  0x37   : > { %1285 = vmatprep.mubr.bf16.mxu0 %v5062_v0  ;;  %1958 = vmatprep.mubr.bf16.mxu1 %v5062_v0 }
  0x3e   : > { %4673 = vmatmul.mubr.msk.bf16.gmra.mxu0 %vm994_vm2, %v4977_v17  ;;  %4737 = vmatmul.mubr.msk.bf16.gmra.mxu1 %vm994_vm2, %v4977_v17 }
  0x3f   : > { %1295 = vmatprep.mubr.bf16.mxu0 %v5062_v0  ;;  %1968 = vmatprep.mubr.bf16.mxu1 %v5062_v0 }
  0x46   : > { %4674 = vmatmul.mubr.msk.bf16.gmra.mxu0 %vm994_vm2, %v4978_v18  ;;  %4738 = vmatmul.mubr.msk.bf16.gmra.mxu1 %vm994_vm2, %v4978_v18 }
  0x47   : > { %1305 = vmatprep.mubr.bf16.mxu0 %v5062_v0  ;;  %1978 = vmatprep.mubr.bf16.mxu1 %v5062_v0 }
  0x4e   : > { %4675 = vmatmul.mubr.msk.bf16.gmra.mxu0 %vm994_vm2, %v4979_v19  ;;  %4739 = vmatmul.mubr.msk.bf16.gmra.mxu1 %vm994_vm2, %v4979_v19 }
  0x4f   : > { %1315 = vmatprep.mubr.bf16.mxu0 %v5062_v0  ;;  %1988 = vmatprep.mubr.bf16.mxu1 %v5062_v0 }
  0x56   : > { %4676 = vmatmul.mubr.msk.bf16.gmra.mxu0 %vm994_vm2, %v4980_v20  ;;  %4740 = vmatmul.mubr.msk.bf16.gmra.mxu1 %vm994_vm2, %v4980_v20 }
  0x57   : > { %1325 = vmatprep.mubr.bf16.mxu0 %v5062_v0  ;;  %1998 = vmatprep.mubr.bf16.mxu1 %v5062_v0 }
  0x5e   : > { %4677 = vmatmul.mubr.msk.bf16.gmra.mxu0 %vm994_vm2, %v4981_v21  ;;  %4741 = vmatmul.mubr.msk.bf16.gmra.mxu1 %vm994_vm2, %v4981_v21 }
  0x5f   : > { %1335 = vmatprep.mubr.bf16.mxu0 %v5062_v0  ;;  %2008 = vmatprep.mubr.bf16.mxu1 %v5062_v0 }
  0x66   : > { %4678 = vmatmul.mubr.msk.bf16.gmra.mxu0 %vm994_vm2, %v4982_v22  ;;  %4742 = vmatmul.mubr.msk.bf16.gmra.mxu1 %vm994_vm2, %v4982_v22 }
  0x67   : > { %1345 = vmatprep.mubr.bf16.mxu0 %v5062_v0  ;;  %2018 = vmatprep.mubr.bf16.mxu1 %v5062_v0 }
  0x6e   : > { %4679 = vmatmul.mubr.msk.bf16.gmra.mxu0 %vm994_vm2, %v4983_v23  ;;  %4743 = vmatmul.mubr.msk.bf16.gmra.mxu1 %vm994_vm2, %v4983_v23 }
  0x6f   : > { %1355 = vmatprep.mubr.bf16.mxu0 %v5062_v0  ;;  %2028 = vmatprep.mubr.bf16.mxu1 %v5062_v0 }
  0x76   : > { %4680 = vmatmul.mubr.msk.bf16.gmra.mxu0 %vm994_vm2, %v4984_v24  ;;  %4744 = vmatmul.mubr.msk.bf16.gmra.mxu1 %vm994_vm2, %v4984_v24 }
  0x77   : > { %1365 = vmatprep.mubr.bf16.mxu0 %v5062_v0  ;;  %2038 = vmatprep.mubr.bf16.mxu1 %v5062_v0 }
  0x7e   : > { %4681 = vmatmul.mubr.msk.bf16.gmra.mxu0 %vm994_vm2, %v4985_v25  ;;  %4745 = vmatmul.mubr.msk.bf16.gmra.mxu1 %vm994_vm2, %v4985_v25 }
  0x7f   : > { %1375 = vmatprep.mubr.bf16.mxu0 %v5062_v0  ;;  %2048 = vmatprep.mubr.bf16.mxu1 %v5062_v0 }
  0x86   : > { %4682 = vmatmul.mubr.msk.bf16.gmra.mxu0 %vm994_vm2, %v4986_v26  ;;  %4746 = vmatmul.mubr.msk.bf16.gmra.mxu1 %vm994_vm2, %v4986_v26 }
  0x87   : > { %1385 = vmatprep.mubr.bf16.mxu0 %v5062_v0  ;;  %2058 = vmatprep.mubr.bf16.mxu1 %v5062_v0 }
  0x8e   : > { %4683 = vmatmul.mubr.msk.bf16.gmra.mxu0 %vm994_vm2, %v4987_v27  ;;  %4747 = vmatmul.mubr.msk.bf16.gmra.mxu1 %vm994_vm2, %v4987_v27 }
  0x8f   : > { %1395 = vmatprep.mubr.bf16.mxu0 %v5062_v0  ;;  %2068 = vmatprep.mubr.bf16.mxu1 %v5062_v0 }
  0x96   : > { %4684 = vmatmul.mubr.msk.bf16.gmra.mxu0 %vm994_vm2, %v4988_v28  ;;  %4748 = vmatmul.mubr.msk.bf16.gmra.mxu1 %vm994_vm2, %v4988_v28  ;;  %v4999_v28 = vld [vmem:[%s5954_s2 + $0xd8] sm:$0xff]  }
  0x97   : > { %1405 = vmatprep.mubr.bf16.mxu0 %v5062_v0  ;;  %2078 = vmatprep.mubr.bf16.mxu1 %v5062_v0 }
  0x9e   : > { %4685 = vmatmul.mubr.msk.bf16.gmra.mxu0 %vm994_vm2, %v4989_v29  ;;  %4749 = vmatmul.mubr.msk.bf16.gmra.mxu1 %vm994_vm2, %v4989_v29 }
  0x9f   : > { %1415 = vmatprep.mubr.bf16.mxu0 %v5062_v0  ;;  %2088 = vmatprep.mubr.bf16.mxu1 %v5062_v0 }
  0xa6   : > { %4686 = vmatmul.mubr.msk.bf16.gmra.mxu0 %vm994_vm2, %v4990_v30  ;;  %4750 = vmatmul.mubr.msk.bf16.gmra.mxu1 %vm994_vm2, %v4990_v30 }
  0xa7   : > { %1425 = vmatprep.mubr.bf16.mxu0 %v5062_v0  ;;  %2098 = vmatprep.mubr.bf16.mxu1 %v5062_v0 }
  0xae   : > { %4687 = vmatmul.mubr.msk.bf16.gmra.mxu0 %vm994_vm2, %v4991_v31  ;;  %4751 = vmatmul.mubr.msk.bf16.gmra.mxu1 %vm994_vm2, %v4991_v31 }
  0xaf   : > { %1435 = vmatprep.mubr.bf16.mxu0 %v5062_v0  ;;  %2108 = vmatprep.mubr.bf16.mxu1 %v5062_v0 }
  0xb6   : > { %4688 = vmatmul.mubr.msk.bf16.gmra.mxu0 %vm994_vm2, %v4992_v32  ;;  %4752 = vmatmul.mubr.msk.bf16.gmra.mxu1 %vm994_vm2, %v4992_v32 }
  0xb7   : > { %1445 = vmatprep.mubr.bf16.mxu0 %v5062_v0  ;;  %2118 = vmatprep.mubr.bf16.mxu1 %v5062_v0 }
  0xbe   : > { %4689 = vmatmul.mubr.msk.bf16.gmra.mxu0 %vm994_vm2, %v4993_v33  ;;  %4753 = vmatmul.mubr.msk.bf16.gmra.mxu1 %vm994_vm2, %v4993_v33 }
  0xbf   : > { %1455 = vmatprep.mubr.bf16.mxu0 %v5062_v0  ;;  %2128 = vmatprep.mubr.bf16.mxu1 %v5062_v0 }
  0xc6   : > { %4690 = vmatmul.mubr.msk.bf16.gmra.mxu0 %vm994_vm2, %v4994_v34  ;;  %4754 = vmatmul.mubr.msk.bf16.gmra.mxu1 %vm994_vm2, %v4994_v34 }
  0xc7   : > { %1465 = vmatprep.mubr.bf16.mxu0 %v5062_v0  ;;  %2138 = vmatprep.mubr.bf16.mxu1 %v5062_v0 }
  0xce   : > { %4691 = vmatmul.mubr.msk.bf16.gmra.mxu0 %vm994_vm2, %v4995_v35  ;;  %4755 = vmatmul.mubr.msk.bf16.gmra.mxu1 %vm994_vm2, %v4995_v35 }
  0xcf   : > { %1475 = vmatprep.mubr.bf16.mxu0 %v5062_v0  ;;  %2148 = vmatprep.mubr.bf16.mxu1 %v5062_v0 }
  0xd6   : > { %v1237_v37 = vpop.f32.mrf.mxu0  ;;  %4692 = vmatmul.mubr.msk.bf16.gmra.mxu0 %vm994_vm2, %v4996_v36  ;;  %v1910_v38 = vpop.f32.mrf.mxu1  ;;  %4756 = vmatmul.mubr.msk.bf16.gmra.mxu1 %vm994_vm2, %v4996_v36 }
  0xd7   : > { %1485 = vmatprep.mubr.bf16.mxu0 %v5062_v0  ;;  %2158 = vmatprep.mubr.bf16.mxu1 %v5062_v0  ;;  %v2549_v41 = vmax.f32 %v1237_v37, 0.0  ;;  %v3061_v42 = vmax.f32 %v1910_v38, 0.0 }
  0xd8   : > { %v1239_v39 = vpop.f32.mrf.mxu0  ;;  %v1912_v40 = vpop.f32.mrf.mxu1 }
  0xd9   : > { %v2805_v43 = vmax.f32 %v1239_v39, 0.0  ;;  %v3317_v50 = vmax.f32 %v1912_v40, 0.0 }
  0xda   : > { %v1241_v44 = vpop.f32.mrf.mxu0  ;;  %v1914_v45 = vpop.f32.mrf.mxu1 }
  0xdb   : > { %v2933_v47 = vadd.f32 %v2805_v43, %v2549_v41  ;;  %v2550_v51 = vmax.f32 %v1241_v44, 0.0  ;;  %v3062_v56 = vmax.f32 %v1914_v45, 0.0 }
  0xdc   : > { %v1243_v48 = vpop.f32.mrf.mxu0  ;;  %v1916_v49 = vpop.f32.mrf.mxu1 }
  0xdd   : > { %v2806_v52 = vmax.f32 %v1243_v48, 0.0  ;;  %v3189_v53 = vadd.f32 %v3061_v42, %v2933_v47  ;;  %v3318_v59 = vmax.f32 %v1916_v49, 0.0 }
  0xde   : > { %v1247_v54 = vpop.f32.mrf.mxu0  ;;  %4693 = vmatmul.mubr.msk.bf16.gmra.mxu0 %vm994_vm2, %v4997_v46  ;;  %v1920_v55 = vpop.f32.mrf.mxu1  ;;  %4757 = vmatmul.mubr.msk.bf16.gmra.mxu1 %vm994_vm2, %v4997_v46 }
  0xdf   : > { %v2934_v57 = vadd.f32 %v2806_v52, %v2550_v51  ;;  %v3445_v58 = vadd.f32 %v3317_v50, %v3189_v53  ;;  %1495 = vmatprep.mubr.bf16.mxu0 %v5062_v0  ;;  %2168 = vmatprep.mubr.bf16.mxu1 %v5062_v0  ;;  %v2551_v62 = vmax.f32 %v1247_v54, 0.0  ;;  %v3063_v63 = vmax.f32 %v1920_v55, 0.0  ;;  %v5000_v51 = vld [vmem:[%s5954_s2 + $0xe0] sm:$0xff]  }
  0xe0   : > { %v1249_v60 = vpop.f32.mrf.mxu0  ;;  %v1922_v61 = vpop.f32.mrf.mxu1 }
  0xe1   : > { %v2807_v1 = vmax.f32 %v1249_v60, 0.0  ;;  %3832 = vadd.xlane.f32.xlu0 %v3445_v58  ;;  %v3190_v2 = vadd.f32 %v3062_v56, %v2934_v57  ;;  %v3319_v10 = vmax.f32 %v1922_v61, 0.0 }
  0xe2   : > { %v1251_v3 = vpop.f32.mrf.mxu0  ;;  %v1924_v4 = vpop.f32.mrf.mxu1 }
  0xe3   : > { %v2935_v6 = vadd.f32 %v2807_v1, %v2551_v62  ;;  %v3446_v7 = vadd.f32 %v3318_v59, %v3190_v2  ;;  %v2552_v11 = vmax.f32 %v1251_v3, 0.0  ;;  %v3064_v16 = vmax.f32 %v1924_v4, 0.0 }
  0xe4   : > { %v1253_v8 = vpop.f32.mrf.mxu0  ;;  %v1926_v9 = vpop.f32.mrf.mxu1 }
  0xe5   : > { %v2808_v12 = vmax.f32 %v1253_v8, 0.0  ;;  %3834 = vadd.xlane.f32.xlu0 %v3446_v7  ;;  %v3191_v13 = vadd.f32 %v3063_v63, %v2935_v6  ;;  %v3320_v19 = vmax.f32 %v1926_v9, 0.0 }
  0xe6   : > { %v1257_v14 = vpop.f32.mrf.mxu0  ;;  %4694 = vmatmul.mubr.msk.bf16.gmra.mxu0 %vm994_vm2, %v4998_v5  ;;  %v1930_v15 = vpop.f32.mrf.mxu1  ;;  %4758 = vmatmul.mubr.msk.bf16.gmra.mxu1 %vm994_vm2, %v4998_v5 }
  0xe7   : > { %v2936_v17 = vadd.f32 %v2808_v12, %v2552_v11  ;;  %v3447_v18 = vadd.f32 %v3319_v10, %v3191_v13  ;;  %1505 = vmatprep.mubr.bf16.mxu0 %v5062_v0  ;;  %2178 = vmatprep.mubr.bf16.mxu1 %v5062_v0  ;;  %v2553_v22 = vmax.f32 %v1257_v14, 0.0  ;;  %v3065_v23 = vmax.f32 %v1930_v15, 0.0  ;;  %v5001_v11 = vld [vmem:[%s5954_s2 + $0xe8] sm:$0xff]  }
  0xe8   : > { %v1259_v20 = vpop.f32.mrf.mxu0  ;;  %v1932_v21 = vpop.f32.mrf.mxu1 }
  0xe9   : > { %v2809_v24 = vmax.f32 %v1259_v20, 0.0  ;;  %3836 = vadd.xlane.f32.xlu0 %v3447_v18  ;;  %v3192_v25 = vadd.f32 %v3064_v16, %v2936_v17  ;;  %v3321_v33 = vmax.f32 %v1932_v21, 0.0 }
  0xea   : > { %v1261_v26 = vpop.f32.mrf.mxu0  ;;  %v1934_v27 = vpop.f32.mrf.mxu1 }
  0xeb   : > { %v2937_v29 = vadd.f32 %v2809_v24, %v2553_v22  ;;  %v3448_v30 = vadd.f32 %v3320_v19, %v3192_v25  ;;  %v2554_v34 = vmax.f32 %v1261_v26, 0.0  ;;  %v3066_v39 = vmax.f32 %v1934_v27, 0.0 }
  0xec   : > { %v1263_v31 = vpop.f32.mrf.mxu0  ;;  %v1936_v32 = vpop.f32.mrf.mxu1 }
  0xed   : > { %v2810_v35 = vmax.f32 %v1263_v31, 0.0  ;;  %3838 = vadd.xlane.f32.xlu0 %v3448_v30  ;;  %v3193_v36 = vadd.f32 %v3065_v23, %v2937_v29  ;;  %v3322_v42 = vmax.f32 %v1936_v32, 0.0 }
  0xee   : > { %v1267_v37 = vpop.f32.mrf.mxu0  ;;  %4695 = vmatmul.mubr.msk.bf16.gmra.mxu0 %vm994_vm2, %v4999_v28  ;;  %v1940_v38 = vpop.f32.mrf.mxu1  ;;  %4759 = vmatmul.mubr.msk.bf16.gmra.mxu1 %vm994_vm2, %v4999_v28 }
  0xef   : > { %v2938_v40 = vadd.f32 %v2810_v35, %v2554_v34  ;;  %v3449_v41 = vadd.f32 %v3321_v33, %v3193_v36  ;;  %1515 = vmatprep.mubr.bf16.mxu0 %v5062_v0  ;;  %2188 = vmatprep.mubr.bf16.mxu1 %v5062_v0  ;;  %v2555_v45 = vmax.f32 %v1267_v37, 0.0  ;;  %v3067_v46 = vmax.f32 %v1940_v38, 0.0  ;;  %v5002_v34 = vld [vmem:[%s5954_s2 + $0xf0] sm:$0xff]  }
  0xf0   : > { %v1269_v43 = vpop.f32.mrf.mxu0  ;;  %v1942_v44 = vpop.f32.mrf.mxu1 }
  0xf1   : > { %v2811_v47 = vmax.f32 %v1269_v43, 0.0  ;;  %3840 = vadd.xlane.f32.xlu0 %v3449_v41  ;;  %v3194_v48 = vadd.f32 %v3066_v39, %v2938_v40  ;;  %v3323_v56 = vmax.f32 %v1942_v44, 0.0 }
  0xf2   : > { %v1271_v49 = vpop.f32.mrf.mxu0  ;;  %v1944_v50 = vpop.f32.mrf.mxu1 }
  0xf3   : > { %v2939_v52 = vadd.f32 %v2811_v47, %v2555_v45  ;;  %v3450_v53 = vadd.f32 %v3322_v42, %v3194_v48  ;;  %v2556_v57 = vmax.f32 %v1271_v49, 0.0  ;;  %v3068_v62 = vmax.f32 %v1944_v50, 0.0 }
  0xf4   : > { %v1273_v54 = vpop.f32.mrf.mxu0  ;;  %v1946_v55 = vpop.f32.mrf.mxu1 }
  0xf5   : > { %v2812_v58 = vmax.f32 %v1273_v54, 0.0  ;;  %3842 = vadd.xlane.f32.xlu0 %v3450_v53  ;;  %v3195_v59 = vadd.f32 %v3067_v46, %v2939_v52  ;;  %v3324_v2 = vmax.f32 %v1946_v55, 0.0 }
  0xf6   : > { %v1277_v60 = vpop.f32.mrf.mxu0  ;;  %4696 = vmatmul.mubr.msk.bf16.gmra.mxu0 %vm994_vm2, %v5000_v51  ;;  %v1950_v61 = vpop.f32.mrf.mxu1  ;;  %4760 = vmatmul.mubr.msk.bf16.gmra.mxu1 %vm994_vm2, %v5000_v51 }
  0xf7   : > { %v2940_v63 = vadd.f32 %v2812_v58, %v2556_v57  ;;  %v3451_v1 = vadd.f32 %v3323_v56, %v3195_v59  ;;  %1525 = vmatprep.mubr.bf16.mxu0 %v5062_v0  ;;  %2198 = vmatprep.mubr.bf16.mxu1 %v5062_v0  ;;  %v2557_v5 = vmax.f32 %v1277_v60, 0.0  ;;  %v3069_v6 = vmax.f32 %v1950_v61, 0.0  ;;  %v5003_v57 = vld [vmem:[%s5954_s2 + $0xf8] sm:$0xff]  }
  0xf8   : > { %v1279_v3 = vpop.f32.mrf.mxu0  ;;  %v1952_v4 = vpop.f32.mrf.mxu1 }
  0xf9   : > { %v2813_v7 = vmax.f32 %v1279_v3, 0.0  ;;  %3844 = vadd.xlane.f32.xlu0 %v3451_v1  ;;  %v3196_v8 = vadd.f32 %v3068_v62, %v2940_v63  ;;  %v3325_v16 = vmax.f32 %v1952_v4, 0.0 }
  0xfa   : > { %v1281_v9 = vpop.f32.mrf.mxu0  ;;  %v1954_v10 = vpop.f32.mrf.mxu1 }
  0xfb   : > { %v2941_v12 = vadd.f32 %v2813_v7, %v2557_v5  ;;  %v3452_v13 = vadd.f32 %v3324_v2, %v3196_v8  ;;  %v2558_v17 = vmax.f32 %v1281_v9, 0.0  ;;  %v3070_v22 = vmax.f32 %v1954_v10, 0.0 }
  0xfc   : > { %v1283_v14 = vpop.f32.mrf.mxu0  ;;  %v1956_v15 = vpop.f32.mrf.mxu1 }
  0xfd   : > { %v2814_v18 = vmax.f32 %v1283_v14, 0.0  ;;  %3846 = vadd.xlane.f32.xlu0 %v3452_v13  ;;  %v3197_v19 = vadd.f32 %v3069_v6, %v2941_v12  ;;  %v3326_v25 = vmax.f32 %v1956_v15, 0.0 }
  0xfe   : > { %v1287_v20 = vpop.f32.mrf.mxu0  ;;  %4697 = vmatmul.mubr.msk.bf16.gmra.mxu0 %vm994_vm2, %v5001_v11  ;;  %v1960_v21 = vpop.f32.mrf.mxu1  ;;  %4761 = vmatmul.mubr.msk.bf16.gmra.mxu1 %vm994_vm2, %v5001_v11 }
  0xff   : > { %v2942_v23 = vadd.f32 %v2814_v18, %v2558_v17  ;;  %v3453_v24 = vadd.f32 %v3325_v16, %v3197_v19  ;;  %1535 = vmatprep.mubr.bf16.mxu0 %v5062_v0  ;;  %2208 = vmatprep.mubr.bf16.mxu1 %v5062_v0  ;;  %v2559_v28 = vmax.f32 %v1287_v20, 0.0  ;;  %v3071_v29 = vmax.f32 %v1960_v21, 0.0  ;;  %v5004_v17 = vld [vmem:[%s5954_s2 + $0x100] sm:$0xff]  }
 0x100   : > { %v1289_v26 = vpop.f32.mrf.mxu0  ;;  %v1962_v27 = vpop.f32.mrf.mxu1 }
 0x101   : > { %v2815_v30 = vmax.f32 %v1289_v26, 0.0  ;;  %3848 = vadd.xlane.f32.xlu0 %v3453_v24  ;;  %v3198_v31 = vadd.f32 %v3070_v22, %v2942_v23  ;;  %v3327_v39 = vmax.f32 %v1962_v27, 0.0 }
 0x102   : > { %v1291_v32 = vpop.f32.mrf.mxu0  ;;  %v1964_v33 = vpop.f32.mrf.mxu1 }
 0x103   : > { %v2943_v35 = vadd.f32 %v2815_v30, %v2559_v28  ;;  %v3454_v36 = vadd.f32 %v3326_v25, %v3198_v31  ;;  %v2560_v40 = vmax.f32 %v1291_v32, 0.0  ;;  %v3072_v45 = vmax.f32 %v1964_v33, 0.0 }
 0x104   : > { %v1293_v37 = vpop.f32.mrf.mxu0  ;;  %v1966_v38 = vpop.f32.mrf.mxu1 }
 0x105   : > { %v2816_v41 = vmax.f32 %v1293_v37, 0.0  ;;  %3850 = vadd.xlane.f32.xlu0 %v3454_v36  ;;  %v3199_v42 = vadd.f32 %v3071_v29, %v2943_v35  ;;  %v3328_v48 = vmax.f32 %v1966_v38, 0.0 }
 0x106   : > { %v1297_v43 = vpop.f32.mrf.mxu0  ;;  %4698 = vmatmul.mubr.msk.bf16.gmra.mxu0 %vm994_vm2, %v5002_v34  ;;  %v1970_v44 = vpop.f32.mrf.mxu1  ;;  %4762 = vmatmul.mubr.msk.bf16.gmra.mxu1 %vm994_vm2, %v5002_v34 }
 0x107   : > { %v2944_v46 = vadd.f32 %v2816_v41, %v2560_v40  ;;  %v3455_v47 = vadd.f32 %v3327_v39, %v3199_v42  ;;  %1545 = vmatprep.mubr.bf16.mxu0 %v5062_v0  ;;  %2218 = vmatprep.mubr.bf16.mxu1 %v5062_v0  ;;  %v2561_v51 = vmax.f32 %v1297_v43, 0.0  ;;  %v3073_v52 = vmax.f32 %v1970_v44, 0.0  ;;  %v5005_v40 = vld [vmem:[%s5954_s2 + $0x108] sm:$0xff]  }
 0x108   : > { %v1299_v49 = vpop.f32.mrf.mxu0  ;;  %v1972_v50 = vpop.f32.mrf.mxu1 }
 0x109   : > { %v2817_v53 = vmax.f32 %v1299_v49, 0.0  ;;  %3852 = vadd.xlane.f32.xlu0 %v3455_v47  ;;  %v3200_v54 = vadd.f32 %v3072_v45, %v2944_v46  ;;  %v3329_v62 = vmax.f32 %v1972_v50, 0.0 }
 0x10a   : > { %v1301_v55 = vpop.f32.mrf.mxu0  ;;  %v1974_v56 = vpop.f32.mrf.mxu1 }
 0x10b   : > { %v2945_v58 = vadd.f32 %v2817_v53, %v2561_v51  ;;  %v3456_v59 = vadd.f32 %v3328_v48, %v3200_v54  ;;  %v2562_v63 = vmax.f32 %v1301_v55, 0.0  ;;  %v3074_v5 = vmax.f32 %v1974_v56, 0.0 }
 0x10c   : > { %v1303_v60 = vpop.f32.mrf.mxu0  ;;  %v1976_v61 = vpop.f32.mrf.mxu1 }
 0x10d   : > { %v2818_v1 = vmax.f32 %v1303_v60, 0.0  ;;  %3854 = vadd.xlane.f32.xlu0 %v3456_v59  ;;  %v3201_v2 = vadd.f32 %v3073_v52, %v2945_v58  ;;  %v3330_v8 = vmax.f32 %v1976_v61, 0.0 }
 0x10e   : > { %v1307_v3 = vpop.f32.mrf.mxu0  ;;  %4699 = vmatmul.mubr.msk.bf16.gmra.mxu0 %vm994_vm2, %v5003_v57  ;;  %v1980_v4 = vpop.f32.mrf.mxu1  ;;  %4763 = vmatmul.mubr.msk.bf16.gmra.mxu1 %vm994_vm2, %v5003_v57 }
 0x10f   : > { %v2946_v6 = vadd.f32 %v2818_v1, %v2562_v63  ;;  %v3457_v7 = vadd.f32 %v3329_v62, %v3201_v2  ;;  %1555 = vmatprep.mubr.bf16.mxu0 %v5062_v0  ;;  %2228 = vmatprep.mubr.bf16.mxu1 %v5062_v0  ;;  %v2563_v11 = vmax.f32 %v1307_v3, 0.0  ;;  %v3075_v12 = vmax.f32 %v1980_v4, 0.0  ;;  %v5006_v63 = vld [vmem:[%s5954_s2 + $0x110] sm:$0xff]  }
 0x110   : > { %v1309_v9 = vpop.f32.mrf.mxu0  ;;  %v1982_v10 = vpop.f32.mrf.mxu1 }
 0x111   : > { %v2819_v13 = vmax.f32 %v1309_v9, 0.0  ;;  %3856 = vadd.xlane.f32.xlu0 %v3457_v7  ;;  %v3202_v14 = vadd.f32 %v3074_v5, %v2946_v6  ;;  %v3331_v22 = vmax.f32 %v1982_v10, 0.0 }
 0x112   : > { %v1311_v15 = vpop.f32.mrf.mxu0  ;;  %v1984_v16 = vpop.f32.mrf.mxu1 }
 0x113   : > { %v2947_v18 = vadd.f32 %v2819_v13, %v2563_v11  ;;  %v3458_v19 = vadd.f32 %v3330_v8, %v3202_v14  ;;  %v2564_v23 = vmax.f32 %v1311_v15, 0.0  ;;  %v3076_v28 = vmax.f32 %v1984_v16, 0.0 }
 0x114   : > { %v1313_v20 = vpop.f32.mrf.mxu0  ;;  %v1986_v21 = vpop.f32.mrf.mxu1 }
 0x115   : > { %v2820_v24 = vmax.f32 %v1313_v20, 0.0  ;;  %3858 = vadd.xlane.f32.xlu0 %v3458_v19  ;;  %v3203_v25 = vadd.f32 %v3075_v12, %v2947_v18  ;;  %v3332_v31 = vmax.f32 %v1986_v21, 0.0 }
 0x116   : > { %v1317_v26 = vpop.f32.mrf.mxu0  ;;  %v1990_v27 = vpop.f32.mrf.mxu1  ;;  %4700 = vmatmul.mubr.msk.bf16.gmra.mxu0 %vm994_vm2, %v5004_v17  ;;  %4764 = vmatmul.mubr.msk.bf16.gmra.mxu1 %vm994_vm2, %v5004_v17 }
 0x117   : > { %v2948_v29 = vadd.f32 %v2820_v24, %v2564_v23  ;;  %v3459_v30 = vadd.f32 %v3331_v22, %v3203_v25  ;;  %1565 = vmatprep.mubr.bf16.mxu0 %v5062_v0  ;;  %2238 = vmatprep.mubr.bf16.mxu1 %v5062_v0  ;;  %v2565_v34 = vmax.f32 %v1317_v26, 0.0  ;;  %v3077_v35 = vmax.f32 %v1990_v27, 0.0  ;;  %v5007_v23 = vld [vmem:[%s5954_s2 + $0x118] sm:$0xff]  }
 0x118   : > { %v1319_v32 = vpop.f32.mrf.mxu0  ;;  %v1992_v33 = vpop.f32.mrf.mxu1 }
 0x119   : > { %v2821_v36 = vmax.f32 %v1319_v32, 0.0  ;;  %3860 = vadd.xlane.f32.xlu0 %v3459_v30  ;;  %v3204_v37 = vadd.f32 %v3076_v28, %v2948_v29  ;;  %v3333_v45 = vmax.f32 %v1992_v33, 0.0 }
 0x11a   : > { %v1321_v38 = vpop.f32.mrf.mxu0  ;;  %v1994_v39 = vpop.f32.mrf.mxu1 }
 0x11b   : > { %v2949_v41 = vadd.f32 %v2821_v36, %v2565_v34  ;;  %v3460_v42 = vadd.f32 %v3332_v31, %v3204_v37  ;;  %v2566_v46 = vmax.f32 %v1321_v38, 0.0  ;;  %v3078_v51 = vmax.f32 %v1994_v39, 0.0 }
 0x11c   : > { %v1323_v43 = vpop.f32.mrf.mxu0  ;;  %v1996_v44 = vpop.f32.mrf.mxu1 }
 0x11d   : > { %v2822_v47 = vmax.f32 %v1323_v43, 0.0  ;;  %3862 = vadd.xlane.f32.xlu0 %v3460_v42  ;;  %v3205_v48 = vadd.f32 %v3077_v35, %v2949_v41  ;;  %v3334_v54 = vmax.f32 %v1996_v44, 0.0 }
 0x11e   : > { %v1327_v49 = vpop.f32.mrf.mxu0  ;;  %v2000_v50 = vpop.f32.mrf.mxu1  ;;  %4701 = vmatmul.mubr.msk.bf16.gmra.mxu0 %vm994_vm2, %v5005_v40  ;;  %4765 = vmatmul.mubr.msk.bf16.gmra.mxu1 %vm994_vm2, %v5005_v40 }
 0x11f   : > { %v2950_v52 = vadd.f32 %v2822_v47, %v2566_v46  ;;  %v3461_v53 = vadd.f32 %v3333_v45, %v3205_v48  ;;  %1575 = vmatprep.mubr.bf16.mxu0 %v5062_v0  ;;  %2248 = vmatprep.mubr.bf16.mxu1 %v5062_v0  ;;  %v2567_v57 = vmax.f32 %v1327_v49, 0.0  ;;  %v3079_v58 = vmax.f32 %v2000_v50, 0.0  ;;  %v5008_v46 = vld [vmem:[%s5954_s2 + $0x120] sm:$0xff]  }
 0x120   : > { %v1329_v55 = vpop.f32.mrf.mxu0  ;;  %v2002_v56 = vpop.f32.mrf.mxu1 }
 0x121   : > { %v2823_v59 = vmax.f32 %v1329_v55, 0.0  ;;  %3864 = vadd.xlane.f32.xlu0 %v3461_v53  ;;  %v3206_v60 = vadd.f32 %v3078_v51, %v2950_v52  ;;  %v3335_v5 = vmax.f32 %v2002_v56, 0.0 }
 0x122   : > { %v1331_v61 = vpop.f32.mrf.mxu0  ;;  %v2004_v62 = vpop.f32.mrf.mxu1 }
 0x123   : > { %v2951_v1 = vadd.f32 %v2823_v59, %v2567_v57  ;;  %v3462_v2 = vadd.f32 %v3334_v54, %v3206_v60  ;;  %v2568_v6 = vmax.f32 %v1331_v61, 0.0  ;;  %v3080_v11 = vmax.f32 %v2004_v62, 0.0 }
 0x124   : > { %v1333_v3 = vpop.f32.mrf.mxu0  ;;  %v2006_v4 = vpop.f32.mrf.mxu1 }
 0x125   : > { %v2824_v7 = vmax.f32 %v1333_v3, 0.0  ;;  %3866 = vadd.xlane.f32.xlu0 %v3462_v2  ;;  %v3207_v8 = vadd.f32 %v3079_v58, %v2951_v1  ;;  %v3336_v14 = vmax.f32 %v2006_v4, 0.0 }
 0x126   : > { %v1337_v9 = vpop.f32.mrf.mxu0  ;;  %v2010_v10 = vpop.f32.mrf.mxu1  ;;  %4702 = vmatmul.mubr.msk.bf16.gmra.mxu0 %vm994_vm2, %v5006_v63  ;;  %4766 = vmatmul.mubr.msk.bf16.gmra.mxu1 %vm994_vm2, %v5006_v63 }
 0x127   : > { %v2952_v12 = vadd.f32 %v2824_v7, %v2568_v6  ;;  %v3463_v13 = vadd.f32 %v3335_v5, %v3207_v8  ;;  %1585 = vmatprep.mubr.bf16.mxu0 %v5062_v0  ;;  %2258 = vmatprep.mubr.bf16.mxu1 %v5062_v0  ;;  %v2569_v17 = vmax.f32 %v1337_v9, 0.0  ;;  %v3081_v18 = vmax.f32 %v2010_v10, 0.0  ;;  %v5009_v6 = vld [vmem:[%s5954_s2 + $0x128] sm:$0xff]  }
 0x128   : > { %v1339_v15 = vpop.f32.mrf.mxu0  ;;  %v2012_v16 = vpop.f32.mrf.mxu1 }
 0x129   : > { %v2825_v19 = vmax.f32 %v1339_v15, 0.0  ;;  %3868 = vadd.xlane.f32.xlu0 %v3463_v13  ;;  %v3208_v20 = vadd.f32 %v3080_v11, %v2952_v12  ;;  %v3337_v28 = vmax.f32 %v2012_v16, 0.0 }
 0x12a   : > { %v1341_v21 = vpop.f32.mrf.mxu0  ;;  %v2014_v22 = vpop.f32.mrf.mxu1 }
 0x12b   : > { %v2953_v24 = vadd.f32 %v2825_v19, %v2569_v17  ;;  %v3464_v25 = vadd.f32 %v3336_v14, %v3208_v20  ;;  %v2570_v29 = vmax.f32 %v1341_v21, 0.0  ;;  %v3082_v34 = vmax.f32 %v2014_v22, 0.0 }
 0x12c   : > { %v1343_v26 = vpop.f32.mrf.mxu0  ;;  %v2016_v27 = vpop.f32.mrf.mxu1 }
 0x12d   : > { %v2826_v30 = vmax.f32 %v1343_v26, 0.0  ;;  %3870 = vadd.xlane.f32.xlu0 %v3464_v25  ;;  %v3209_v31 = vadd.f32 %v3081_v18, %v2953_v24  ;;  %v3338_v37 = vmax.f32 %v2016_v27, 0.0 }
 0x12e   : > { %v1347_v32 = vpop.f32.mrf.mxu0  ;;  %v2020_v33 = vpop.f32.mrf.mxu1  ;;  %4703 = vmatmul.mubr.msk.bf16.gmra.mxu0 %vm994_vm2, %v5007_v23  ;;  %4767 = vmatmul.mubr.msk.bf16.gmra.mxu1 %vm994_vm2, %v5007_v23 }
 0x12f   : > { %v2954_v35 = vadd.f32 %v2826_v30, %v2570_v29  ;;  %v3465_v36 = vadd.f32 %v3337_v28, %v3209_v31  ;;  %1595 = vmatprep.mubr.bf16.mxu0 %v5062_v0  ;;  %2268 = vmatprep.mubr.bf16.mxu1 %v5062_v0  ;;  %v2571_v40 = vmax.f32 %v1347_v32, 0.0  ;;  %v3083_v41 = vmax.f32 %v2020_v33, 0.0  ;;  %v5010_v29 = vld [vmem:[%s5954_s2 + $0x130] sm:$0xff]  }
 0x130   : > { %v1349_v38 = vpop.f32.mrf.mxu0  ;;  %v2022_v39 = vpop.f32.mrf.mxu1 }
 0x131   : > { %v2827_v42 = vmax.f32 %v1349_v38, 0.0  ;;  %3872 = vadd.xlane.f32.xlu0 %v3465_v36  ;;  %v3210_v43 = vadd.f32 %v3082_v34, %v2954_v35  ;;  %v3339_v51 = vmax.f32 %v2022_v39, 0.0 }
 0x132   : > { %v1351_v44 = vpop.f32.mrf.mxu0  ;;  %v2024_v45 = vpop.f32.mrf.mxu1 }
 0x133   : > { %v2955_v47 = vadd.f32 %v2827_v42, %v2571_v40  ;;  %v3466_v48 = vadd.f32 %v3338_v37, %v3210_v43  ;;  %v2572_v52 = vmax.f32 %v1351_v44, 0.0  ;;  %v3084_v57 = vmax.f32 %v2024_v45, 0.0 }
 0x134   : > { %v1353_v49 = vpop.f32.mrf.mxu0  ;;  %v2026_v50 = vpop.f32.mrf.mxu1 }
 0x135   : > { %v2828_v53 = vmax.f32 %v1353_v49, 0.0  ;;  %3874 = vadd.xlane.f32.xlu0 %v3466_v48  ;;  %v3211_v54 = vadd.f32 %v3083_v41, %v2955_v47  ;;  %v3340_v60 = vmax.f32 %v2026_v50, 0.0 }
 0x136   : > { %v1357_v55 = vpop.f32.mrf.mxu0  ;;  %v2030_v56 = vpop.f32.mrf.mxu1  ;;  %4704 = vmatmul.mubr.msk.bf16.gmra.mxu0 %vm994_vm2, %v5008_v46  ;;  %4768 = vmatmul.mubr.msk.bf16.gmra.mxu1 %vm994_vm2, %v5008_v46 }
 0x137   : > { %v2956_v58 = vadd.f32 %v2828_v53, %v2572_v52  ;;  %v3467_v59 = vadd.f32 %v3339_v51, %v3211_v54  ;;  %1605 = vmatprep.mubr.bf16.mxu0 %v5062_v0  ;;  %2278 = vmatprep.mubr.bf16.mxu1 %v5062_v0  ;;  %v2573_v63 = vmax.f32 %v1357_v55, 0.0  ;;  %v3085_v1 = vmax.f32 %v2030_v56, 0.0  ;;  %v5011_v52 = vld [vmem:[%s5954_s2 + $0x138] sm:$0xff]  }
 0x138   : > { %v1359_v61 = vpop.f32.mrf.mxu0  ;;  %v2032_v62 = vpop.f32.mrf.mxu1 }
 0x139   : > { %v2829_v2 = vmax.f32 %v1359_v61, 0.0  ;;  %3876 = vadd.xlane.f32.xlu0 %v3467_v59  ;;  %v3212_v3 = vadd.f32 %v3084_v57, %v2956_v58  ;;  %v3341_v11 = vmax.f32 %v2032_v62, 0.0 }
 0x13a   : > { %v1361_v4 = vpop.f32.mrf.mxu0  ;;  %v2034_v5 = vpop.f32.mrf.mxu1 }
 0x13b   : > { %v2957_v7 = vadd.f32 %v2829_v2, %v2573_v63  ;;  %v3468_v8 = vadd.f32 %v3340_v60, %v3212_v3  ;;  %v2574_v12 = vmax.f32 %v1361_v4, 0.0  ;;  %v3086_v17 = vmax.f32 %v2034_v5, 0.0 }
 0x13c   : > { %v1363_v9 = vpop.f32.mrf.mxu0  ;;  %v2036_v10 = vpop.f32.mrf.mxu1 }
 0x13d   : > { %v2830_v13 = vmax.f32 %v1363_v9, 0.0  ;;  %3878 = vadd.xlane.f32.xlu0 %v3468_v8  ;;  %v3213_v14 = vadd.f32 %v3085_v1, %v2957_v7  ;;  %v3342_v20 = vmax.f32 %v2036_v10, 0.0 }
 0x13e   : > { %v1367_v15 = vpop.f32.mrf.mxu0  ;;  %v2040_v16 = vpop.f32.mrf.mxu1  ;;  %4705 = vmatmul.mubr.msk.bf16.gmra.mxu0 %vm994_vm2, %v5009_v6  ;;  %4769 = vmatmul.mubr.msk.bf16.gmra.mxu1 %vm994_vm2, %v5009_v6 }
 0x13f   : > { %v2958_v18 = vadd.f32 %v2830_v13, %v2574_v12  ;;  %v3469_v19 = vadd.f32 %v3341_v11, %v3213_v14  ;;  %1615 = vmatprep.mubr.bf16.mxu0 %v5062_v0  ;;  %2288 = vmatprep.mubr.bf16.mxu1 %v5062_v0  ;;  %v2575_v23 = vmax.f32 %v1367_v15, 0.0  ;;  %v3087_v24 = vmax.f32 %v2040_v16, 0.0  ;;  %v5012_v12 = vld [vmem:[%s5954_s2 + $0x140] sm:$0xff]  }
 0x140   : > { %v1369_v21 = vpop.f32.mrf.mxu0  ;;  %v2042_v22 = vpop.f32.mrf.mxu1 }
 0x141   : > { %v2831_v25 = vmax.f32 %v1369_v21, 0.0  ;;  %3880 = vadd.xlane.f32.xlu0 %v3469_v19  ;;  %v3214_v26 = vadd.f32 %v3086_v17, %v2958_v18  ;;  %v3343_v34 = vmax.f32 %v2042_v22, 0.0 }
 0x142   : > { %v1371_v27 = vpop.f32.mrf.mxu0  ;;  %v2044_v28 = vpop.f32.mrf.mxu1 }
 0x143   : > { %v2959_v30 = vadd.f32 %v2831_v25, %v2575_v23  ;;  %v3470_v31 = vadd.f32 %v3342_v20, %v3214_v26  ;;  %v2576_v35 = vmax.f32 %v1371_v27, 0.0  ;;  %v3088_v40 = vmax.f32 %v2044_v28, 0.0 }
 0x144   : > { %v1373_v32 = vpop.f32.mrf.mxu0  ;;  %v2046_v33 = vpop.f32.mrf.mxu1 }
 0x145   : > { %v2832_v36 = vmax.f32 %v1373_v32, 0.0  ;;  %3882 = vadd.xlane.f32.xlu0 %v3470_v31  ;;  %v3215_v37 = vadd.f32 %v3087_v24, %v2959_v30  ;;  %v3344_v43 = vmax.f32 %v2046_v33, 0.0 }
 0x146   : > { %v1377_v38 = vpop.f32.mrf.mxu0  ;;  %v2050_v39 = vpop.f32.mrf.mxu1  ;;  %4706 = vmatmul.mubr.msk.bf16.gmra.mxu0 %vm994_vm2, %v5010_v29  ;;  %4770 = vmatmul.mubr.msk.bf16.gmra.mxu1 %vm994_vm2, %v5010_v29 }
 0x147   : > { %v2960_v41 = vadd.f32 %v2832_v36, %v2576_v35  ;;  %v3471_v42 = vadd.f32 %v3343_v34, %v3215_v37  ;;  %1625 = vmatprep.mubr.bf16.mxu0 %v5062_v0  ;;  %2298 = vmatprep.mubr.bf16.mxu1 %v5062_v0  ;;  %v2577_v46 = vmax.f32 %v1377_v38, 0.0  ;;  %v3089_v47 = vmax.f32 %v2050_v39, 0.0  ;;  %v5013_v35 = vld [vmem:[%s5954_s2 + $0x148] sm:$0xff]  }
 0x148   : > { %v1379_v44 = vpop.f32.mrf.mxu0  ;;  %v2052_v45 = vpop.f32.mrf.mxu1 }
 0x149   : > { %v2833_v48 = vmax.f32 %v1379_v44, 0.0  ;;  %3884 = vadd.xlane.f32.xlu0 %v3471_v42  ;;  %v3216_v49 = vadd.f32 %v3088_v40, %v2960_v41  ;;  %v3345_v57 = vmax.f32 %v2052_v45, 0.0 }
 0x14a   : > { %v1381_v50 = vpop.f32.mrf.mxu0  ;;  %v2054_v51 = vpop.f32.mrf.mxu1 }
 0x14b   : > { %v2961_v53 = vadd.f32 %v2833_v48, %v2577_v46  ;;  %v3472_v54 = vadd.f32 %v3344_v43, %v3216_v49  ;;  %v2578_v58 = vmax.f32 %v1381_v50, 0.0  ;;  %v3090_v63 = vmax.f32 %v2054_v51, 0.0 }
 0x14c   : > { %v1383_v55 = vpop.f32.mrf.mxu0  ;;  %v2056_v56 = vpop.f32.mrf.mxu1 }
 0x14d   : > { %v2834_v59 = vmax.f32 %v1383_v55, 0.0  ;;  %3886 = vadd.xlane.f32.xlu0 %v3472_v54  ;;  %v3217_v60 = vadd.f32 %v3089_v47, %v2961_v53  ;;  %v3346_v3 = vmax.f32 %v2056_v56, 0.0 }
 0x14e   : > { %v1387_v61 = vpop.f32.mrf.mxu0  ;;  %v2060_v62 = vpop.f32.mrf.mxu1  ;;  %4707 = vmatmul.mubr.msk.bf16.gmra.mxu0 %vm994_vm2, %v5011_v52  ;;  %4771 = vmatmul.mubr.msk.bf16.gmra.mxu1 %vm994_vm2, %v5011_v52 }
 0x14f   : > { %v2962_v1 = vadd.f32 %v2834_v59, %v2578_v58  ;;  %v3473_v2 = vadd.f32 %v3345_v57, %v3217_v60  ;;  %1635 = vmatprep.mubr.bf16.mxu0 %v5062_v0  ;;  %2308 = vmatprep.mubr.bf16.mxu1 %v5062_v0  ;;  %v2579_v6 = vmax.f32 %v1387_v61, 0.0  ;;  %v3091_v7 = vmax.f32 %v2060_v62, 0.0  ;;  %v5014_v58 = vld [vmem:[%s5954_s2 + $0x150] sm:$0xff]  }
 0x150   : > { %v1389_v4 = vpop.f32.mrf.mxu0  ;;  %v2062_v5 = vpop.f32.mrf.mxu1 }
 0x151   : > { %v2835_v8 = vmax.f32 %v1389_v4, 0.0  ;;  %3888 = vadd.xlane.f32.xlu0 %v3473_v2  ;;  %v3218_v9 = vadd.f32 %v3090_v63, %v2962_v1  ;;  %v3347_v17 = vmax.f32 %v2062_v5, 0.0 }
 0x152   : > { %v1391_v10 = vpop.f32.mrf.mxu0  ;;  %v2064_v11 = vpop.f32.mrf.mxu1 }
 0x153   : > { %v2963_v13 = vadd.f32 %v2835_v8, %v2579_v6  ;;  %v3474_v14 = vadd.f32 %v3346_v3, %v3218_v9  ;;  %v2580_v18 = vmax.f32 %v1391_v10, 0.0  ;;  %v3092_v23 = vmax.f32 %v2064_v11, 0.0 }
 0x154   : > { %v1393_v15 = vpop.f32.mrf.mxu0  ;;  %v2066_v16 = vpop.f32.mrf.mxu1 }
 0x155   : > { %v2836_v19 = vmax.f32 %v1393_v15, 0.0  ;;  %3890 = vadd.xlane.f32.xlu0 %v3474_v14  ;;  %v3219_v20 = vadd.f32 %v3091_v7, %v2963_v13  ;;  %v3348_v26 = vmax.f32 %v2066_v16, 0.0 }
 0x156   : > { %v1397_v21 = vpop.f32.mrf.mxu0  ;;  %v2070_v22 = vpop.f32.mrf.mxu1  ;;  %4708 = vmatmul.mubr.msk.bf16.gmra.mxu0 %vm994_vm2, %v5012_v12  ;;  %4772 = vmatmul.mubr.msk.bf16.gmra.mxu1 %vm994_vm2, %v5012_v12 }
 0x157   : > { %v2964_v24 = vadd.f32 %v2836_v19, %v2580_v18  ;;  %v3475_v25 = vadd.f32 %v3347_v17, %v3219_v20  ;;  %1645 = vmatprep.mubr.bf16.mxu0 %v5062_v0  ;;  %2318 = vmatprep.mubr.bf16.mxu1 %v5062_v0  ;;  %v2581_v29 = vmax.f32 %v1397_v21, 0.0  ;;  %v3093_v30 = vmax.f32 %v2070_v22, 0.0  ;;  %v5015_v18 = vld [vmem:[%s5954_s2 + $0x158] sm:$0xff]  }
 0x158   : > { %v1399_v27 = vpop.f32.mrf.mxu0  ;;  %v2072_v28 = vpop.f32.mrf.mxu1 }
 0x159   : > { %v2837_v31 = vmax.f32 %v1399_v27, 0.0  ;;  %3892 = vadd.xlane.f32.xlu1 %v3475_v25  ;;  %v3220_v32 = vadd.f32 %v3092_v23, %v2964_v24  ;;  %v3349_v40 = vmax.f32 %v2072_v28, 0.0 }
 0x15a   : > { %v1401_v33 = vpop.f32.mrf.mxu0  ;;  %v2074_v34 = vpop.f32.mrf.mxu1 }
 0x15b   : > { %v2965_v36 = vadd.f32 %v2837_v31, %v2581_v29  ;;  %v3476_v37 = vadd.f32 %v3348_v26, %v3220_v32  ;;  %v2582_v41 = vmax.f32 %v1401_v33, 0.0  ;;  %v3094_v46 = vmax.f32 %v2074_v34, 0.0 }
 0x15c   : > { %v1403_v38 = vpop.f32.mrf.mxu0  ;;  %v2076_v39 = vpop.f32.mrf.mxu1 }
 0x15d   : > { %v2838_v42 = vmax.f32 %v1403_v38, 0.0  ;;  %3894 = vadd.xlane.f32.xlu0 %v3476_v37  ;;  %v3221_v43 = vadd.f32 %v3093_v30, %v2965_v36  ;;  %v3350_v49 = vmax.f32 %v2076_v39, 0.0 }
 0x15e   : > { %v1407_v44 = vpop.f32.mrf.mxu0  ;;  %v2080_v45 = vpop.f32.mrf.mxu1  ;;  %4709 = vmatmul.mubr.msk.bf16.gmra.mxu0 %vm994_vm2, %v5013_v35  ;;  %4773 = vmatmul.mubr.msk.bf16.gmra.mxu1 %vm994_vm2, %v5013_v35 }
 0x15f   : > { %v2966_v47 = vadd.f32 %v2838_v42, %v2582_v41  ;;  %v3477_v48 = vadd.f32 %v3349_v40, %v3221_v43  ;;  %1655 = vmatprep.mubr.bf16.mxu0 %v5062_v0  ;;  %2328 = vmatprep.mubr.bf16.mxu1 %v5062_v0  ;;  %v2583_v52 = vmax.f32 %v1407_v44, 0.0  ;;  %v3095_v53 = vmax.f32 %v2080_v45, 0.0  ;;  %v5016_v43 = vld [vmem:[%s5954_s2 + $0x160] sm:$0xff]  }
 0x160   : > { %v1409_v50 = vpop.f32.mrf.mxu0  ;;  %v2082_v51 = vpop.f32.mrf.mxu1 }
 0x161   : > { %v2839_v54 = vmax.f32 %v1409_v50, 0.0  ;;  %3896 = vadd.xlane.f32.xlu0 %v3477_v48  ;;  %v3222_v55 = vadd.f32 %v3094_v46, %v2966_v47  ;;  %v3351_v63 = vmax.f32 %v2082_v51, 0.0 }
 0x162   : > { %v1411_v56 = vpop.f32.mrf.mxu0  ;;  %v2084_v57 = vpop.f32.mrf.mxu1 }
 0x163   : > { %v2967_v59 = vadd.f32 %v2839_v54, %v2583_v52  ;;  %v3478_v60 = vadd.f32 %v3350_v49, %v3222_v55  ;;  %v2584_v1 = vmax.f32 %v1411_v56, 0.0  ;;  %v3096_v6 = vmax.f32 %v2084_v57, 0.0 }
 0x164   : > { %v1413_v61 = vpop.f32.mrf.mxu0  ;;  %v2086_v62 = vpop.f32.mrf.mxu1 }
 0x165   : > { %v2840_v2 = vmax.f32 %v1413_v61, 0.0  ;;  %3898 = vadd.xlane.f32.xlu1 %v3478_v60  ;;  %v3223_v3 = vadd.f32 %v3095_v53, %v2967_v59  ;;  %v3352_v9 = vmax.f32 %v2086_v62, 0.0 }
 0x166   : > { %v1417_v4 = vpop.f32.mrf.mxu0  ;;  %v2090_v5 = vpop.f32.mrf.mxu1  ;;  %4710 = vmatmul.mubr.msk.bf16.gmra.mxu0 %vm994_vm2, %v5014_v58  ;;  %4774 = vmatmul.mubr.msk.bf16.gmra.mxu1 %vm994_vm2, %v5014_v58 }
 0x167   : > { %v2968_v7 = vadd.f32 %v2840_v2, %v2584_v1  ;;  %v3479_v8 = vadd.f32 %v3351_v63, %v3223_v3  ;;  %1665 = vmatprep.mubr.bf16.mxu0 %v5062_v0  ;;  %2338 = vmatprep.mubr.bf16.mxu1 %v5062_v0  ;;  %v2585_v12 = vmax.f32 %v1417_v4, 0.0  ;;  %v3097_v13 = vmax.f32 %v2090_v5, 0.0  ;;  %v5017_v5 = vld [vmem:[%s5954_s2 + $0x168] sm:$0xff]  }
 0x168   : > { %v1419_v10 = vpop.f32.mrf.mxu0  ;;  %v2092_v11 = vpop.f32.mrf.mxu1 }
 0x169   : > { %v2841_v14 = vmax.f32 %v1419_v10, 0.0  ;;  %3900 = vadd.xlane.f32.xlu1 %v3479_v8  ;;  %v3224_v15 = vadd.f32 %v3096_v6, %v2968_v7  ;;  %v3353_v23 = vmax.f32 %v2092_v11, 0.0 }
 0x16a   : > { %v2094_v16 = vpop.f32.mrf.mxu1  ;;  %v5421_v17 = vpop.xlane.xlu0 %3832 }
 0x16b   : > { %v2969_v19 = vadd.f32 %v2841_v14, %v2585_v12  ;;  %v1421_v20 = vpop.f32.mrf.mxu0  ;;  %v3480_v21 = vadd.f32 %v3352_v9, %v3224_v15  ;;  %v3098_v32 = vmax.f32 %v2094_v16, 0.0 }
 0x16c   : > { %v2096_v22 = vpop.f32.mrf.mxu1  ;;  %v2586_v26 = vmax.f32 %v1421_v20, 0.0 }
 0x16d   : > { %v1423_v24 = vpop.f32.mrf.mxu0  ;;  %3902 = vadd.xlane.f32.xlu1 %v3480_v21  ;;  %v3225_v25 = vadd.f32 %v3097_v13, %v2969_v19  ;;  %v3354_v35 = vmax.f32 %v2096_v22, 0.0 }
 0x16e   : > { %v2842_v27 = vmax.f32 %v1423_v24, 0.0  ;;  %v2100_v28 = vpop.f32.mrf.mxu1  ;;  %v5426_v29 = vpop.xlane.xlu0 %3834  ;;  %4711 = vmatmul.mubr.msk.bf16.gmra.mxu0 %vm994_vm2, %v5015_v18  ;;  %4775 = vmatmul.mubr.msk.bf16.gmra.mxu1 %vm994_vm2, %v5015_v18 }
 0x16f   : > { %v1427_v30 = vpop.f32.mrf.mxu0  ;;  %v3481_v31 = vadd.f32 %v3353_v23, %v3225_v25  ;;  %1675 = vmatprep.mubr.bf16.mxu0 %v5062_v0  ;;  %2348 = vmatprep.mubr.bf16.mxu1 %v5062_v0  ;;  %v3099_v37 = vmax.f32 %v2100_v28, 0.0 }
 0x170   : > { %v2970_v33 = vadd.f32 %v2842_v27, %v2586_v26  ;;  %v2102_v34 = vpop.f32.mrf.mxu1  ;;  %v2587_v38 = vmax.f32 %v1427_v30, 0.0 }
 0x171   : > { %v1429_v36 = vpop.f32.mrf.mxu0  ;;  %3904 = vadd.xlane.f32.xlu1 %v3481_v31  ;;  %v3355_v49 = vmax.f32 %v2102_v34, 0.0 }
 0x172   : > { %v2843_v39 = vmax.f32 %v1429_v36, 0.0  ;;  %v2104_v40 = vpop.f32.mrf.mxu1  ;;  %v5432_v41 = vpop.xlane.xlu0 %3836  ;;  %v3226_v42 = vadd.f32 %v3098_v32, %v2970_v33  ;;  %v5018_v32 = vld [vmem:[%s5954_s2 + $0x170] sm:$0xff]  }
 0x173   : > { %v1431_v44 = vpop.f32.mrf.mxu0  ;;  %v3100_v56 = vmax.f32 %v2104_v40, 0.0 }
 0x174   : > { %v2971_v45 = vadd.f32 %v2843_v39, %v2587_v38  ;;  %v2106_v46 = vpop.f32.mrf.mxu1  ;;  %v3482_v47 = vadd.f32 %v3354_v35, %v3226_v42  ;;  %v2588_v50 = vmax.f32 %v1431_v44, 0.0 }
 0x175   : > { %v1433_v48 = vpop.f32.mrf.mxu0  ;;  %v3356_v60 = vmax.f32 %v2106_v46, 0.0 }
 0x176   : > { %v2844_v51 = vmax.f32 %v1433_v48, 0.0  ;;  %3906 = vadd.xlane.f32.xlu1 %v3482_v47  ;;  %v2110_v52 = vpop.f32.mrf.mxu1  ;;  %v5437_v53 = vpop.xlane.xlu0 %3838  ;;  %v3227_v54 = vadd.f32 %v3099_v37, %v2971_v45  ;;  %4712 = vmatmul.mubr.msk.bf16.gmra.mxu0 %vm994_vm2, %v5016_v43 }
 0x177   : > { %v1437_v55 = vpop.f32.mrf.mxu0  ;;  %4776 = vmatmul.mubr.msk.bf16.gmra.mxu1 %vm994_vm2, %v5016_v43  ;;  %1685 = vmatprep.mubr.bf16.mxu0 %v5062_v0  ;;  %v3101_v62 = vmax.f32 %v2110_v52, 0.0 }
 0x178   : > { %v2972_v57 = vadd.f32 %v2844_v51, %v2588_v50  ;;  %v2112_v58 = vpop.f32.mrf.mxu1  ;;  %v3483_v59 = vadd.f32 %v3355_v49, %v3227_v54  ;;  %2358 = vmatprep.mubr.bf16.mxu1 %v5062_v0  ;;  %v2589_v63 = vmax.f32 %v1437_v55, 0.0 }
 0x179   : > { %v1439_v61 = vpop.f32.mrf.mxu0  ;;  %v3357_v11 = vmax.f32 %v2112_v58, 0.0 }
 0x17a   : > { %v2845_v1 = vmax.f32 %v1439_v61, 0.0  ;;  %3908 = vadd.xlane.f32.xlu1 %v3483_v59  ;;  %v2114_v2 = vpop.f32.mrf.mxu1  ;;  %v5443_v3 = vpop.xlane.xlu0 %3840  ;;  %v3228_v4 = vadd.f32 %v3100_v56, %v2972_v57  ;;  %v5019_v59 = vld [vmem:[%s5954_s2 + $0x178] sm:$0xff]  }
 0x17b   : > { %v1441_v6 = vpop.f32.mrf.mxu0  ;;  %v3102_v19 = vmax.f32 %v2114_v2, 0.0 }
 0x17c   : > { %v2973_v7 = vadd.f32 %v2845_v1, %v2589_v63  ;;  %v2116_v8 = vpop.f32.mrf.mxu1  ;;  %v3484_v9 = vadd.f32 %v3356_v60, %v3228_v4  ;;  %v2590_v12 = vmax.f32 %v1441_v6, 0.0 }
 0x17d   : > { %v1443_v10 = vpop.f32.mrf.mxu0  ;;  %v3358_v23 = vmax.f32 %v2116_v8, 0.0 }
 0x17e   : > { %v2846_v13 = vmax.f32 %v1443_v10, 0.0  ;;  %3910 = vadd.xlane.f32.xlu1 %v3484_v9  ;;  %v2120_v14 = vpop.f32.mrf.mxu1  ;;  %v5448_v15 = vpop.xlane.xlu0 %3842  ;;  %v3229_v16 = vadd.f32 %v3101_v62, %v2973_v7  ;;  %4713 = vmatmul.mubr.msk.bf16.gmra.mxu0 %vm994_vm2, %v5017_v5 }
 0x17f   : > { %v1447_v18 = vpop.f32.mrf.mxu0  ;;  %4777 = vmatmul.mubr.msk.bf16.gmra.mxu1 %vm994_vm2, %v5017_v5  ;;  %1695 = vmatprep.mubr.bf16.mxu0 %v5062_v0  ;;  %v3103_v25 = vmax.f32 %v2120_v14, 0.0 }
 0x180   : > { %v2974_v20 = vadd.f32 %v2846_v13, %v2590_v12  ;;  %v2122_v21 = vpop.f32.mrf.mxu1  ;;  %v3485_v22 = vadd.f32 %v3357_v11, %v3229_v16  ;;  %2368 = vmatprep.mubr.bf16.mxu1 %v5062_v0  ;;  %v2591_v26 = vmax.f32 %v1447_v18, 0.0 }
 0x181   : > { %v1449_v24 = vpop.f32.mrf.mxu0  ;;  %v3359_v38 = vmax.f32 %v2122_v21, 0.0 }
 0x182   : > { %v2847_v27 = vmax.f32 %v1449_v24, 0.0  ;;  %3912 = vadd.xlane.f32.xlu1 %v3485_v22  ;;  %v2124_v28 = vpop.f32.mrf.mxu1  ;;  %v5454_v30 = vpop.xlane.xlu0 %3844  ;;  %v3230_v31 = vadd.f32 %v3102_v19, %v2974_v20  ;;  %v5020_v24 = vld [vmem:[%s5954_s2 + $0x180] sm:$0xff]  }
 0x183   : > { %v1451_v33 = vpop.f32.mrf.mxu0  ;;  %v3104_v46 = vmax.f32 %v2124_v28, 0.0 }
 0x184   : > { %v2975_v34 = vadd.f32 %v2847_v27, %v2591_v26  ;;  %v2126_v35 = vpop.f32.mrf.mxu1  ;;  %v3486_v36 = vadd.f32 %v3358_v23, %v3230_v31  ;;  %v2592_v39 = vmax.f32 %v1451_v33, 0.0 }
 0x185   : > { %v1453_v37 = vpop.f32.mrf.mxu0  ;;  %v3360_v50 = vmax.f32 %v2126_v35, 0.0 }
 0x186   : > { %v2848_v40 = vmax.f32 %v1453_v37, 0.0  ;;  %3914 = vadd.xlane.f32.xlu1 %v3486_v36  ;;  %v2130_v42 = vpop.f32.mrf.mxu1  ;;  %v5459_v43 = vpop.xlane.xlu0 %3846  ;;  %v3231_v44 = vadd.f32 %v3103_v25, %v2975_v34  ;;  %4714 = vmatmul.mubr.msk.bf16.gmra.mxu0 %vm994_vm2, %v5018_v32 }
 0x187   : > { %v1457_v45 = vpop.f32.mrf.mxu0  ;;  %4778 = vmatmul.mubr.msk.bf16.gmra.mxu1 %vm994_vm2, %v5018_v32  ;;  %1705 = vmatprep.mubr.bf16.mxu0 %v5062_v0  ;;  %v3105_v52 = vmax.f32 %v2130_v42, 0.0 }
 0x188   : > { %v2976_v47 = vadd.f32 %v2848_v40, %v2592_v39  ;;  %v2132_v48 = vpop.f32.mrf.mxu1  ;;  %v3487_v49 = vadd.f32 %v3359_v38, %v3231_v44  ;;  %2378 = vmatprep.mubr.bf16.mxu1 %v5062_v0  ;;  %v2593_v54 = vmax.f32 %v1457_v45, 0.0 }
 0x189   : > { %v1459_v51 = vpop.f32.mrf.mxu0  ;;  %v3361_v2 = vmax.f32 %v2132_v48, 0.0 }
 0x18a   : > { %v2849_v55 = vmax.f32 %v1459_v51, 0.0  ;;  %3916 = vadd.xlane.f32.xlu1 %v3487_v49  ;;  %v2134_v56 = vpop.f32.mrf.mxu1  ;;  %v5465_v57 = vpop.xlane.xlu0 %3848  ;;  %v3232_v58 = vadd.f32 %v3104_v46, %v2976_v47 }
 0x18b   : > { %v1461_v60 = vpop.f32.mrf.mxu0  ;;  %v3106_v10 = vmax.f32 %v2134_v56, 0.0 }
 0x18c   : > { %v2977_v61 = vadd.f32 %v2849_v55, %v2593_v54  ;;  %v2136_v62 = vpop.f32.mrf.mxu1  ;;  %v3488_v63 = vadd.f32 %v3360_v50, %v3232_v58  ;;  %v2594_v4 = vmax.f32 %v1461_v60, 0.0  ;;  %v5021_v54 = vld [vmem:[%s5954_s2 + $0x188] sm:$0xff]  }
 0x18d   : > { %v1463_v1 = vpop.f32.mrf.mxu0  ;;  %v3362_v14 = vmax.f32 %v2136_v62, 0.0 }
 0x18e   : > { %v2850_v5 = vmax.f32 %v1463_v1, 0.0  ;;  %3918 = vadd.xlane.f32.xlu1 %v3488_v63  ;;  %v2140_v6 = vpop.f32.mrf.mxu1  ;;  %v5470_v7 = vpop.xlane.xlu0 %3850  ;;  %v3233_v8 = vadd.f32 %v3105_v52, %v2977_v61  ;;  %4715 = vmatmul.mubr.msk.bf16.gmra.mxu0 %vm994_vm2, %v5019_v59 }
 0x18f   : > { %v1467_v9 = vpop.f32.mrf.mxu0  ;;  %4779 = vmatmul.mubr.msk.bf16.gmra.mxu1 %vm994_vm2, %v5019_v59  ;;  %1715 = vmatprep.mubr.bf16.mxu0 %v5062_v0  ;;  %v3107_v18 = vmax.f32 %v2140_v6, 0.0 }
 0x190   : > { %v2978_v11 = vadd.f32 %v2850_v5, %v2594_v4  ;;  %v2142_v12 = vpop.f32.mrf.mxu1  ;;  %v3489_v13 = vadd.f32 %v3361_v2, %v3233_v8  ;;  %2388 = vmatprep.mubr.bf16.mxu1 %v5062_v0  ;;  %v2595_v19 = vmax.f32 %v1467_v9, 0.0 }
 0x191   : > { %v1469_v16 = vpop.f32.mrf.mxu0  ;;  %v3363_v32 = vmax.f32 %v2142_v12, 0.0 }
 0x192   : > { %v2851_v20 = vmax.f32 %v1469_v16, 0.0  ;;  %3920 = vadd.xlane.f32.xlu1 %v3489_v13  ;;  %v2144_v21 = vpop.f32.mrf.mxu1  ;;  %v5476_v22 = vpop.xlane.xlu0 %3852  ;;  %v3234_v23 = vadd.f32 %v3106_v10, %v2978_v11 }
 0x193   : > { %v1471_v25 = vpop.f32.mrf.mxu0  ;;  %v3108_v39 = vmax.f32 %v2144_v21, 0.0  ;;  %v5022_v21 = vld [vmem:[%s5954_s2 + $0x190] sm:$0xff]  }
 0x194   : > { %v2979_v26 = vadd.f32 %v2851_v20, %v2595_v19  ;;  %v2146_v27 = vpop.f32.mrf.mxu1  ;;  %v3490_v28 = vadd.f32 %v3362_v14, %v3234_v23  ;;  %v2596_v33 = vmax.f32 %v1471_v25, 0.0 }
 0x195   : > { %v1473_v31 = vpop.f32.mrf.mxu0  ;;  %v3364_v45 = vmax.f32 %v2146_v27, 0.0 }
 0x196   : > { %v2852_v34 = vmax.f32 %v1473_v31, 0.0  ;;  %3922 = vadd.xlane.f32.xlu1 %v3490_v28  ;;  %v2150_v35 = vpop.f32.mrf.mxu1  ;;  %v5481_v36 = vpop.xlane.xlu0 %3854  ;;  %v3235_v37 = vadd.f32 %v3107_v18, %v2979_v26  ;;  %4716 = vmatmul.mubr.msk.bf16.gmra.mxu0 %vm994_vm2, %v5020_v24 }
 0x197   : > { %v1477_v38 = vpop.f32.mrf.mxu0  ;;  %4780 = vmatmul.mubr.msk.bf16.gmra.mxu1 %vm994_vm2, %v5020_v24  ;;  %1725 = vmatprep.mubr.bf16.mxu0 %v5062_v0  ;;  %v3109_v47 = vmax.f32 %v2150_v35, 0.0 }
 0x198   : > { %v2980_v40 = vadd.f32 %v2852_v34, %v2596_v33  ;;  %v2152_v42 = vpop.f32.mrf.mxu1  ;;  %v3491_v44 = vadd.f32 %v3363_v32, %v3235_v37  ;;  %2398 = vmatprep.mubr.bf16.mxu1 %v5062_v0  ;;  %v2597_v48 = vmax.f32 %v1477_v38, 0.0 }
 0x199   : > { %v1479_v46 = vpop.f32.mrf.mxu0  ;;  %v3365_v61 = vmax.f32 %v2152_v42, 0.0 }
 0x19a   : > { %v2853_v49 = vmax.f32 %v1479_v46, 0.0  ;;  %3924 = vadd.xlane.f32.xlu1 %v3491_v44  ;;  %v2154_v50 = vpop.f32.mrf.mxu1  ;;  %v5487_v51 = vpop.xlane.xlu0 %3856  ;;  %v3236_v52 = vadd.f32 %v3108_v39, %v2980_v40 }
 0x19b   : > { %v1481_v55 = vpop.f32.mrf.mxu0  ;;  %v3110_v6 = vmax.f32 %v2154_v50, 0.0 }
 0x19c   : > { %v2981_v56 = vadd.f32 %v2853_v49, %v2597_v48  ;;  %v2156_v58 = vpop.f32.mrf.mxu1  ;;  %v3492_v59 = vadd.f32 %v3364_v45, %v3236_v52  ;;  %v2598_v62 = vmax.f32 %v1481_v55, 0.0 }
 0x19d   : > { %v1483_v60 = vpop.f32.mrf.mxu0  ;;  %v3366_v11 = vmax.f32 %v2156_v58, 0.0 }
 0x19e   : > { %v2854_v63 = vmax.f32 %v1483_v60, 0.0  ;;  %3926 = vadd.xlane.f32.xlu1 %v3492_v59  ;;  %v2160_v1 = vpop.f32.mrf.mxu1  ;;  %v5492_v2 = vpop.xlane.xlu0 %3858  ;;  %v3237_v4 = vadd.f32 %v3109_v47, %v2981_v56  ;;  %4717 = vmatmul.mubr.msk.bf16.gmra.mxu0 %vm994_vm2, %v5021_v54 }
 0x19f   : > { %v1487_v5 = vpop.f32.mrf.mxu0  ;;  %4781 = vmatmul.mubr.msk.bf16.gmra.mxu1 %vm994_vm2, %v5021_v54  ;;  %1735 = vmatprep.mubr.bf16.mxu0 %v5062_v0  ;;  %v3111_v13 = vmax.f32 %v2160_v1, 0.0  ;;  %v5023_v54 = vld [vmem:[%s5954_s2 + $0x198] sm:$0xff]  }
 0x1a0   : > { %v2982_v8 = vadd.f32 %v2854_v63, %v2598_v62  ;;  %v2162_v9 = vpop.f32.mrf.mxu1  ;;  %v3493_v10 = vadd.f32 %v3365_v61, %v3237_v4  ;;  %2408 = vmatprep.mubr.bf16.mxu1 %v5062_v0  ;;  %v2599_v14 = vmax.f32 %v1487_v5, 0.0 }
 0x1a1   : > { %v1489_v12 = vpop.f32.mrf.mxu0  ;;  %v3367_v28 = vmax.f32 %v2162_v9, 0.0 }
 0x1a2   : > { %v2855_v16 = vmax.f32 %v1489_v12, 0.0  ;;  %3928 = vadd.xlane.f32.xlu0 %v3493_v10  ;;  %v2164_v18 = vpop.f32.mrf.mxu1  ;;  %v5498_v19 = vpop.xlane.xlu0 %3860  ;;  %v3238_v20 = vadd.f32 %v3110_v6, %v2982_v8 }
 0x1a3   : > { %v1491_v23 = vpop.f32.mrf.mxu0  ;;  %v3112_v38 = vmax.f32 %v2164_v18, 0.0 }
 0x1a4   : > { %v2983_v24 = vadd.f32 %v2855_v16, %v2599_v14  ;;  %v2166_v25 = vpop.f32.mrf.mxu1  ;;  %v3494_v26 = vadd.f32 %v3366_v11, %v3238_v20  ;;  %v2600_v31 = vmax.f32 %v1491_v23, 0.0 }
 0x1a5   : > { %v1493_v27 = vpop.f32.mrf.mxu0  ;;  %v3368_v44 = vmax.f32 %v2166_v25, 0.0 }
 0x1a6   : > { %v2856_v32 = vmax.f32 %v1493_v27, 0.0  ;;  %3930 = vadd.xlane.f32.xlu1 %v3494_v26  ;;  %v2170_v33 = vpop.f32.mrf.mxu1  ;;  %v5503_v34 = vpop.xlane.xlu0 %3862  ;;  %v3239_v35 = vadd.f32 %v3111_v13, %v2983_v24  ;;  %4718 = vmatmul.mubr.msk.bf16.gmra.mxu0 %vm994_vm2, %v5022_v21  ;;  %v5024_v24 = vld [vmem:[%s5954_s2 + $0x1a0] sm:$0xff]  }
 0x1a7   : > { %v1497_v37 = vpop.f32.mrf.mxu0  ;;  %4782 = vmatmul.mubr.msk.bf16.gmra.mxu1 %vm994_vm2, %v5022_v21  ;;  %1745 = vmatprep.mubr.bf16.mxu0 %v5062_v0  ;;  %v3113_v46 = vmax.f32 %v2170_v33, 0.0 }
 0x1a8   : > { %v2984_v39 = vadd.f32 %v2856_v32, %v2600_v31  ;;  %v2172_v40 = vpop.f32.mrf.mxu1  ;;  %v3495_v42 = vadd.f32 %v3367_v28, %v3239_v35  ;;  %2418 = vmatprep.mubr.bf16.mxu1 %v5062_v0  ;;  %v2601_v47 = vmax.f32 %v1497_v37, 0.0 }
 0x1a9   : > { %v1499_v45 = vpop.f32.mrf.mxu0  ;;  %v3369_v61 = vmax.f32 %v2172_v40, 0.0 }
 0x1aa   : > { %v2857_v48 = vmax.f32 %v1499_v45, 0.0  ;;  %3932 = vadd.xlane.f32.xlu1 %v3495_v42  ;;  %v2174_v49 = vpop.f32.mrf.mxu1  ;;  %v5509_v50 = vpop.xlane.xlu0 %3864  ;;  %v3240_v52 = vadd.f32 %v3112_v38, %v2984_v39 }
 0x1ab   : > { %v1501_v55 = vpop.f32.mrf.mxu0  ;;  %v3114_v8 = vmax.f32 %v2174_v49, 0.0 }
 0x1ac   : > { %v2985_v56 = vadd.f32 %v2857_v48, %v2601_v47  ;;  %v2176_v58 = vpop.f32.mrf.mxu1  ;;  %v3496_v59 = vadd.f32 %v3368_v44, %v3240_v52  ;;  %v2602_v62 = vmax.f32 %v1501_v55, 0.0 }
 0x1ad   : > { %v1503_v60 = vpop.f32.mrf.mxu0  ;;  %v3370_v12 = vmax.f32 %v2176_v58, 0.0 }
 0x1ae   : > { %v2858_v63 = vmax.f32 %v1503_v60, 0.0  ;;  %3934 = vadd.xlane.f32.xlu1 %v3496_v59  ;;  %v2180_v1 = vpop.f32.mrf.mxu1  ;;  %v5514_v4 = vpop.xlane.xlu0 %3866  ;;  %v3241_v5 = vadd.f32 %v3113_v46, %v2985_v56  ;;  %4719 = vmatmul.mubr.msk.bf16.gmra.mxu0 %vm994_vm2, %v5023_v54  ;;  %v5025_v59 = vld [vmem:[%s5954_s2 + $0x1a8] sm:$0xff]  }
 0x1af   : > { %v1507_v6 = vpop.f32.mrf.mxu0  ;;  %4783 = vmatmul.mubr.msk.bf16.gmra.mxu1 %vm994_vm2, %v5023_v54  ;;  %1755 = vmatprep.mubr.bf16.mxu0 %v5062_v0  ;;  %v3115_v14 = vmax.f32 %v2180_v1, 0.0 }
 0x1b0   : > { %v2986_v9 = vadd.f32 %v2858_v63, %v2602_v62  ;;  %v2182_v10 = vpop.f32.mrf.mxu1  ;;  %v3497_v11 = vadd.f32 %v3369_v61, %v3241_v5  ;;  %2428 = vmatprep.mubr.bf16.mxu1 %v5062_v0  ;;  %v2603_v16 = vmax.f32 %v1507_v6, 0.0 }
 0x1b1   : > { %v1509_v13 = vpop.f32.mrf.mxu0  ;;  %v3371_v32 = vmax.f32 %v2182_v10, 0.0 }
 0x1b2   : > { %v2859_v18 = vmax.f32 %v1509_v13, 0.0  ;;  %3936 = vadd.xlane.f32.xlu1 %v3497_v11  ;;  %v2184_v20 = vpop.f32.mrf.mxu1  ;;  %v5520_v21 = vpop.xlane.xlu0 %3868  ;;  %v3242_v23 = vadd.f32 %v3114_v8, %v2986_v9 }
 0x1b3   : > { %v1511_v25 = vpop.f32.mrf.mxu0  ;;  %v3116_v42 = vmax.f32 %v2184_v20, 0.0 }
 0x1b4   : > { %v2987_v26 = vadd.f32 %v2859_v18, %v2603_v16  ;;  %v2186_v27 = vpop.f32.mrf.mxu1  ;;  %v3498_v28 = vadd.f32 %v3370_v12, %v3242_v23  ;;  %v2604_v33 = vmax.f32 %v1511_v25, 0.0 }
 0x1b5   : > { %v1513_v31 = vpop.f32.mrf.mxu0  ;;  %v3372_v47 = vmax.f32 %v2186_v27, 0.0 }
 0x1b6   : > { %v2860_v35 = vmax.f32 %v1513_v31, 0.0  ;;  %3938 = vadd.xlane.f32.xlu1 %v3498_v28  ;;  %v2190_v37 = vpop.f32.mrf.mxu1  ;;  %v5525_v38 = vpop.xlane.xlu0 %3870  ;;  %v3243_v39 = vadd.f32 %v3115_v14, %v2987_v26  ;;  %4720 = vmatmul.mubr.msk.bf16.gmra.mxu0 %vm994_vm2, %v5024_v24 }
 0x1b7   : > { %v1517_v40 = vpop.f32.mrf.mxu0  ;;  %4784 = vmatmul.mubr.msk.bf16.gmra.mxu1 %vm994_vm2, %v5024_v24  ;;  %1765 = vmatprep.mubr.bf16.mxu0 %v5062_v0  ;;  %v3117_v49 = vmax.f32 %v2190_v37, 0.0 }
 0x1b8   : > { %v2988_v44 = vadd.f32 %v2860_v35, %v2604_v33  ;;  %v2192_v45 = vpop.f32.mrf.mxu1  ;;  %v3499_v46 = vadd.f32 %v3371_v32, %v3243_v39  ;;  %2438 = vmatprep.mubr.bf16.mxu1 %v5062_v0  ;;  %v2605_v52 = vmax.f32 %v1517_v40, 0.0  ;;  %v5026_v32 = vld [vmem:[%s5954_s2 + $0x1b0] sm:$0xff]  }
 0x1b9   : > { %v1519_v48 = vpop.f32.mrf.mxu0  ;;  %v3373_v5 = vmax.f32 %v2192_v45, 0.0 }
 0x1ba   : > { %v2861_v54 = vmax.f32 %v1519_v48, 0.0  ;;  %3940 = vadd.xlane.f32.xlu1 %v3499_v46  ;;  %v2194_v55 = vpop.f32.mrf.mxu1  ;;  %v5531_v56 = vpop.xlane.xlu0 %3872  ;;  %v3244_v58 = vadd.f32 %v3116_v42, %v2988_v44 }
 0x1bb   : > { %v1521_v60 = vpop.f32.mrf.mxu0  ;;  %v3118_v13 = vmax.f32 %v2194_v55, 0.0 }
 0x1bc   : > { %v2989_v61 = vadd.f32 %v2861_v54, %v2605_v52  ;;  %v2196_v62 = vpop.f32.mrf.mxu1  ;;  %v3500_v63 = vadd.f32 %v3372_v47, %v3244_v58  ;;  %v2606_v6 = vmax.f32 %v1521_v60, 0.0 }
 0x1bd   : > { %v1523_v1 = vpop.f32.mrf.mxu0  ;;  %v3374_v20 = vmax.f32 %v2196_v62, 0.0 }
 0x1be   : > { %v2862_v8 = vmax.f32 %v1523_v1, 0.0  ;;  %3942 = vadd.xlane.f32.xlu1 %v3500_v63  ;;  %v2200_v9 = vpop.f32.mrf.mxu1  ;;  %v5536_v10 = vpop.xlane.xlu0 %3874  ;;  %v3245_v11 = vadd.f32 %v3117_v49, %v2989_v61  ;;  %4721 = vmatmul.mubr.msk.bf16.gmra.mxu0 %vm994_vm2, %v5025_v59 }
 0x1bf   : > { %v1527_v12 = vpop.f32.mrf.mxu0  ;;  %4785 = vmatmul.mubr.msk.bf16.gmra.mxu1 %vm994_vm2, %v5025_v59  ;;  %1775 = vmatprep.mubr.bf16.mxu0 %v5062_v0  ;;  %v3119_v24 = vmax.f32 %v2200_v9, 0.0 }
 0x1c0   : > { %v2990_v14 = vadd.f32 %v2862_v8, %v2606_v6  ;;  %v2202_v16 = vpop.f32.mrf.mxu1  ;;  %v3501_v18 = vadd.f32 %v3373_v5, %v3245_v11  ;;  %2448 = vmatprep.mubr.bf16.mxu1 %v5062_v0  ;;  %v2607_v25 = vmax.f32 %v1527_v12, 0.0  ;;  %v5027_v8 = vld [vmem:[%s5954_s2 + $0x1b8] sm:$0xff]  }
 0x1c1   : > { %v1529_v23 = vpop.f32.mrf.mxu0  ;;  %v3375_v42 = vmax.f32 %v2202_v16, 0.0 }
 0x1c2   : > { %v2863_v26 = vmax.f32 %v1529_v23, 0.0  ;;  %3944 = vadd.xlane.f32.xlu1 %v3501_v18  ;;  %v2204_v27 = vpop.f32.mrf.mxu1  ;;  %v5542_v28 = vpop.xlane.xlu0 %3876  ;;  %v3246_v31 = vadd.f32 %v3118_v13, %v2990_v14 }
 0x1c3   : > { %v1531_v33 = vpop.f32.mrf.mxu0  ;;  %v3120_v52 = vmax.f32 %v2204_v27, 0.0 }
 0x1c4   : > { %v2991_v35 = vadd.f32 %v2863_v26, %v2607_v25  ;;  %v2206_v37 = vpop.f32.mrf.mxu1  ;;  %v3502_v39 = vadd.f32 %v3374_v20, %v3246_v31  ;;  %v2608_v44 = vmax.f32 %v1531_v33, 0.0 }
 0x1c5   : > { %v1533_v40 = vpop.f32.mrf.mxu0  ;;  %v3376_v59 = vmax.f32 %v2206_v37, 0.0 }
 0x1c6   : > { %v2864_v45 = vmax.f32 %v1533_v40, 0.0  ;;  %3946 = vadd.xlane.f32.xlu1 %v3502_v39  ;;  %v2210_v46 = vpop.f32.mrf.mxu1  ;;  %v5547_v47 = vpop.xlane.xlu0 %3878  ;;  %v3247_v48 = vadd.f32 %v3119_v24, %v2991_v35  ;;  %4722 = vmatmul.mubr.msk.bf16.gmra.mxu0 %vm994_vm2, %v5026_v32 }
 0x1c7   : > { %v1537_v49 = vpop.f32.mrf.mxu0  ;;  %4786 = vmatmul.mubr.msk.bf16.gmra.mxu1 %vm994_vm2, %v5026_v32  ;;  %1785 = vmatprep.mubr.bf16.mxu0 %v5062_v0  ;;  %v3121_v61 = vmax.f32 %v2210_v46, 0.0 }
 0x1c8   : > { %v2992_v54 = vadd.f32 %v2864_v45, %v2608_v44  ;;  %v2212_v55 = vpop.f32.mrf.mxu1  ;;  %v3503_v58 = vadd.f32 %v3375_v42, %v3247_v48  ;;  %2458 = vmatprep.mubr.bf16.mxu1 %v5062_v0  ;;  %v2609_v62 = vmax.f32 %v1537_v49, 0.0  ;;  %v5028_v48 = vld [vmem:[%s5954_s2 + $0x1c0] sm:$0xff]  }
 0x1c9   : > { %v1539_v60 = vpop.f32.mrf.mxu0  ;;  %v3377_v16 = vmax.f32 %v2212_v55, 0.0 }
 0x1ca   : > { %v2865_v63 = vmax.f32 %v1539_v60, 0.0  ;;  %3948 = vadd.xlane.f32.xlu1 %v3503_v58  ;;  %v2214_v1 = vpop.f32.mrf.mxu1  ;;  %v5553_v5 = vpop.xlane.xlu0 %3880  ;;  %v3248_v6 = vadd.f32 %v3120_v52, %v2992_v54 }
 0x1cb   : > { %v1541_v9 = vpop.f32.mrf.mxu0  ;;  %v3122_v27 = vmax.f32 %v2214_v1, 0.0 }
 0x1cc   : > { %v2993_v11 = vadd.f32 %v2865_v63, %v2609_v62  ;;  %v2216_v12 = vpop.f32.mrf.mxu1  ;;  %v3504_v13 = vadd.f32 %v3376_v59, %v3248_v6  ;;  %v2610_v18 = vmax.f32 %v1541_v9, 0.0 }
 0x1cd   : > { %v1543_v14 = vpop.f32.mrf.mxu0  ;;  %v3378_v35 = vmax.f32 %v2216_v12, 0.0 }
 0x1ce   : > { %v2866_v20 = vmax.f32 %v1543_v14, 0.0  ;;  %3950 = vadd.xlane.f32.xlu1 %v3504_v13  ;;  %v2220_v23 = vpop.f32.mrf.mxu1  ;;  %v5558_v24 = vpop.xlane.xlu0 %3882  ;;  %v3249_v25 = vadd.f32 %v3121_v61, %v2993_v11  ;;  %4723 = vmatmul.mubr.msk.bf16.gmra.mxu0 %vm994_vm2, %v5027_v8 }
 0x1cf   : > { %v1547_v26 = vpop.f32.mrf.mxu0  ;;  %4787 = vmatmul.mubr.msk.bf16.gmra.mxu1 %vm994_vm2, %v5027_v8  ;;  %1795 = vmatprep.mubr.bf16.mxu0 %v5062_v0  ;;  %v3123_v39 = vmax.f32 %v2220_v23, 0.0 }
 0x1d0   : > { %v2994_v31 = vadd.f32 %v2866_v20, %v2610_v18  ;;  %v2222_v32 = vpop.f32.mrf.mxu1  ;;  %v3505_v33 = vadd.f32 %v3377_v16, %v3249_v25  ;;  %2468 = vmatprep.mubr.bf16.mxu1 %v5062_v0  ;;  %v2611_v40 = vmax.f32 %v1547_v26, 0.0  ;;  %v5029_v25 = vld [vmem:[%s5954_s2 + $0x1c8] sm:$0xff]  }
 0x1d1   : > { %v1549_v37 = vpop.f32.mrf.mxu0  ;;  %v3379_v59 = vmax.f32 %v2222_v32, 0.0 }
 0x1d2   : > { %v2867_v42 = vmax.f32 %v1549_v37, 0.0  ;;  %3952 = vadd.xlane.f32.xlu1 %v3505_v33  ;;  %v2224_v44 = vpop.f32.mrf.mxu1  ;;  %v5564_v45 = vpop.xlane.xlu0 %3884  ;;  %v3250_v46 = vadd.f32 %v3122_v27, %v2994_v31 }
 0x1d3   : > { %v1551_v49 = vpop.f32.mrf.mxu0  ;;  %v3124_v8 = vmax.f32 %v2224_v44, 0.0 }
 0x1d4   : > { %v2995_v52 = vadd.f32 %v2867_v42, %v2611_v40  ;;  %v2226_v54 = vpop.f32.mrf.mxu1  ;;  %v3506_v55 = vadd.f32 %v3378_v35, %v3250_v46  ;;  %v2612_v60 = vmax.f32 %v1551_v49, 0.0 }
 0x1d5   : > { %v1553_v58 = vpop.f32.mrf.mxu0  ;;  %v3380_v13 = vmax.f32 %v2226_v54, 0.0 }
 0x1d6   : > { %v2868_v61 = vmax.f32 %v1553_v58, 0.0  ;;  %3954 = vadd.xlane.f32.xlu1 %v3506_v55  ;;  %v5569_v62 = vpop.xlane.xlu0 %3886  ;;  %v3251_v63 = vadd.f32 %v3123_v39, %v2995_v52  ;;  %4724 = vmatmul.mubr.msk.bf16.gmra.mxu0 %vm994_vm2, %v5028_v48  ;;  %v2230_v1 = vpop.f32.mrf.mxu1 }
 0x1d7   : > { %v1557_v6 = vpop.f32.mrf.mxu0  ;;  %4788 = vmatmul.mubr.msk.bf16.gmra.mxu1 %vm994_vm2, %v5028_v48  ;;  %1805 = vmatprep.mubr.bf16.mxu0 %v5062_v0  ;;  %v3125_v23 = vmax.f32 %v2230_v1, 0.0 }
 0x1d8   : > { %v2996_v9 = vadd.f32 %v2868_v61, %v2612_v60  ;;  %v3507_v11 = vadd.f32 %v3379_v59, %v3251_v63  ;;  %v2232_v12 = vpop.f32.mrf.mxu1  ;;  %2478 = vmatprep.mubr.bf16.mxu1 %v5062_v0  ;;  %v2613_v18 = vmax.f32 %v1557_v6, 0.0 }
 0x1d9   : > { %v1559_v14 = vpop.f32.mrf.mxu0  ;;  %v3381_v44 = vmax.f32 %v2232_v12, 0.0 }
 0x1da   : > { %3956 = vadd.xlane.f32.xlu1 %v3507_v11  ;;  %v3252_v16 = vadd.f32 %v3124_v8, %v2996_v9  ;;  %v2869_v20 = vmax.f32 %v1559_v14, 0.0  ;;  %v2234_v26 = vpop.f32.mrf.mxu1  ;;  %v5578_v31 = vpop.xlane.xlu0 %3888  ;;  %v5030_v8 = vld [vmem:[%s5954_s2 + $0x1d0] sm:$0xff]  }
 0x1db   : > { %v1561_v27 = vpop.f32.mrf.mxu0  ;;  %v3126_v54 = vmax.f32 %v2234_v26, 0.0 }
 0x1dc   : > { %v3508_v32 = vadd.f32 %v3380_v13, %v3252_v16  ;;  %v2997_v33 = vadd.f32 %v2869_v20, %v2613_v18  ;;  %v2236_v35 = vpop.f32.mrf.mxu1  ;;  %v2614_v39 = vmax.f32 %v1561_v27, 0.0 }
 0x1dd   : > { %v1563_v37 = vpop.f32.mrf.mxu0  ;;  %v3382_v59 = vmax.f32 %v2236_v35, 0.0 }
 0x1de   : > { %3958 = vadd.xlane.f32.xlu1 %v3508_v32  ;;  %v3253_v40 = vadd.f32 %v3125_v23, %v2997_v33  ;;  %v2870_v42 = vmax.f32 %v1563_v37, 0.0  ;;  %4725 = vmatmul.mubr.msk.bf16.gmra.mxu0 %vm994_vm2, %v5029_v25  ;;  %v2240_v46 = vpop.f32.mrf.mxu1  ;;  %v3891_v60 = vpop.xlane.xlu0 %3890  ;;  %v4103_v37 = vmul.f32 0.00390625, %v5503_v34 }
 0x1df   : > { %v1567_v48 = vpop.f32.mrf.mxu0  ;;  %4789 = vmatmul.mubr.msk.bf16.gmra.mxu1 %vm994_vm2, %v5029_v25  ;;  %1815 = vmatprep.mubr.bf16.mxu0 %v5062_v0  ;;  %v3127_v6 = vmax.f32 %v2240_v46, 0.0  ;;  %v4102_v46 = vmul.f32 0.00390625, %v5498_v19  ;;  %v4117_v34 = vmul.f32 0.00390625, %v3891_v60 }
 0x1e0   : > { %v2998_v49 = vadd.f32 %v2870_v42, %v2614_v39  ;;  %v5583_v52 = vadd.f32 %v3381_v44, %v3253_v40  ;;  %v2242_v55 = vpop.f32.mrf.mxu1  ;;  %2488 = vmatprep.mubr.bf16.mxu1 %v5062_v0  ;;  %v2615_v61 = vmax.f32 %v1567_v48, 0.0 }
 0x1e1   : > { %v1569_v58 = vpop.f32.mrf.mxu0  ;;  %v3383_v27 = vmax.f32 %v2242_v55, 0.0 }
 0x1e2   : > { %v3254_v63 = vadd.f32 %v3126_v54, %v2998_v49  ;;  %v2871_v1 = vmax.f32 %v1569_v58, 0.0  ;;  %v2244_v9 = vpop.f32.mrf.mxu1  ;;  %v3893_v16 = vpop.xlane.xlu1 %3892 }
 0x1e3   : > { %v1571_v11 = vpop.f32.mrf.mxu0  ;;  %v3128_v42 = vmax.f32 %v2244_v9, 0.0  ;;  %v4118_v48 = vmul.f32 0.00390625, %v3893_v16 }
 0x1e4   : > { %v2999_v12 = vadd.f32 %v2871_v1, %v2615_v61  ;;  %v5589_v13 = vadd.f32 %v3382_v59, %v3254_v63  ;;  %v2246_v14 = vpop.f32.mrf.mxu1  ;;  %v2616_v23 = vmax.f32 %v1571_v11, 0.0 }
 0x1e5   : > { %v1573_v18 = vpop.f32.mrf.mxu0  ;;  %v3384_v54 = vmax.f32 %v2246_v14, 0.0  ;;  %v4116_v14 = vmul.f32 0.00390625, %v5578_v31 }
 0x1e6   : > { %v3895_v20 = vpop.xlane.xlu0 %3894  ;;  %v3255_v25 = vadd.f32 %v3127_v6, %v2999_v12  ;;  %v2872_v26 = vmax.f32 %v1573_v18, 0.0  ;;  %4726 = vmatmul.mubr.msk.bf16.gmra.mxu0 %vm994_vm2, %v5030_v8  ;;  %v2250_v32 = vpop.f32.mrf.mxu1  ;;  %v5031_v6 = vld [vmem:[%s5954_s2 + $0x1d8] sm:$0xff]   ;;  %v4100_v12 = vmul.f32 0.00390625, %v5487_v51  ;;  %v4099_v51 = vmul.f32 0.00390625, %v5481_v36 }
 0x1e7   : > { %v4119_v33 = vmul.f32 0.00390625, %v3895_v20  ;;  %v1577_v35 = vpop.f32.mrf.mxu0  ;;  %4790 = vmatmul.mubr.msk.bf16.gmra.mxu1 %vm994_vm2, %v5030_v8  ;;  %1825 = vmatprep.mubr.bf16.mxu0 %v5062_v0  ;;  %v3129_v61 = vmax.f32 %v2250_v32, 0.0  ;;  %v4101_v8 = vmul.f32 0.00390625, %v5492_v2  ;;  %v4115_v2 = vmul.f32 0.00390625, %v5569_v62 }
 0x1e8   : > { %v3000_v39 = vadd.f32 %v2872_v26, %v2616_v23  ;;  %v5595_v40 = vadd.f32 %v3383_v27, %v3255_v25  ;;  %v2252_v44 = vpop.f32.mrf.mxu1  ;;  %2498 = vmatprep.mubr.bf16.mxu1 %v5062_v0  ;;  %v2617_v55 = vmax.f32 %v1577_v35, 0.0  ;;  %v4114_v35 = vmul.f32 0.00390625, %v5564_v45 }
 0x1e9   : > { %4800 = vmatprep.subr.mxu0 %v4119_v33  ;;  %v1579_v49 = vpop.f32.mrf.mxu0  ;;  %v3385_v25 = vmax.f32 %v2252_v44, 0.0  ;;  %v4098_v62 = vmul.f32 0.00390625, %v5476_v22  ;;  %v4113_v44 = vmul.f32 0.00390625, %v5558_v24  ;;  %v4097_v22 = vmul.f32 0.00390625, %v5470_v7 }
 0x1ea   : > { %4801 = vmatpush3.msra.mxu0 %v4103_v37  ;;  %v3256_v58 = vadd.f32 %v3128_v42, %v3000_v39  ;;  %v2873_v59 = vmax.f32 %v1579_v49, 0.0  ;;  %v2254_v63 = vpop.f32.mrf.mxu1  ;;  %v5032_v49 = vld [vmem:[%s5954_s2 + $0x1e0] sm:$0xff]  }
 0x1eb   : > { %4802 = vmatprep.subr.mxu0 %v4118_v48  ;;  %v1581_v1 = vpop.f32.mrf.mxu0  ;;  %v3130_v37 = vmax.f32 %v2254_v63, 0.0 }
 0x1ec   : > { %4803 = vmatpush3.msra.mxu0 %v4102_v46  ;;  %v3001_v19 = vadd.f32 %v2873_v59, %v2617_v55  ;;  %v5603_v9 = vadd.f32 %v3384_v54, %v3256_v58  ;;  %v2256_v11 = vpop.f32.mrf.mxu1  ;;  %v2618_v18 = vmax.f32 %v1581_v1, 0.0  ;;  %v4112_v55 = vmul.f32 0.00390625, %v5553_v5 }
 0x1ed   : > { %4804 = vmatprep.subr.mxu0 %v4117_v34  ;;  %v1583_v16 = vpop.f32.mrf.mxu0  ;;  %v3386_v59 = vmax.f32 %v2256_v11, 0.0  ;;  %v4111_v1 = vmul.f32 0.00390625, %v5547_v47  ;;  %v4110_v11 = vmul.f32 0.00390625, %v5542_v28  ;;  %v4094_v47 = vmul.f32 0.00390625, %v5454_v30  ;;  %v5033_v28 = vld [vmem:[%s5954_s2 + $0x1e8] sm:$0xff]  }
 0x1ee   : > { %4805 = vmatpush3.msra.mxu0 %v4101_v8  ;;  %v5607_v60 = vpop.xlane.xlu1 %3898  ;;  %v3257_v20 = vadd.f32 %v3129_v61, %v3001_v19  ;;  %v2874_v23 = vmax.f32 %v1583_v16, 0.0  ;;  %v5609_v26 = vpop.f32.mrf.mxu1  ;;  %v4096_v61 = vmul.f32 0.00390625, %v5465_v57  ;;  %v4095_v19 = vmul.f32 0.00390625, %v5459_v43 }
 0x1ef   : > { %4806 = vmatprep.subr.mxu0 %v4116_v14  ;;  %v1587_v27 = vpop.f32.mrf.mxu0  ;;  %4727 = vmatmul.mubr.msk.bf16.gmra.mxu0 %vm994_vm2, %v5031_v6  ;;  %v4109_v43 = vmul.f32 0.00390625, %v5536_v10  ;;  %v4093_v30 = vmul.f32 0.00390625, %v5448_v15 }
 0x1f0   : > { %4807 = vmatpush3.msra.mxu0 %v4100_v12  ;;  %v3002_v31 = vadd.f32 %v2874_v23, %v2618_v18  ;;  %4791 = vmatmul.mubr.msk.bf16.gmra.mxu1 %vm994_vm2, %v5031_v6  ;;  %v5615_v32 = vpop.f32.mrf.mxu1  ;;  %v3513_v33 = vadd.f32 %v3385_v25, %v3257_v20  ;;  %v2619_v58 = vmax.f32 %v1587_v27, 0.0  ;;  %v3131_v6 = vmax.f32 %v5609_v26, 0.0 }
 0x1f1   : > { %4808 = vmatprep.subr.mxu0 %v4115_v2  ;;  %v1589_v39 = vpop.f32.mrf.mxu0  ;;  %1835 = vmatprep.mubr.bf16.mxu0 %v5062_v0  ;;  %v4108_v2 = vmul.f32 0.00390625, %v5531_v56  ;;  %v3387_v27 = vmax.f32 %v5615_v32, 0.0 }
 0x1f2   : > { %4809 = vmatpush3.msra.mxu0 %v4099_v51  ;;  %v5620_v42 = vpop.xlane.xlu1 %3900  ;;  %v5622_v36 = vpop.f32.mrf.mxu1  ;;  %2508 = vmatprep.mubr.bf16.mxu1 %v5062_v0  ;;  %v3258_v46 = vadd.f32 %v3130_v37, %v3002_v31  ;;  %v2875_v48 = vmax.f32 %v1589_v39, 0.0  ;;  %v4092_v51 = vmul.f32 0.00390625, %v5443_v3  ;;  %v4107_v37 = vmul.f32 0.00390625, %v5525_v38 }
 0x1f3   : > { %4810 = vmatprep.subr.mxu0 %v4114_v35  ;;  %v1591_v45 = vpop.f32.mrf.mxu0  ;;  %3968 = vadd.xlane.f32.xlu0 %v3513_v33  ;;  %v3132_v3 = vmax.f32 %v5622_v36, 0.0  ;;  %v4106_v38 = vmul.f32 0.00390625, %v5520_v21  ;;  %v4105_v36 = vmul.f32 0.00390625, %v5514_v4  ;;  %v5034_v21 = vld [vmem:[%s5954_s2 + $0x1f0] sm:$0xff]   ;;  %v4104_v4 = vmul.f32 0.00390625, %v5509_v50 }
 0x1f4   : > { %4811 = vmatpush3.msra.mxu0 %v4098_v62  ;;  %v5630_v54 = vpop.f32.mrf.mxu1  ;;  %v3003_v7 = vadd.f32 %v2875_v48, %v2619_v58  ;;  %v3514_v5 = vadd.f32 %v3386_v59, %v3258_v46  ;;  %v2620_v25 = vmax.f32 %v1591_v45, 0.0  ;;  %v4091_v62 = vmul.f32 0.00390625, %v5437_v53 }
 0x1f5   : > { %4812 = vmatprep.subr.mxu0 %v4113_v44  ;;  %v1593_v24 = vpop.f32.mrf.mxu0  ;;  %v4090_v46 = vmul.f32 0.00390625, %v5432_v41  ;;  %v4089_v59 = vmul.f32 0.00390625, %v5426_v29 }
 0x1f6   : > { %4813 = vmatpush3.msra.mxu0 %v4097_v22  ;;  %v5634_v63 = vpop.xlane.xlu1 %3902  ;;  %v5636_v34 = vpop.f32.mrf.mxu1  ;;  %v2876_v16 = vmax.f32 %v1593_v24, 0.0  ;;  %v3259_v20 = vadd.f32 %v3131_v6, %v3003_v7  ;;  %v3388_v24 = vmax.f32 %v5630_v54, 0.0 }
 0x1f7   : > { %4814 = vmatprep.subr.mxu0 %v4112_v55  ;;  %v1597_v8 = vpop.f32.mrf.mxu0  ;;  %4728 = vmatmul.mubr.msk.bf16.gmra.mxu0 %vm994_vm2, %v5032_v49  ;;  %v3133_v53 = vmax.f32 %v5636_v34, 0.0 }
 0x1f8   : > { %4815 = vmatpush3.msra.mxu0 %v4096_v61  ;;  %4792 = vmatmul.mubr.msk.bf16.gmra.mxu1 %vm994_vm2, %v5032_v49  ;;  %v5643_v57 = vpop.f32.mrf.mxu1  ;;  %v3004_v31 = vadd.f32 %v2876_v16, %v2620_v25  ;;  %v3515_v56 = vadd.f32 %v3387_v27, %v3259_v20  ;;  %v2621_v32 = vmax.f32 %v1597_v8, 0.0 }
 0x1f9   : > { %4816 = vmatprep.subr.mxu0 %v4111_v1  ;;  %v1599_v12 = vpop.f32.mrf.mxu0  ;;  %1845 = vmatprep.mubr.bf16.mxu0 %v5062_v0  ;;  %v4088_v1 = vmul.f32 0.00390625, %v5421_v17  ;;  %v3389_v54 = vmax.f32 %v5643_v57, 0.0 }
 0x1fa   : > { %4817 = vmatpush3.msra.mxu0 %v4095_v19  ;;  %v5648_v14 = vpop.xlane.xlu1 %3904  ;;  %v5650_v18 = vpop.f32.mrf.mxu1  ;;  %2518 = vmatprep.mubr.bf16.mxu1 %v5062_v0  ;;  %v2877_v33 = vmax.f32 %v1599_v12, 0.0  ;;  %v3260_v45 = vadd.f32 %v3132_v3, %v3004_v31 }
 0x1fb   : > { %4818 = vmatprep.subr.mxu0 %v4110_v11  ;;  %v1601_v23 = vpop.f32.mrf.mxu0  ;;  %3970 = vadd.xlane.f32.xlu0 %v3514_v5  ;;  %v3134_v50 = vmax.f32 %v5650_v18, 0.0 }
 0x1fc   : > { %4819 = vmatpush3.msra.mxu0 %v4094_v47  ;;  %v5658_v26 = vpop.f32.mrf.mxu1  ;;  %v3005_v49 = vadd.f32 %v2877_v33, %v2621_v32  ;;  %v2622_v61 = vmax.f32 %v1601_v23, 0.0  ;;  %v3516_v11 = vadd.f32 %v3388_v24, %v3260_v45 }
 0x1fd   : > { %4820 = vmatprep.subr.mxu0 %v4109_v43  ;;  %v1603_v10 = vpop.f32.mrf.mxu0  ;;  %v3390_v27 = vmax.f32 %v5658_v26, 0.0 }
 0x1fe   : > { %4821 = vmatpush3.msra.mxu0 %v4093_v30  ;;  %v5663_v35 = vpop.f32.mrf.mxu1  ;;  %v2878_v22 = vmax.f32 %v1603_v10, 0.0  ;;  %v3261_v6 = vadd.f32 %v3133_v53, %v3005_v49 }
 0x1ff   : > { %v5666_v15 = vpop.xlane.xlu1 %3906  ;;  %4822 = vmatprep.subr.mxu0 %v4108_v2  ;;  %v1607_v39 = vpop.f32.mrf.mxu0  ;;  %4729 = vmatmul.mubr.msk.bf16.gmra.mxu0 %vm994_vm2, %v5033_v28  ;;  %v3135_v16 = vmax.f32 %v5663_v35, 0.0  ;;  %v5035_v2 = vld [vmem:[%s5954_s2 + $0x1f8] sm:$0xff]  }
 0x200   : > { %4823 = vmatpush3.msra.mxu0 %v4092_v51  ;;  %4793 = vmatmul.mubr.msk.bf16.gmra.mxu1 %vm994_vm2, %v5033_v28  ;;  %v5672_v44 = vpop.f32.mrf.mxu1  ;;  %v3006_v8 = vadd.f32 %v2878_v22, %v2622_v61  ;;  %v2623_v17 = vmax.f32 %v1607_v39, 0.0  ;;  %v3517_v57 = vadd.f32 %v3389_v54, %v3261_v6 }
 0x201   : > { %4824 = vmatprep.subr.mxu0 %v4107_v37  ;;  %v1609_v48 = vpop.f32.mrf.mxu0  ;;  %1855 = vmatprep.mubr.bf16.mxu0 %v5062_v0  ;;  %v3391_v3 = vmax.f32 %v5672_v44, 0.0 }
 0x202   : > { %4825 = vmatpush3.msra.mxu0 %v4091_v62  ;;  %v5678_v55 = vpop.f32.mrf.mxu1  ;;  %2528 = vmatprep.mubr.bf16.mxu1 %v5062_v0  ;;  %v2879_v5 = vmax.f32 %v1609_v48, 0.0  ;;  %v3262_v20 = vadd.f32 %v3134_v50, %v3006_v8 }
 0x203   : > { %v5682_v58 = vpop.xlane.xlu1 %3908  ;;  %4826 = vmatprep.subr.mxu0 %v4106_v38  ;;  %v1611_v41 = vpop.f32.mrf.mxu0  ;;  %3972 = vadd.xlane.f32.xlu0 %v3515_v56  ;;  %v3136_v26 = vmax.f32 %v5678_v55, 0.0 }
 0x204   : > { %4827 = vmatpush3.msra.mxu0 %v4090_v46  ;;  %v5689_v34 = vpop.f32.mrf.mxu1  ;;  %v3007_v23 = vadd.f32 %v2879_v5, %v2623_v17  ;;  %v2624_v10 = vmax.f32 %v1611_v41, 0.0  ;;  %v3518_v39 = vadd.f32 %v3390_v27, %v3262_v20 }
 0x205   : > { %4828 = vmatprep.subr.mxu0 %v4105_v36  ;;  %v1613_v7 = vpop.f32.mrf.mxu0  ;;  %v3392_v44 = vmax.f32 %v5689_v34, 0.0 }
 0x206   : > { %4829 = vmatpush3.msra.mxu0 %v4089_v59  ;;  %v2290_v19 = vpop.f32.mrf.mxu1  ;;  %v2880_v28 = vmax.f32 %v1613_v7, 0.0  ;;  %v3263_v33 = vadd.f32 %v3135_v16, %v3007_v23 }
 0x207   : > { %v5693_v12 = vpop.xlane.xlu1 %3910  ;;  %4830 = vmatprep.subr.mxu0 %v4104_v4  ;;  %v1617_v29 = vpop.f32.mrf.mxu0  ;;  %4730 = vmatmul.mubr.msk.bf16.gmra.mxu0 %vm994_vm2, %v5034_v21  ;;  %v3137_v48 = vmax.f32 %v2290_v19, 0.0 }
 0x208   : > { %4831 = vmatpush3.msra.mxu0 %v4088_v1  ;;  %4794 = vmatmul.mubr.msk.bf16.gmra.mxu1 %vm994_vm2, %v5034_v21  ;;  %v5699_v47 = vpop.f32.mrf.mxu1  ;;  %v3008_v35 = vadd.f32 %v2880_v28, %v2624_v10  ;;  %v2625_v62 = vmax.f32 %v1617_v29, 0.0  ;;  %v3519_v36 = vadd.f32 %v3391_v3, %v3263_v33 }
 0x209   : > { %v1619_v43 = vpop.f32.mrf.mxu0  ;;  %1865 = vmatprep.mubr.bf16.mxu0 %v5062_v0  ;;  %2538 = vmatprep.mubr.bf16.mxu1 %v5062_v0 }
 0x20a   : > { %v2294_v30 = vpop.f32.mrf.mxu1  ;;  %3974 = vadd.xlane.f32.xlu0 %v3516_v11  ;;  %v2881_v31 = vmax.f32 %v1619_v43, 0.0  ;;  %v3264_v53 = vadd.f32 %v3136_v26, %v3008_v35  ;;  %v3393_v11 = vmax.f32 %v5699_v47, 0.0 }
 0x20b   : > { %v5704_v25 = vpop.xlane.xlu1 %3912  ;;  %v1621_v18 = vpop.f32.mrf.mxu0  ;;  %v3138_v54 = vmax.f32 %v2294_v30, 0.0 }
 0x20c   : > { %v5710_v51 = vpop.f32.mrf.mxu1  ;;  %v3009_v38 = vadd.f32 %v2881_v31, %v2625_v62  ;;  %v2626_v21 = vmax.f32 %v1621_v18, 0.0  ;;  %v3520_v5 = vadd.f32 %v3392_v44, %v3264_v53 }
 0x20d   : > { %v1623_v0 = vpop.f32.mrf.mxu0  ;;  %v3394_v47 = vmax.f32 %v5710_v51, 0.0 }
 0x20e   : > { %v2300_v37 = vpop.f32.mrf.mxu1  ;;  %3976 = vadd.xlane.f32.xlu0 %v3517_v57  ;;  %v2882_v45 = vmax.f32 %v1623_v0, 0.0  ;;  %v3265_v55 = vadd.f32 %v3137_v48, %v3009_v38 }
 0x20f   : > { %v5712_v56 = vpop.xlane.xlu1 %3914  ;;  %v1627_v32 = vpop.f32.mrf.mxu0  ;;  %4731 = vmatmul.mubr.msk.bf16.gmra.mxu0 %vm994_vm2, %v5035_v2  ;;  %v3139_v50 = vmax.f32 %v2300_v37, 0.0 }
 0x210   : > { %4795 = vmatmul.mubr.msk.bf16.gmra.mxu1 %vm994_vm2, %v5035_v2  ;;  %v5718_v46 = vpop.f32.mrf.mxu1  ;;  %v3010_v61 = vadd.f32 %v2882_v45, %v2626_v21  ;;  %v2627_v29 = vmax.f32 %v1627_v32, 0.0  ;;  %v3521_v18 = vadd.f32 %v3393_v11, %v3265_v55 }
 0x211   : > { %v1629_v49 = vpop.f32.mrf.mxu0  ;;  %v3395_v51 = vmax.f32 %v5718_v46, 0.0 }
 0x212   : > { %v2304_v22 = vpop.f32.mrf.mxu1  ;;  %3978 = vadd.xlane.f32.xlu0 %v3518_v39  ;;  %v2883_v1 = vmax.f32 %v1629_v49, 0.0  ;;  %v3266_v20 = vadd.f32 %v3138_v54, %v3010_v61 }
 0x213   : > { %v5720_v41 = vpop.xlane.xlu1 %3916  ;;  %v1631_v59 = vpop.f32.mrf.mxu0  ;;  %v3140_v34 = vmax.f32 %v2304_v22, 0.0 }
 0x214   : > { %v2306_v24 = vpop.f32.mrf.mxu1  ;;  %v2628_v7 = vmax.f32 %v1631_v59, 0.0  ;;  %v3011_v23 = vadd.f32 %v2883_v1, %v2627_v29  ;;  %v3522_v3 = vadd.f32 %v3394_v47, %v3266_v20 }
 0x215   : > { %v1633_v4 = vpop.f32.mrf.mxu0  ;;  %v3396_v28 = vmax.f32 %v2306_v24, 0.0 }
 0x216   : > { %v2884_v6 = vmax.f32 %v1633_v4, 0.0  ;;  %v2310_v8 = vpop.f32.mrf.mxu1  ;;  %3980 = vadd.xlane.f32.xlu0 %v3519_v36  ;;  %v3267_v62 = vadd.f32 %v3139_v50, %v3011_v23 }
 0x217   : > { %v5723_v19 = vpop.xlane.xlu1 %3918  ;;  %v1637_v17 = vpop.f32.mrf.mxu0  ;;  %v3141_v31 = vmax.f32 %v2310_v8, 0.0 }
 0x218   : > { %v3012_v16 = vadd.f32 %v2884_v6, %v2628_v7  ;;  %v2312_v43 = vpop.f32.mrf.mxu1  ;;  %v2629_v2 = vmax.f32 %v1637_v17, 0.0  ;;  %v3523_v4 = vadd.f32 %v3395_v51, %v3267_v62 }
 0x219   : > { %v1639_v57 = vpop.f32.mrf.mxu0  ;;  %v3397_v48 = vmax.f32 %v2312_v43, 0.0 }
 0x21a   : > { %v3268_v27 = vadd.f32 %v3140_v34, %v3012_v16  ;;  %v2885_v10 = vmax.f32 %v1639_v57, 0.0  ;;  %v2314_v0 = vpop.f32.mrf.mxu1  ;;  %3982 = vadd.xlane.f32.xlu0 %v3520_v5 }
 0x21b   : > { %v5726_v33 = vpop.xlane.xlu1 %3920  ;;  %v1641_v30 = vpop.f32.mrf.mxu0  ;;  %v3142_v59 = vmax.f32 %v2314_v0, 0.0 }
 0x21c   : > { %v3013_v35 = vadd.f32 %v2885_v10, %v2629_v2  ;;  %v2316_v37 = vpop.f32.mrf.mxu1  ;;  %v3524_v39 = vadd.f32 %v3396_v28, %v3268_v27  ;;  %v2630_v26 = vmax.f32 %v1641_v30, 0.0 }
 0x21d   : > { %v1643_v32 = vpop.f32.mrf.mxu0  ;;  %v3398_v61 = vmax.f32 %v2316_v37, 0.0 }
 0x21e   : > { %v3269_v38 = vadd.f32 %v3141_v31, %v3013_v35  ;;  %v2886_v45 = vmax.f32 %v1643_v32, 0.0  ;;  %v5729_v49 = vpop.f32.mrf.mxu1  ;;  %3984 = vadd.xlane.f32.xlu0 %v3521_v18  ;;  %3990 = vadd.xlane.f32.xlu1 %v3524_v39 }
 0x21f   : > { %v5731_v53 = vpop.xlane.xlu1 %3922  ;;  %v5733_v22 = vpop.f32.mrf.mxu0 }
 0x220   : > { %v5736_v36 = vadd.f32 %v3397_v48, %v3269_v38  ;;  %v3014_v21 = vadd.f32 %v2886_v45, %v2630_v26  ;;  %v5738_v44 = vpop.f32.mrf.mxu1 }
 0x221   : > { %v5740_v24 = vpop.f32.mrf.mxu0 }
 0x222   : > { %v3270_v55 = vadd.f32 %v3142_v59, %v3014_v21  ;;  %v2324_v1 = vpop.f32.mrf.mxu1  ;;  %3986 = vadd.xlane.f32.xlu0 %v3522_v3 }
 0x223   : > { %v1651_v7 = vpop.f32.mrf.mxu0  ;;  %v5744_v5 = vpop.xlane.xlu1 %3924  ;;  %v3144_v16 = vmax.f32 %v2324_v1, 0.0 }
 0x224   : > { %v5742_v6 = vadd.f32 %v3398_v61, %v3270_v55  ;;  %v2326_v8 = vpop.f32.mrf.mxu1  ;;  %v2632_v11 = vmax.f32 %v1651_v7, 0.0 }
 0x225   : > { %v1653_v46 = vpop.f32.mrf.mxu0  ;;  %v3400_v43 = vmax.f32 %v2326_v8, 0.0 }
 0x226   : > { %v2888_v29 = vmax.f32 %v1653_v46, 0.0  ;;  %v2330_v54 = vpop.f32.mrf.mxu1  ;;  %3988 = vadd.xlane.f32.xlu0 %v3523_v4 }
 0x227   : > { %v1657_v17 = vpop.f32.mrf.mxu0  ;;  %v3145_v18 = vmax.f32 %v2330_v54, 0.0  ;;  %v5746_v27 = vpop.xlane.xlu1 %3926 }
 0x228   : > { %v3016_v50 = vadd.f32 %v2888_v29, %v2632_v11  ;;  %v2332_v34 = vpop.f32.mrf.mxu1  ;;  %v2633_v23 = vmax.f32 %v1657_v17, 0.0 }
 0x229   : > { %v1659_v20 = vpop.f32.mrf.mxu0  ;;  %v3401_v39 = vmax.f32 %v2332_v34, 0.0 }
 0x22a   : > { %v3272_v28 = vadd.f32 %v3144_v16, %v3016_v50  ;;  %v2889_v57 = vmax.f32 %v1659_v20, 0.0  ;;  %v2334_v2 = vpop.f32.mrf.mxu1 }
 0x22b   : > { %v1661_v10 = vpop.f32.mrf.mxu0  ;;  %v3146_v48 = vmax.f32 %v2334_v2, 0.0 }
 0x22c   : > { %v3017_v31 = vadd.f32 %v2889_v57, %v2633_v23  ;;  %v2336_v0 = vpop.f32.mrf.mxu1  ;;  %v3528_v47 = vadd.f32 %v3400_v43, %v3272_v28  ;;  %v2634_v35 = vmax.f32 %v1661_v10, 0.0 }
 0x22d   : > { %v1663_v30 = vpop.f32.mrf.mxu0  ;;  %v3402_v21 = vmax.f32 %v2336_v0, 0.0 }
 0x22e   : > { %v3273_v37 = vadd.f32 %v3145_v18, %v3017_v31  ;;  %v2890_v62 = vmax.f32 %v1663_v30, 0.0  ;;  %v2340_v32 = vpop.f32.mrf.mxu1  ;;  %3998 = vadd.xlane.f32.xlu0 %v3528_v47 }
 0x22f   : > { %v5748_v3 = vpop.xlane.xlu1 %3930  ;;  %v1667_v26 = vpop.f32.mrf.mxu0  ;;  %v3147_v4 = vmax.f32 %v2340_v32, 0.0 }
 0x230   : > { %v3018_v38 = vadd.f32 %v2890_v62, %v2634_v35  ;;  %v2342_v45 = vpop.f32.mrf.mxu1  ;;  %v3529_v51 = vadd.f32 %v3401_v39, %v3273_v37  ;;  %v2635_v55 = vmax.f32 %v1667_v26, 0.0 }
 0x231   : > { %v1669_v59 = vpop.f32.mrf.mxu0  ;;  %v3403_v34 = vmax.f32 %v2342_v45, 0.0 }
 0x232   : > { %v3274_v61 = vadd.f32 %v3146_v48, %v3018_v38  ;;  %v2891_v1 = vmax.f32 %v1669_v59, 0.0  ;;  %v2344_v7 = vpop.f32.mrf.mxu1  ;;  %4000 = vadd.xlane.f32.xlu0 %v3529_v51 }
 0x233   : > { %v5750_v8 = vpop.xlane.xlu1 %3932  ;;  %v1671_v46 = vpop.f32.mrf.mxu0  ;;  %v3148_v57 = vmax.f32 %v2344_v7, 0.0 }
 0x234   : > { %v3019_v11 = vadd.f32 %v2891_v1, %v2635_v55  ;;  %v2346_v29 = vpop.f32.mrf.mxu1  ;;  %v3530_v54 = vadd.f32 %v3402_v21, %v3274_v61  ;;  %v2636_v50 = vmax.f32 %v1671_v46, 0.0 }
 0x235   : > { %v1673_v17 = vpop.f32.mrf.mxu0  ;;  %v3404_v10 = vmax.f32 %v2346_v29, 0.0 }
 0x236   : > { %v3275_v16 = vadd.f32 %v3147_v4, %v3019_v11  ;;  %v2892_v43 = vmax.f32 %v1673_v17, 0.0  ;;  %4002 = vadd.xlane.f32.xlu0 %v3530_v54 }
 0x237   : > { %v5752_v20 = vpop.xlane.xlu1 %3934  ;;  %v1677_v23 = vpop.f32.mrf.mxu0 }
 0x238   : > { %v3020_v28 = vadd.f32 %v2892_v43, %v2636_v50  ;;  %v2350_v18 = vpop.f32.mrf.mxu1  ;;  %v3531_v2 = vadd.f32 %v3403_v34, %v3275_v16  ;;  %v2637_v0 = vmax.f32 %v1677_v23, 0.0 }
 0x239   : > { %v1679_v31 = vpop.f32.mrf.mxu0  ;;  %v3149_v35 = vmax.f32 %v2350_v18, 0.0 }
 0x23a   : > { %v3276_v47 = vadd.f32 %v3148_v57, %v3020_v28  ;;  %v2893_v30 = vmax.f32 %v1679_v31, 0.0  ;;  %v2352_v37 = vpop.f32.mrf.mxu1  ;;  %4004 = vadd.xlane.f32.xlu0 %v3531_v2 }
 0x23b   : > { %v5754_v39 = vpop.xlane.xlu1 %3936  ;;  %v1681_v62 = vpop.f32.mrf.mxu0  ;;  %v3405_v21 = vmax.f32 %v2352_v37, 0.0 }
 0x23c   : > { %v3021_v32 = vadd.f32 %v2893_v30, %v2637_v0  ;;  %v2354_v26 = vpop.f32.mrf.mxu1  ;;  %v3532_v38 = vadd.f32 %v3404_v10, %v3276_v47  ;;  %v2638_v45 = vmax.f32 %v1681_v62, 0.0 }
 0x23d   : > { %v1683_v48 = vpop.f32.mrf.mxu0  ;;  %v3150_v46 = vmax.f32 %v2354_v26, 0.0 }
 0x23e   : > { %v3277_v51 = vadd.f32 %v3149_v35, %v3021_v32  ;;  %v2894_v59 = vmax.f32 %v1683_v48, 0.0  ;;  %v2356_v55 = vpop.f32.mrf.mxu1  ;;  %4006 = vadd.xlane.f32.xlu0 %v3532_v38 }
 0x23f   : > { %v5756_v61 = vpop.xlane.xlu1 %3938  ;;  %v1687_v1 = vpop.f32.mrf.mxu0  ;;  %v3406_v29 = vmax.f32 %v2356_v55, 0.0 }
 0x240   : > { %v3533_v4 = vadd.f32 %v3405_v21, %v3277_v51  ;;  %v3022_v7 = vadd.f32 %v2894_v59, %v2638_v45  ;;  %v2360_v11 = vpop.f32.mrf.mxu1  ;;  %v2639_v17 = vmax.f32 %v1687_v1, 0.0 }
 0x241   : > { %v1689_v54 = vpop.f32.mrf.mxu0  ;;  %v3151_v34 = vmax.f32 %v2360_v11, 0.0 }
 0x242   : > { %v3278_v50 = vadd.f32 %v3150_v46, %v3022_v7  ;;  %v2895_v16 = vmax.f32 %v1689_v54, 0.0  ;;  %v2362_v43 = vpop.f32.mrf.mxu1  ;;  %4008 = vadd.xlane.f32.xlu0 %v3533_v4 }
 0x243   : > { %v5758_v23 = vpop.xlane.xlu1 %3940  ;;  %v1691_v28 = vpop.f32.mrf.mxu0  ;;  %v3407_v47 = vmax.f32 %v2362_v43, 0.0 }
 0x244   : > { %v3534_v57 = vadd.f32 %v3406_v29, %v3278_v50  ;;  %v3023_v18 = vadd.f32 %v2895_v16, %v2639_v17  ;;  %v2364_v2 = vpop.f32.mrf.mxu1  ;;  %v2640_v31 = vmax.f32 %v1691_v28, 0.0 }
 0x245   : > { %v1693_v10 = vpop.f32.mrf.mxu0  ;;  %v3152_v38 = vmax.f32 %v2364_v2, 0.0 }
 0x246   : > { %v3279_v0 = vadd.f32 %v3151_v34, %v3023_v18  ;;  %v2896_v30 = vmax.f32 %v1693_v10, 0.0  ;;  %v2366_v35 = vpop.f32.mrf.mxu1  ;;  %4010 = vadd.xlane.f32.xlu0 %v3534_v57 }
 0x247   : > { %v5760_v37 = vpop.xlane.xlu1 %3942  ;;  %v1697_v62 = vpop.f32.mrf.mxu0  ;;  %v3408_v45 = vmax.f32 %v2366_v35, 0.0 }
 0x248   : > { %v3535_v32 = vadd.f32 %v3407_v47, %v3279_v0  ;;  %v3024_v26 = vadd.f32 %v2896_v30, %v2640_v31  ;;  %v2370_v48 = vpop.f32.mrf.mxu1  ;;  %v2641_v21 = vmax.f32 %v1697_v62, 0.0 }
 0x249   : > { %v1699_v51 = vpop.f32.mrf.mxu0  ;;  %v3153_v1 = vmax.f32 %v2370_v48, 0.0 }
 0x24a   : > { %v3280_v59 = vadd.f32 %v3152_v38, %v3024_v26  ;;  %v2897_v55 = vmax.f32 %v1699_v51, 0.0  ;;  %v2372_v4 = vpop.f32.mrf.mxu1  ;;  %4012 = vadd.xlane.f32.xlu0 %v3535_v32  ;;  %v2887_v51 = vmax.f32 %v5740_v24, 0.0 }
 0x24b   : > { %v5762_v7 = vpop.xlane.xlu1 %3944  ;;  %v1701_v46 = vpop.f32.mrf.mxu0  ;;  %v3409_v34 = vmax.f32 %v2372_v4, 0.0 }
 0x24c   : > { %v3536_v11 = vadd.f32 %v3408_v45, %v3280_v59  ;;  %v3025_v29 = vadd.f32 %v2897_v55, %v2641_v21  ;;  %v2374_v54 = vpop.f32.mrf.mxu1  ;;  %v2642_v50 = vmax.f32 %v1701_v46, 0.0 }
 0x24d   : > { %v1703_v17 = vpop.f32.mrf.mxu0  ;;  %v3154_v31 = vmax.f32 %v2374_v54, 0.0 }
 0x24e   : > { %v3281_v16 = vadd.f32 %v3153_v1, %v3025_v29  ;;  %v2898_v43 = vmax.f32 %v1703_v17, 0.0  ;;  %v2376_v28 = vpop.f32.mrf.mxu1  ;;  %4014 = vadd.xlane.f32.xlu0 %v3536_v11  ;;  %v2631_v1 = vmax.f32 %v5733_v22, 0.0 }
 0x24f   : > { %v5764_v57 = vpop.xlane.xlu1 %3946  ;;  %v1707_v18 = vpop.f32.mrf.mxu0  ;;  %v3410_v47 = vmax.f32 %v2376_v28, 0.0 }
 0x250   : > { %v3537_v2 = vadd.f32 %v3409_v34, %v3281_v16  ;;  %v3026_v10 = vadd.f32 %v2898_v43, %v2642_v50  ;;  %v2380_v0 = vpop.f32.mrf.mxu1  ;;  %v2643_v35 = vmax.f32 %v1707_v18, 0.0  ;;  %v3143_v16 = vmax.f32 %v5729_v49, 0.0 }
 0x251   : > { %v1709_v30 = vpop.f32.mrf.mxu0  ;;  %v3155_v26 = vmax.f32 %v2380_v0, 0.0  ;;  %v3015_v43 = vadd.f32 %v2887_v51, %v2631_v1  ;;  %v3399_v51 = vmax.f32 %v5738_v44, 0.0 }
 0x252   : > { %v3282_v62 = vadd.f32 %v3154_v31, %v3026_v10  ;;  %v2899_v32 = vmax.f32 %v1709_v30, 0.0  ;;  %v2382_v38 = vpop.f32.mrf.mxu1  ;;  %4016 = vadd.xlane.f32.xlu0 %v3537_v2 }
 0x253   : > { %v5766_v48 = vpop.xlane.xlu1 %3948  ;;  %v1711_v45 = vpop.f32.mrf.mxu0  ;;  %v3411_v29 = vmax.f32 %v2382_v38, 0.0 }
 0x254   : > { %v3538_v21 = vadd.f32 %v3410_v47, %v3282_v62  ;;  %v3027_v59 = vadd.f32 %v2899_v32, %v2643_v35  ;;  %v2384_v55 = vpop.f32.mrf.mxu1  ;;  %v2644_v46 = vmax.f32 %v1711_v45, 0.0 }
 0x255   : > { %v1713_v4 = vpop.f32.mrf.mxu0  ;;  %v3156_v18 = vmax.f32 %v2384_v55, 0.0 }
 0x256   : > { %v3283_v11 = vadd.f32 %v3155_v26, %v3027_v59  ;;  %v2900_v54 = vmax.f32 %v1713_v4, 0.0  ;;  %v2386_v17 = vpop.f32.mrf.mxu1  ;;  %4018 = vadd.xlane.f32.xlu0 %v3538_v21  ;;  %v3271_v26 = vadd.f32 %v3143_v16, %v3015_v43 }
 0x257   : > { %v5770_v50 = vpop.xlane.xlu1 %3950  ;;  %v1717_v34 = vpop.f32.mrf.mxu0  ;;  %v3412_v10 = vmax.f32 %v2386_v17, 0.0 }
 0x258   : > { %v3539_v28 = vadd.f32 %v3411_v29, %v3283_v11  ;;  %v3028_v24 = vadd.f32 %v2900_v54, %v2644_v46  ;;  %v2390_v2 = vpop.f32.mrf.mxu1  ;;  %v2645_v22 = vmax.f32 %v1717_v34, 0.0  ;;  %v3527_v54 = vadd.f32 %v3399_v51, %v3271_v26 }
 0x259   : > { %v1719_v31 = vpop.f32.mrf.mxu0  ;;  %v3157_v30 = vmax.f32 %v2390_v2, 0.0 }
 0x25a   : > { %v3284_v0 = vadd.f32 %v3156_v18, %v3028_v24  ;;  %v2901_v47 = vmax.f32 %v1719_v31, 0.0  ;;  %v2392_v35 = vpop.f32.mrf.mxu1  ;;  %4020 = vadd.xlane.f32.xlu0 %v3539_v28 }
 0x25b   : > { %v5773_v62 = vpop.xlane.xlu1 %3952  ;;  %v1721_v32 = vpop.f32.mrf.mxu0  ;;  %v3413_v1 = vmax.f32 %v2392_v35, 0.0 }
 0x25c   : > { %v3029_v38 = vadd.f32 %v2901_v47, %v2645_v22  ;;  %v2394_v49 = vpop.f32.mrf.mxu1  ;;  %v3540_v45 = vadd.f32 %v3412_v10, %v3284_v0  ;;  %v2646_v55 = vmax.f32 %v1721_v32, 0.0 }
 0x25d   : > { %v1723_v21 = vpop.f32.mrf.mxu0  ;;  %v3158_v34 = vmax.f32 %v2394_v49, 0.0 }
 0x25e   : > { %v3285_v59 = vadd.f32 %v3157_v30, %v3029_v38  ;;  %v2902_v4 = vmax.f32 %v1723_v21, 0.0  ;;  %4022 = vadd.xlane.f32.xlu1 %v3540_v45  ;;  %v2396_v46 = vpop.f32.mrf.mxu1  ;;  %3966 = vadd.xlane.f32.xlu0 %v5603_v9 }
 0x25f   : > { %v3955_v11 = vpop.xlane.xlu1 %3954  ;;  %v1727_v29 = vpop.f32.mrf.mxu0  ;;  %v3414_v28 = vmax.f32 %v2396_v46, 0.0 }
 0x260   : > { %v5777_v17 = vadd.f32 %v3413_v1, %v3285_v59  ;;  %v3030_v16 = vadd.f32 %v2902_v4, %v2646_v55  ;;  %v2400_v43 = vpop.f32.mrf.mxu1  ;;  %v2647_v18 = vmax.f32 %v1727_v29, 0.0  ;;  %v4135_v29 = vmul.f32 0.00390625, %v5746_v27 }
 0x261   : > { %v1729_v24 = vpop.f32.mrf.mxu0  ;;  %v3159_v10 = vmax.f32 %v2400_v43, 0.0  ;;  %v4134_v27 = vmul.f32 0.00390625, %v5744_v5 }
 0x262   : > { %v3286_v44 = vadd.f32 %v3158_v34, %v3030_v16  ;;  %v2903_v2 = vmax.f32 %v1729_v24, 0.0  ;;  %v2402_v31 = vpop.f32.mrf.mxu1  ;;  %3996 = vadd.xlane.f32.xlu0 %v3527_v54 }
 0x263   : > { %v3957_v22 = vpop.xlane.xlu1 %3956  ;;  %v1731_v0 = vpop.f32.mrf.mxu0  ;;  %v3415_v49 = vmax.f32 %v2402_v31, 0.0  ;;  %v4149_v31 = vmul.f32 0.00390625, %v3955_v11  ;;  %v4132_v11 = vmul.f32 0.00390625, %v5726_v33 }
 0x264   : > { %v5779_v47 = vadd.f32 %v3414_v28, %v3286_v44  ;;  %v3031_v9 = vadd.f32 %v2903_v2, %v2647_v18  ;;  %v2404_v30 = vpop.f32.mrf.mxu1  ;;  %v2648_v32 = vmax.f32 %v1731_v0, 0.0  ;;  %v4150_v54 = vmul.f32 0.00390625, %v3957_v22  ;;  %v4216_v2 = vld [vmem:[%s5955_s3] sm:$0x3f] }
 0x265   : > { %v1733_v35 = vpop.f32.mrf.mxu0  ;;  %v3160_v4 = vmax.f32 %v2404_v30, 0.0  ;;  %v4148_v30 = vmul.f32 0.00390625, %v5773_v62 }
 0x266   : > { %v3287_v26 = vadd.f32 %v3159_v10, %v3031_v9  ;;  %v2904_v38 = vmax.f32 %v1733_v35, 0.0  ;;  %v2406_v45 = vpop.f32.mrf.mxu1  ;;  %3964 = vadd.xlane.f32.xlu0 %v5595_v40  ;;  %v4217_v40 = vld [vmem:[%s5955_s3 + $0x8] sm:$0x3f] }
 0x267   : > { %v3959_v51 = vpop.xlane.xlu1 %3958  ;;  %v1737_v21 = vpop.f32.mrf.mxu0  ;;  %v3416_v43 = vmax.f32 %v2406_v45, 0.0  ;;  %4289 = vmatprep.mubr.f32.mxu0 %v4217_v40 }
 0x268   : > { %v4151_v59 = vmul.f32 0.00390625, %v3959_v51  ;;  %v3032_v55 = vadd.f32 %v2904_v38, %v2648_v32  ;;  %v5782_v1 = vadd.f32 %v3415_v49, %v3287_v26  ;;  %v2410_v46 = vpop.f32.mrf.mxu1  ;;  %v2649_v16 = vmax.f32 %v1737_v21, 0.0  ;;  %4290 = vmatmul.mubr.f32.vlgmr.msra.gmra.mxu0 %v4216_v2 }
 0x269   : > { %v1739_v34 = vpop.f32.mrf.mxu0  ;;  %v3161_v44 = vmax.f32 %v2410_v46, 0.0  ;;  %v4147_v51 = vmul.f32 0.00390625, %v5770_v50  ;;  %v4130_v50 = vmul.f32 0.00390625, %v5720_v41 }
 0x26a   : > { %4835 = vmatprep.subr.mxu1 %v4151_v59  ;;  %v3288_v28 = vadd.f32 %v3160_v4, %v3032_v55  ;;  %v2905_v24 = vmax.f32 %v1739_v34, 0.0  ;;  %v2412_v18 = vpop.f32.mrf.mxu1  ;;  %3994 = vadd.xlane.f32.xlu0 %v5742_v6  ;;  %v4133_v6 = vmul.f32 0.00390625, %v5731_v53  ;;  %v4131_v55 = vmul.f32 0.00390625, %v5723_v19 }
 0x26b   : > { %4836 = vmatpush3.msra.mxu1 %v4135_v29  ;;  %v1741_v10 = vpop.f32.mrf.mxu0  ;;  %v3417_v38 = vmax.f32 %v2412_v18, 0.0  ;;  %v4146_v4 = vmul.f32 0.00390625, %v5766_v48  ;;  %v4144_v18 = vmul.f32 0.00390625, %v5762_v7 }
 0x26c   : > { %4837 = vmatprep.subr.mxu1 %v4150_v54  ;;  %v3033_v22 = vadd.f32 %v2905_v24, %v2649_v16  ;;  %v5793_v0 = vadd.f32 %v3416_v43, %v3288_v28  ;;  %v2414_v9 = vpop.f32.mrf.mxu1  ;;  %v2650_v32 = vmax.f32 %v1741_v10, 0.0  ;;  %v4145_v28 = vmul.f32 0.00390625, %v5764_v57 }
 0x26d   : > { %4838 = vmatpush3.msra.mxu1 %v4134_v27  ;;  %v1743_v35 = vpop.f32.mrf.mxu0  ;;  %v3162_v62 = vmax.f32 %v2414_v9, 0.0  ;;  %v4128_v57 = vmul.f32 0.00390625, %v5704_v25 }
 0x26e   : > { %4839 = vmatprep.subr.mxu1 %v4149_v31  ;;  %v3289_v26 = vadd.f32 %v3161_v44, %v3033_v22  ;;  %v2906_v5 = vmax.f32 %v1743_v35, 0.0  ;;  %v2416_v49 = vpop.f32.mrf.mxu1  ;;  %3962 = vadd.xlane.f32.xlu0 %v5589_v13  ;;  %v4129_v44 = vmul.f32 0.00390625, %v5712_v56  ;;  %v4143_v22 = vmul.f32 0.00390625, %v5760_v37 }
 0x26f   : > { %4840 = vmatpush3.msra.mxu1 %v4133_v6  ;;  %v1747_v45 = vpop.f32.mrf.mxu0  ;;  %v3418_v29 = vmax.f32 %v2416_v49, 0.0  ;;  %v4127_v35 = vmul.f32 0.00390625, %v5693_v12 }
 0x270   : > { %4841 = vmatprep.subr.mxu1 %v4148_v30  ;;  %v3034_v53 = vadd.f32 %v2906_v5, %v2650_v32  ;;  %v5800_v21 = vadd.f32 %v3417_v38, %v3289_v26  ;;  %v2420_v59 = vpop.f32.mrf.mxu1  ;;  %v2651_v13 = vmax.f32 %v1747_v45, 0.0  ;;  %v5812_v30 = vpop.xlane.xlu0 %3896  ;;  %v4142_v32 = vmul.f32 0.00390625, %v5758_v23 }
 0x271   : > { %4842 = vmatpush3.msra.mxu1 %v4132_v11  ;;  %v1749_v46 = vpop.f32.mrf.mxu0  ;;  %v3163_v16 = vmax.f32 %v2420_v59, 0.0  ;;  %v4126_v11 = vmul.f32 0.00390625, %v5682_v58 }
 0x272   : > { %4843 = vmatprep.subr.mxu1 %v4147_v51  ;;  %v3290_v33 = vadd.f32 %v3162_v62, %v3034_v53  ;;  %v2907_v54 = vmax.f32 %v1749_v46, 0.0  ;;  %v2422_v34 = vpop.f32.mrf.mxu1  ;;  %3992 = vadd.xlane.f32.xlu0 %v5736_v36  ;;  %v4141_v51 = vmul.f32 0.00390625, %v5756_v61  ;;  %v4125_v62 = vmul.f32 0.00390625, %v5666_v15 }
 0x273   : > { %4844 = vmatpush3.msra.mxu1 %v4131_v55  ;;  %v1751_v43 = vpop.f32.mrf.mxu0  ;;  %v3419_v10 = vmax.f32 %v2422_v34, 0.0  ;;  %v4140_v55 = vmul.f32 0.00390625, %v5754_v39 }
 0x274   : > { %4845 = vmatprep.subr.mxu1 %v4146_v4  ;;  %v3035_v19 = vadd.f32 %v2907_v54, %v2651_v13  ;;  %v2424_v48 = vpop.f32.mrf.mxu1  ;;  %v3546_v24 = vadd.f32 %v3418_v29, %v3290_v33  ;;  %v2652_v2 = vmax.f32 %v1751_v43, 0.0  ;;  %v3929_v59 = vpop.xlane.xlu0 %3928  ;;  %v4124_v54 = vmul.f32 0.00390625, %v5648_v14 }
 0x275   : > { %4846 = vmatpush3.msra.mxu1 %v4130_v50  ;;  %v1753_v40 = vpop.f32.mrf.mxu0  ;;  %v3164_v7 = vmax.f32 %v2424_v48, 0.0  ;;  %v4123_v43 = vmul.f32 0.00390625, %v5634_v63  ;;  %v4137_v63 = vmul.f32 0.00390625, %v5748_v3 }
 0x276   : > { %4847 = vmatprep.subr.mxu1 %v4145_v28  ;;  %v3291_v27 = vadd.f32 %v3163_v16, %v3035_v19  ;;  %v2908_v36 = vmax.f32 %v1753_v40, 0.0  ;;  %v2426_v41 = vpop.f32.mrf.mxu1  ;;  %3960 = vadd.xlane.f32.xlu0 %v5583_v52  ;;  %v4139_v16 = vmul.f32 0.00390625, %v5752_v20  ;;  %v4138_v28 = vmul.f32 0.00390625, %v5750_v8 }
 0x277   : > { %4848 = vmatpush3.msra.mxu1 %v4129_v44  ;;  %v1757_v31 = vpop.f32.mrf.mxu0  ;;  %4034 = vadd.xlane.f32.xlu1 %v3546_v24  ;;  %v3420_v26 = vmax.f32 %v2426_v41, 0.0  ;;  %v4121_v41 = vmul.f32 0.00390625, %v5607_v60 }
 0x278   : > { %4849 = vmatprep.subr.mxu1 %v4144_v18  ;;  %v3036_v56 = vadd.f32 %v2908_v36, %v2652_v2  ;;  %v2430_v9 = vpop.f32.mrf.mxu1  ;;  %v3547_v6 = vadd.f32 %v3419_v10, %v3291_v27  ;;  %v2653_v25 = vmax.f32 %v1757_v31, 0.0  ;;  %v4122_v2 = vmul.f32 0.00390625, %v5620_v42 }
 0x279   : > { %4850 = vmatpush3.msra.mxu1 %v4128_v57  ;;  %v1759_v52 = vpop.f32.mrf.mxu0  ;;  %v3165_v49 = vmax.f32 %v2430_v9, 0.0  ;;  %v4136_v57 = vmul.f32 0.00390625, %v3929_v59 }
 0x27a   : > { %4851 = vmatprep.subr.mxu1 %v4143_v22  ;;  %v3292_v5 = vadd.f32 %v3164_v7, %v3036_v56  ;;  %v2909_v38 = vmax.f32 %v1759_v52, 0.0  ;;  %v2432_v37 = vpop.f32.mrf.mxu1 }
 0x27b   : > { %4852 = vmatpush3.msra.mxu1 %v4127_v35  ;;  %v1761_v45 = vpop.f32.mrf.mxu0  ;;  %4036 = vadd.xlane.f32.xlu1 %v3547_v6  ;;  %v3421_v13 = vmax.f32 %v2432_v37, 0.0  ;;  %v4120_v6 = vmul.f32 0.00390625, %v5812_v30 }
 0x27c   : > { %4853 = vmatprep.subr.mxu1 %v4142_v32  ;;  %v3037_v12 = vadd.f32 %v2909_v38, %v2653_v25  ;;  %v2434_v53 = vpop.f32.mrf.mxu1  ;;  %v3548_v23 = vadd.f32 %v3420_v26, %v3292_v5  ;;  %v2654_v46 = vmax.f32 %v1761_v45, 0.0  ;;  %v5824_v24 = vpop.xlane.xlu0 %3968 }
 0x27d   : > { %4854 = vmatpush3.msra.mxu1 %v4126_v11  ;;  %v1763_v4 = vpop.f32.mrf.mxu0  ;;  %v3166_v34 = vmax.f32 %v2434_v53, 0.0 }
 0x27e   : > { %4855 = vmatprep.subr.mxu1 %v4141_v51  ;;  %v3293_v29 = vadd.f32 %v3165_v49, %v3037_v12  ;;  %v2910_v58 = vmax.f32 %v1763_v4, 0.0  ;;  %v2436_v33 = vpop.f32.mrf.mxu1 }
 0x27f   : > { %4856 = vmatpush3.msra.mxu1 %v4125_v62  ;;  %v1767_v61 = vpop.f32.mrf.mxu0  ;;  %4038 = vadd.xlane.f32.xlu1 %v3548_v23  ;;  %v3422_v48 = vmax.f32 %v2436_v33, 0.0 }
 0x280   : > { %4857 = vmatprep.subr.mxu1 %v4140_v55  ;;  %v3038_v15 = vadd.f32 %v2910_v58, %v2654_v46  ;;  %v2440_v50 = vpop.f32.mrf.mxu1  ;;  %v3549_v39 = vadd.f32 %v3421_v13, %v3293_v29  ;;  %v2655_v14 = vmax.f32 %v1767_v61, 0.0 }
 0x281   : > { %4858 = vmatpush3.msra.mxu1 %v4124_v54  ;;  %v1769_v19 = vpop.f32.mrf.mxu0  ;;  %v3167_v40 = vmax.f32 %v2440_v50, 0.0 }
 0x282   : > { %4859 = vmatprep.subr.mxu1 %v4139_v16  ;;  %v3294_v44 = vadd.f32 %v3166_v34, %v3038_v15  ;;  %v2911_v18 = vmax.f32 %v1769_v19, 0.0  ;;  %v2442_v20 = vpop.f32.mrf.mxu1 }
 0x283   : > { %4860 = vmatpush3.msra.mxu1 %v4123_v43  ;;  %v1771_v27 = vpop.f32.mrf.mxu0  ;;  %4040 = vadd.xlane.f32.xlu1 %v3549_v39  ;;  %v3423_v9 = vmax.f32 %v2442_v20, 0.0 }
 0x284   : > { %4861 = vmatprep.subr.mxu1 %v4138_v28  ;;  %v3039_v8 = vadd.f32 %v2911_v18, %v2655_v14  ;;  %v2444_v36 = vpop.f32.mrf.mxu1  ;;  %v3550_v10 = vadd.f32 %v3422_v48, %v3294_v44  ;;  %v2656_v22 = vmax.f32 %v1771_v27, 0.0  ;;  %v5830_v3 = vpop.xlane.xlu0 %3970 }
 0x285   : > { %4862 = vmatpush3.msra.mxu1 %v4122_v2  ;;  %v1773_v31 = vpop.f32.mrf.mxu0  ;;  %v3168_v52 = vmax.f32 %v2444_v36, 0.0 }
 0x286   : > { %4863 = vmatprep.subr.mxu1 %v4137_v63  ;;  %v3295_v56 = vadd.f32 %v3167_v40, %v3039_v8  ;;  %v2912_v7 = vmax.f32 %v1773_v31, 0.0  ;;  %v2446_v42 = vpop.f32.mrf.mxu1 }
 0x287   : > { %4864 = vmatpush3.msra.mxu1 %v4121_v41  ;;  %v1777_v35 = vpop.f32.mrf.mxu0  ;;  %4042 = vadd.xlane.f32.xlu1 %v3550_v10  ;;  %v3424_v5 = vmax.f32 %v2446_v42, 0.0 }
 0x288   : > { %4865 = vmatprep.subr.mxu1 %v4136_v57  ;;  %v3040_v32 = vadd.f32 %v2912_v7, %v2656_v22  ;;  %v2450_v60 = vpop.f32.mrf.mxu1  ;;  %v3551_v26 = vadd.f32 %v3423_v9, %v3295_v56  ;;  %v2657_v38 = vmax.f32 %v1777_v35, 0.0 }
 0x289   : > { %4866 = vmatpush3.msra.mxu1 %v4120_v6  ;;  %v1779_v25 = vpop.f32.mrf.mxu0  ;;  %v3169_v11 = vmax.f32 %v2450_v60, 0.0 }
 0x28a   : > { %v3296_v49 = vadd.f32 %v3168_v52, %v3040_v32  ;;  %v2913_v37 = vmax.f32 %v1779_v25, 0.0  ;;  %v2452_v45 = vpop.f32.mrf.mxu1 }
 0x28b   : > { %v1781_v51 = vpop.f32.mrf.mxu0  ;;  %4044 = vadd.xlane.f32.xlu1 %v3551_v26  ;;  %v3425_v46 = vmax.f32 %v2452_v45, 0.0 }
 0x28c   : > { %v3041_v30 = vadd.f32 %v2913_v37, %v2657_v38  ;;  %v2454_v12 = vpop.f32.mrf.mxu1  ;;  %v3552_v53 = vadd.f32 %v3424_v5, %v3296_v49  ;;  %v5832_v62 = vpop.xlane.xlu0 %3972  ;;  %v2658_v59 = vmax.f32 %v1781_v51, 0.0 }
 0x28d   : > { %v1783_v23 = vpop.f32.mrf.mxu0  ;;  %v3170_v33 = vmax.f32 %v2454_v12, 0.0 }
 0x28e   : > { %v3297_v55 = vadd.f32 %v3169_v11, %v3041_v30  ;;  %v2914_v4 = vmax.f32 %v1783_v23, 0.0  ;;  %v2456_v29 = vpop.f32.mrf.mxu1 }
 0x28f   : > { %v1787_v58 = vpop.f32.mrf.mxu0  ;;  %4046 = vadd.xlane.f32.xlu1 %v3552_v53  ;;  %v3426_v15 = vmax.f32 %v2456_v29, 0.0 }
 0x290   : > { %v3042_v13 = vadd.f32 %v2914_v4, %v2658_v59  ;;  %v2460_v54 = vpop.f32.mrf.mxu1  ;;  %v3553_v61 = vadd.f32 %v3425_v46, %v3297_v55  ;;  %v2659_v34 = vmax.f32 %v1787_v58, 0.0 }
 0x291   : > { %v1789_v16 = vpop.f32.mrf.mxu0  ;;  %v3171_v43 = vmax.f32 %v2460_v54, 0.0 }
 0x292   : > { %v3298_v50 = vadd.f32 %v3170_v33, %v3042_v13  ;;  %v2915_v39 = vmax.f32 %v1789_v16, 0.0  ;;  %v2462_v28 = vpop.f32.mrf.mxu1 }
 0x293   : > { %v1791_v19 = vpop.f32.mrf.mxu0  ;;  %v5834_v48 = vpop.xlane.xlu0 %3974  ;;  %4048 = vadd.xlane.f32.xlu1 %v3553_v61  ;;  %v3427_v63 = vmax.f32 %v2462_v28, 0.0 }
 0x294   : > { %v3043_v14 = vadd.f32 %v2915_v39, %v2659_v34  ;;  %v2464_v44 = vpop.f32.mrf.mxu1  ;;  %v3554_v18 = vadd.f32 %v3426_v15, %v3298_v50  ;;  %v2660_v20 = vmax.f32 %v1791_v19, 0.0 }
 0x295   : > { %v1793_v40 = vpop.f32.mrf.mxu0  ;;  %v3172_v57 = vmax.f32 %v2464_v44, 0.0 }
 0x296   : > { %v3299_v2 = vadd.f32 %v3171_v43, %v3043_v14  ;;  %v2916_v27 = vmax.f32 %v1793_v40, 0.0  ;;  %v2466_v8 = vpop.f32.mrf.mxu1 }
 0x297   : > { %v1797_v36 = vpop.f32.mrf.mxu0  ;;  %v5836_v10 = vpop.xlane.xlu0 %3976  ;;  %4050 = vadd.xlane.f32.xlu1 %v3554_v18  ;;  %v3428_v7 = vmax.f32 %v2466_v8, 0.0 }
 0x298   : > { %v3044_v41 = vadd.f32 %v2916_v27, %v2660_v20  ;;  %v2470_v31 = vpop.f32.mrf.mxu1  ;;  %v3555_v22 = vadd.f32 %v3427_v63, %v3299_v2  ;;  %v2661_v9 = vmax.f32 %v1797_v36, 0.0 }
 0x299   : > { %v1799_v56 = vpop.f32.mrf.mxu0  ;;  %v3173_v35 = vmax.f32 %v2470_v31, 0.0 }
 0x29a   : > { %v3300_v42 = vadd.f32 %v3172_v57, %v3044_v41  ;;  %v2917_v6 = vmax.f32 %v1799_v56, 0.0  ;;  %v2472_v32 = vpop.f32.mrf.mxu1 }
 0x29b   : > { %v1801_v52 = vpop.f32.mrf.mxu0  ;;  %v5838_v60 = vpop.xlane.xlu0 %3978  ;;  %4052 = vadd.xlane.f32.xlu1 %v3555_v22  ;;  %v3429_v45 = vmax.f32 %v2472_v32, 0.0 }
 0x29c   : > { %v3045_v26 = vadd.f32 %v2917_v6, %v2661_v9  ;;  %v2474_v25 = vpop.f32.mrf.mxu1  ;;  %v3556_v5 = vadd.f32 %v3428_v7, %v3300_v42  ;;  %v2662_v49 = vmax.f32 %v1801_v52, 0.0 }
 0x29d   : > { %v1803_v38 = vpop.f32.mrf.mxu0  ;;  %v3174_v59 = vmax.f32 %v2474_v25, 0.0 }
 0x29e   : > { %v3301_v37 = vadd.f32 %v3173_v35, %v3045_v26  ;;  %v2918_v11 = vmax.f32 %v1803_v38, 0.0  ;;  %v2476_v51 = vpop.f32.mrf.mxu1 }
 0x29f   : > { %v1807_v30 = vpop.f32.mrf.mxu0  ;;  %v5840_v12 = vpop.xlane.xlu0 %3980  ;;  %4054 = vadd.xlane.f32.xlu1 %v3556_v5  ;;  %v3430_v46 = vmax.f32 %v2476_v51, 0.0 }
 0x2a0   : > { %v3046_v53 = vadd.f32 %v2918_v11, %v2662_v49  ;;  %v3557_v23 = vadd.f32 %v3429_v45, %v3301_v37  ;;  %v2480_v55 = vpop.f32.mrf.mxu1  ;;  %v2663_v29 = vmax.f32 %v1807_v30, 0.0 }
 0x2a1   : > { %v1809_v4 = vpop.f32.mrf.mxu0  ;;  %v3175_v33 = vmax.f32 %v2480_v55, 0.0 }
 0x2a2   : > { %v3302_v58 = vadd.f32 %v3174_v59, %v3046_v53  ;;  %v2919_v13 = vmax.f32 %v1809_v4, 0.0  ;;  %v2482_v54 = vpop.f32.mrf.mxu1  ;;  %4056 = vadd.xlane.f32.xlu0 %v3557_v23 }
 0x2a3   : > { %v5842_v61 = vpop.f32.mrf.mxu0  ;;  %v5844_v16 = vpop.xlane.xlu0 %3982  ;;  %v3431_v28 = vmax.f32 %v2482_v54, 0.0 }
 0x2a4   : > { %v3047_v15 = vadd.f32 %v2919_v13, %v2663_v29  ;;  %v5846_v34 = vadd.f32 %v3430_v46, %v3302_v58  ;;  %v5848_v50 = vpop.f32.mrf.mxu1 }
 0x2a5   : > { %v5850_v39 = vpop.f32.mrf.mxu0 }
 0x2a6   : > { %v3303_v43 = vadd.f32 %v3175_v33, %v3047_v15  ;;  %v5852_v19 = vpop.f32.mrf.mxu1 }
 0x2a7   : > { %v1817_v14 = vpop.f32.mrf.mxu0  ;;  %v5854_v44 = vpop.xlane.xlu0 %3984 }
 0x2a8   : > { %v5856_v18 = vadd.f32 %v3431_v28, %v3303_v43  ;;  %v2490_v40 = vpop.f32.mrf.mxu1  ;;  %v2665_v2 = vmax.f32 %v1817_v14, 0.0 }
 0x2a9   : > { %v1819_v20 = vpop.f32.mrf.mxu0  ;;  %v3177_v63 = vmax.f32 %v2490_v40, 0.0 }
 0x2aa   : > { %v2921_v27 = vmax.f32 %v1819_v20, 0.0  ;;  %v2492_v8 = vpop.f32.mrf.mxu1 }
 0x2ab   : > { %v1821_v36 = vpop.f32.mrf.mxu0  ;;  %v5858_v22 = vpop.xlane.xlu0 %3986  ;;  %v3433_v42 = vmax.f32 %v2492_v8, 0.0 }
 0x2ac   : > { %v3049_v41 = vadd.f32 %v2921_v27, %v2665_v2  ;;  %v2494_v57 = vpop.f32.mrf.mxu1  ;;  %v2666_v56 = vmax.f32 %v1821_v36, 0.0 }
 0x2ad   : > { %v1823_v31 = vpop.f32.mrf.mxu0  ;;  %v3178_v52 = vmax.f32 %v2494_v57, 0.0 }
 0x2ae   : > { %v3305_v7 = vadd.f32 %v3177_v63, %v3049_v41  ;;  %v2922_v9 = vmax.f32 %v1823_v31, 0.0  ;;  %v2496_v6 = vpop.f32.mrf.mxu1 }
 0x2af   : > { %v1827_v35 = vpop.f32.mrf.mxu0  ;;  %v3434_v38 = vmax.f32 %v2496_v6, 0.0  ;;  %v5860_v53 = vpop.xlane.xlu0 %3988 }
 0x2b0   : > { %v3050_v32 = vadd.f32 %v2922_v9, %v2666_v56  ;;  %v3561_v26 = vadd.f32 %v3433_v42, %v3305_v7  ;;  %v2500_v25 = vpop.f32.mrf.mxu1  ;;  %v2667_v49 = vmax.f32 %v1827_v35, 0.0 }
 0x2b1   : > { %v1829_v5 = vpop.f32.mrf.mxu0  ;;  %v3179_v45 = vmax.f32 %v2500_v25, 0.0 }
 0x2b2   : > { %v3306_v37 = vadd.f32 %v3178_v52, %v3050_v32  ;;  %v2923_v11 = vmax.f32 %v1829_v5, 0.0  ;;  %4064 = vadd.xlane.f32.xlu1 %v3561_v26  ;;  %v2502_v51 = vpop.f32.mrf.mxu1 }
 0x2b3   : > { %v1831_v30 = vpop.f32.mrf.mxu0  ;;  %v3435_v13 = vmax.f32 %v2502_v51, 0.0 }
 0x2b4   : > { %v3051_v23 = vadd.f32 %v2923_v11, %v2667_v49  ;;  %v3562_v59 = vadd.f32 %v3434_v38, %v3306_v37  ;;  %v2504_v55 = vpop.f32.mrf.mxu1  ;;  %v2668_v46 = vmax.f32 %v1831_v30, 0.0 }
 0x2b5   : > { %v1833_v4 = vpop.f32.mrf.mxu0  ;;  %v3180_v28 = vmax.f32 %v2504_v55, 0.0 }
 0x2b6   : > { %v3307_v29 = vadd.f32 %v3179_v45, %v3051_v23  ;;  %v2924_v58 = vmax.f32 %v1833_v4, 0.0  ;;  %4066 = vadd.xlane.f32.xlu1 %v3562_v59  ;;  %v2506_v33 = vpop.f32.mrf.mxu1 }
 0x2b7   : > { %v1837_v54 = vpop.f32.mrf.mxu0  ;;  %v5862_v15 = vpop.xlane.xlu0 %3998  ;;  %v3436_v2 = vmax.f32 %v2506_v33, 0.0 }
 0x2b8   : > { %v3052_v43 = vadd.f32 %v2924_v58, %v2668_v46  ;;  %v3563_v14 = vadd.f32 %v3435_v13, %v3307_v29  ;;  %v2510_v40 = vpop.f32.mrf.mxu1  ;;  %v2669_v27 = vmax.f32 %v1837_v54, 0.0 }
 0x2b9   : > { %v1839_v20 = vpop.f32.mrf.mxu0  ;;  %v3181_v36 = vmax.f32 %v2510_v40, 0.0 }
 0x2ba   : > { %v3308_v63 = vadd.f32 %v3180_v28, %v3052_v43  ;;  %v2925_v8 = vmax.f32 %v1839_v20, 0.0  ;;  %4068 = vadd.xlane.f32.xlu1 %v3563_v14  ;;  %v2512_v41 = vpop.f32.mrf.mxu1 }
 0x2bb   : > { %v1841_v57 = vpop.f32.mrf.mxu0  ;;  %v5864_v31 = vpop.xlane.xlu0 %4000  ;;  %v3437_v52 = vmax.f32 %v2512_v41, 0.0 }
 0x2bc   : > { %v3053_v56 = vadd.f32 %v2925_v8, %v2669_v27  ;;  %v3564_v7 = vadd.f32 %v3436_v2, %v3308_v63  ;;  %v2514_v9 = vpop.f32.mrf.mxu1  ;;  %v2670_v6 = vmax.f32 %v1841_v57, 0.0 }
 0x2bd   : > { %v1843_v42 = vpop.f32.mrf.mxu0  ;;  %v3182_v49 = vmax.f32 %v2514_v9, 0.0 }
 0x2be   : > { %v3309_v35 = vadd.f32 %v3181_v36, %v3053_v56  ;;  %v2926_v32 = vmax.f32 %v1843_v42, 0.0  ;;  %4070 = vadd.xlane.f32.xlu1 %v3564_v7  ;;  %v2516_v26 = vpop.f32.mrf.mxu1 }
 0x2bf   : > { %v1847_v25 = vpop.f32.mrf.mxu0  ;;  %v5866_v5 = vpop.xlane.xlu0 %4002  ;;  %v3438_v51 = vmax.f32 %v2516_v26, 0.0 }
 0x2c0   : > { %v3054_v38 = vadd.f32 %v2926_v32, %v2670_v6  ;;  %v3565_v37 = vadd.f32 %v3437_v52, %v3309_v35  ;;  %v2520_v11 = vpop.f32.mrf.mxu1  ;;  %v2671_v30 = vmax.f32 %v1847_v25, 0.0 }
 0x2c1   : > { %v1849_v45 = vpop.f32.mrf.mxu0  ;;  %v3183_v55 = vmax.f32 %v2520_v11, 0.0 }
 0x2c2   : > { %v3310_v23 = vadd.f32 %v3182_v49, %v3054_v38  ;;  %v2927_v59 = vmax.f32 %v1849_v45, 0.0  ;;  %4072 = vadd.xlane.f32.xlu1 %v3565_v37  ;;  %v2522_v4 = vpop.f32.mrf.mxu1 }
 0x2c3   : > { %v1851_v46 = vpop.f32.mrf.mxu0  ;;  %v5868_v29 = vpop.xlane.xlu0 %4004  ;;  %v3439_v40 = vmax.f32 %v2522_v4, 0.0 }
 0x2c4   : > { %v3055_v58 = vadd.f32 %v2927_v59, %v2671_v30  ;;  %v3566_v13 = vadd.f32 %v3438_v51, %v3310_v23  ;;  %v2524_v33 = vpop.f32.mrf.mxu1  ;;  %v2672_v43 = vmax.f32 %v1851_v46, 0.0 }
 0x2c5   : > { %v1853_v54 = vpop.f32.mrf.mxu0  ;;  %v3184_v36 = vmax.f32 %v2524_v33, 0.0 }
 0x2c6   : > { %v3311_v28 = vadd.f32 %v3183_v55, %v3055_v58  ;;  %v2928_v14 = vmax.f32 %v1853_v54, 0.0  ;;  %4074 = vadd.xlane.f32.xlu1 %v3566_v13  ;;  %v2526_v20 = vpop.f32.mrf.mxu1 }
 0x2c7   : > { %v1857_v2 = vpop.f32.mrf.mxu0  ;;  %v5870_v27 = vpop.xlane.xlu0 %4006  ;;  %v3440_v56 = vmax.f32 %v2526_v20, 0.0 }
 0x2c8   : > { %v3056_v63 = vadd.f32 %v2928_v14, %v2672_v43  ;;  %v3567_v8 = vadd.f32 %v3439_v40, %v3311_v28  ;;  %v2530_v41 = vpop.f32.mrf.mxu1  ;;  %v2673_v7 = vmax.f32 %v1857_v2, 0.0 }
 0x2c9   : > { %v1859_v57 = vpop.f32.mrf.mxu0  ;;  %v3185_v6 = vmax.f32 %v2530_v41, 0.0 }
 0x2ca   : > { %v3312_v9 = vadd.f32 %v3184_v36, %v3056_v63  ;;  %v2929_v42 = vmax.f32 %v1859_v57, 0.0  ;;  %4076 = vadd.xlane.f32.xlu1 %v3567_v8  ;;  %v2532_v35 = vpop.f32.mrf.mxu1 }
 0x2cb   : > { %v1861_v32 = vpop.f32.mrf.mxu0  ;;  %v5872_v52 = vpop.xlane.xlu0 %4008  ;;  %v3441_v51 = vmax.f32 %v2532_v35, 0.0  ;;  %v2920_v35 = vmax.f32 %v5850_v39, 0.0 }
 0x2cc   : > { %v3057_v26 = vadd.f32 %v2929_v42, %v2673_v7  ;;  %v3568_v25 = vadd.f32 %v3440_v56, %v3312_v9  ;;  %v2534_v38 = vpop.f32.mrf.mxu1  ;;  %v2674_v37 = vmax.f32 %v1861_v32, 0.0  ;;  %v3991_v39 = vpop.xlane.xlu1 %3990 }
 0x2cd   : > { %v1863_v49 = vpop.f32.mrf.mxu0  ;;  %v3186_v46 = vmax.f32 %v2534_v38, 0.0  ;;  %v2664_v38 = vmax.f32 %v5842_v61, 0.0 }
 0x2ce   : > { %v3313_v11 = vadd.f32 %v3185_v6, %v3057_v26  ;;  %v2930_v45 = vmax.f32 %v1863_v49, 0.0  ;;  %4078 = vadd.xlane.f32.xlu1 %v3568_v25  ;;  %v2536_v30 = vpop.f32.mrf.mxu1 }
 0x2cf   : > { %v1867_v23 = vpop.f32.mrf.mxu0  ;;  %v5874_v59 = vpop.xlane.xlu0 %4010  ;;  %v3442_v33 = vmax.f32 %v2536_v30, 0.0  ;;  %v3176_v30 = vmax.f32 %v5848_v50, 0.0  ;;  %v4167_v50 = vmul.f32 0.00390625, %v3991_v39 }
 0x2d0   : > { %v3058_v55 = vadd.f32 %v2930_v45, %v2674_v37  ;;  %v3569_v4 = vadd.f32 %v3441_v51, %v3313_v11  ;;  %v2540_v58 = vpop.f32.mrf.mxu1  ;;  %v2675_v54 = vmax.f32 %v1867_v23, 0.0  ;;  %v3048_v45 = vadd.f32 %v2920_v35, %v2664_v38  ;;  %v4223_v35 = vld [vmem:[%s5955_s3 + $0x38] sm:$0x3f] }
 0x2d1   : > { %v1869_v13 = vpop.f32.mrf.mxu0  ;;  %v3187_v14 = vmax.f32 %v2540_v58, 0.0 }
 0x2d2   : > { %v3314_v43 = vadd.f32 %v3186_v46, %v3058_v55  ;;  %v2931_v28 = vmax.f32 %v1869_v13, 0.0  ;;  %4080 = vadd.xlane.f32.xlu1 %v3569_v4  ;;  %v2542_v40 = vpop.f32.mrf.mxu1  ;;  %v3304_v55 = vadd.f32 %v3176_v30, %v3048_v45  ;;  %v3432_v4 = vmax.f32 %v5852_v19, 0.0 }
 0x2d3   : > { %v1871_v20 = vpop.f32.mrf.mxu0  ;;  %v4013_v2 = vpop.xlane.xlu0 %4012  ;;  %v3443_v9 = vmax.f32 %v2542_v40, 0.0  ;;  %v4165_v40 = vmul.f32 0.00390625, %v5858_v22  ;;  %v4162_v22 = vmul.f32 0.00390625, %v5840_v12  ;;  %v4175_v12 = vmul.f32 0.00390625, %v5870_v27 }
 0x2d4   : > { %v3059_v63 = vadd.f32 %v2931_v28, %v2675_v54  ;;  %v3570_v8 = vadd.f32 %v3442_v33, %v3314_v43  ;;  %v2544_v36 = vpop.f32.mrf.mxu1  ;;  %v2676_v57 = vmax.f32 %v1871_v20, 0.0  ;;  %v3560_v58 = vadd.f32 %v3432_v4, %v3304_v55  ;;  %v4219_v54 = vld [vmem:[%s5955_s3 + $0x18] sm:$0x3f] }
 0x2d5   : > { %v1873_v41 = vpop.f32.mrf.mxu0  ;;  %v3188_v25 = vmax.f32 %v2544_v36, 0.0  ;;  %4359 = vmatprep.mubr.f32.mxu1 %v4219_v54  ;;  %v4178_v36 = vmul.f32 0.00390625, %v4013_v2  ;;  %v4173_v2 = vmul.f32 0.00390625, %v5866_v5  ;;  %v4172_v27 = vmul.f32 0.00390625, %v5864_v31 }
 0x2d6   : > { %v3315_v56 = vadd.f32 %v3187_v14, %v3059_v63  ;;  %v2932_v7 = vmax.f32 %v1873_v41, 0.0  ;;  %4082 = vadd.xlane.f32.xlu1 %v3570_v8  ;;  %v2546_v42 = vpop.f32.mrf.mxu1  ;;  %v4218_v14 = vld [vmem:[%s5955_s3 + $0x10] sm:$0x3f]  ;;  %v4163_v8 = vmul.f32 0.00390625, %v5844_v16  ;;  %v4160_v16 = vmul.f32 0.00390625, %v5836_v10 }
 0x2d7   : > { %v4015_v6 = vpop.xlane.xlu0 %4014  ;;  %v3444_v37 = vmax.f32 %v2546_v42, 0.0  ;;  %4360 = vmatmul.mubr.f32.vlgmr.msra.gmra.mxu1 %v4218_v14  ;;  %v4157_v10 = vmul.f32 0.00390625, %v5830_v3  ;;  %v4220_v42 = vld [vmem:[%s5955_s3 + $0x20] sm:$0x3f] }
 0x2d8   : > { %v3060_v32 = vadd.f32 %v2932_v7, %v2676_v57  ;;  %v3571_v26 = vadd.f32 %v3443_v9, %v3315_v56  ;;  %v4179_v63 = vmul.f32 0.00390625, %v4015_v6  ;;  %v4176_v57 = vmul.f32 0.00390625, %v5872_v52  ;;  %4499 = vmatprep.mubr.f32.mxu1 %v4223_v35 }
 0x2d9   : > { %v4174_v52 = vmul.f32 0.00390625, %v5868_v29  ;;  %v4156_v29 = vmul.f32 0.00390625, %v5824_v24 }
 0x2da   : > { %v3316_v49 = vadd.f32 %v3188_v25, %v3060_v32  ;;  %4084 = vadd.xlane.f32.xlu1 %v3571_v26 }
 0x2db   : > { %v4017_v11 = vpop.xlane.xlu0 %4016 }
 0x2dc   : > { %v3572_v51 = vadd.f32 %v3444_v37, %v3316_v49  ;;  %v4180_v20 = vmul.f32 0.00390625, %v4017_v11 }
 0x2de   : > { %4086 = vadd.xlane.f32.xlu1 %v3572_v51 }
 0x2df   : > { %v4019_v23 = vpop.xlane.xlu0 %4018 }
 0x2e0   : > { %v4181_v28 = vmul.f32 0.00390625, %v4019_v23 }
 0x2e2   : > { %4032 = vadd.xlane.f32.xlu1 %v5800_v21  ;;  %v4166_v21 = vmul.f32 0.00390625, %v5860_v53 }
 0x2e3   : > { %v4021_v46 = vpop.xlane.xlu0 %4020 }
 0x2e4   : > { %v4182_v43 = vmul.f32 0.00390625, %v4021_v46 }
 0x2e6   : > { %4062 = vadd.xlane.f32.xlu1 %v3560_v58 }
 0x2e7   : > { %v4023_v61 = vpop.xlane.xlu1 %4022  ;;  %v5881_v13 = vpop.xlane.xlu0 %3966 }
 0x2e8   : > { %v4183_v33 = vmul.f32 0.00390625, %v4023_v61  ;;  %v4155_v5 = vmul.f32 0.00390625, %v5881_v13 }
 0x2ea   : > { %4030 = vadd.xlane.f32.xlu1 %v5793_v0  ;;  %4870 = vmatprep.subr.mxu0 %v4183_v33  ;;  %v4164_v0 = vmul.f32 0.00390625, %v5854_v44  ;;  %v4161_v44 = vmul.f32 0.00390625, %v5838_v60  ;;  %v4159_v60 = vmul.f32 0.00390625, %v5834_v48 }
 0x2eb   : > { %4871 = vmatpush3.msra.mxu0 %v4167_v50  ;;  %v3997_v19 = vpop.xlane.xlu0 %3996 }
 0x2ec   : > { %4872 = vmatprep.subr.mxu0 %v4182_v43  ;;  %v4170_v56 = vmul.f32 0.00390625, %v3997_v19 }
 0x2ed   : > { %4873 = vmatpush3.msra.mxu0 %v4166_v21 }
 0x2ee   : > { %4060 = vadd.xlane.f32.xlu1 %v5856_v18  ;;  %4874 = vmatprep.subr.mxu0 %v4181_v28  ;;  %v4177_v18 = vmul.f32 0.00390625, %v5874_v59 }
 0x2ef   : > { %4875 = vmatpush3.msra.mxu0 %v4165_v40  ;;  %v3965_v53 = vpop.xlane.xlu0 %3964 }
 0x2f0   : > { %4876 = vmatprep.subr.mxu0 %v4180_v20  ;;  %v4154_v3 = vmul.f32 0.00390625, %v3965_v53 }
 0x2f1   : > { %4877 = vmatpush3.msra.mxu0 %v4164_v0 }
 0x2f2   : > { %4028 = vadd.xlane.f32.xlu1 %v5782_v1  ;;  %4878 = vmatprep.subr.mxu0 %v4179_v63  ;;  %v4221_v1 = vld [vmem:[%s5955_s3 + $0x28] sm:$0x3f] }
 0x2f3   : > { %4879 = vmatpush3.msra.mxu0 %v4163_v8  ;;  %v3995_v41 = vpop.xlane.xlu0 %3994  ;;  %4429 = vmatprep.mubr.f32.mxu0 %v4221_v1 }
 0x2f4   : > { %4880 = vmatprep.subr.mxu0 %v4178_v36  ;;  %v4169_v31 = vmul.f32 0.00390625, %v3995_v41 }
 0x2f5   : > { %4881 = vmatpush3.msra.mxu0 %v4162_v22 }
 0x2f6   : > { %4058 = vadd.xlane.f32.xlu1 %v5846_v34  ;;  %4882 = vmatprep.subr.mxu0 %v4177_v18  ;;  %v4158_v34 = vmul.f32 0.00390625, %v5832_v62 }
 0x2f7   : > { %4883 = vmatpush3.msra.mxu0 %v4161_v44  ;;  %v3963_v59 = vpop.xlane.xlu0 %3962 }
 0x2f8   : > { %4884 = vmatprep.subr.mxu0 %v4176_v57  ;;  %v4153_v9 = vmul.f32 0.00390625, %v3963_v59 }
 0x2f9   : > { %4885 = vmatpush3.msra.mxu0 %v4160_v16 }
 0x2fa   : > { %4026 = vadd.xlane.f32.xlu1 %v5779_v47  ;;  %4886 = vmatprep.subr.mxu0 %v4175_v12  ;;  %v4171_v47 = vmul.f32 0.00390625, %v5862_v15 }
 0x2fb   : > { %4887 = vmatpush3.msra.mxu0 %v4159_v60  ;;  %v3993_v48 = vpop.xlane.xlu0 %3992 }
 0x2fc   : > { %4888 = vmatprep.subr.mxu0 %v4174_v52  ;;  %v4168_v24 = vmul.f32 0.00390625, %v3993_v48 }
 0x2fd   : > { %4889 = vmatpush3.msra.mxu0 %v4158_v34 }
 0x2fe   : > { %4024 = vadd.xlane.f32.xlu1 %v5777_v17  ;;  %4890 = vmatprep.subr.mxu0 %v4173_v2 }
 0x2ff   : > { %4891 = vmatpush3.msra.mxu0 %v4157_v10  ;;  %v3961_v17 = vpop.xlane.xlu0 %3960 }
 0x300   : > { %4892 = vmatprep.subr.mxu0 %v4172_v27  ;;  %v5916_v62 = vpop.xlane.xlu1 %4034  ;;  %v4152_v15 = vmul.f32 0.00390625, %v3961_v17 }
 0x301   : > { %4893 = vmatpush3.msra.mxu0 %v4156_v29  ;;  %v4189_v10 = vmul.f32 0.00390625, %v5916_v62 }
 0x302   : > { %4894 = vmatprep.subr.mxu0 %v4171_v47 }
 0x303   : > { %4895 = vmatpush3.msra.mxu0 %v4155_v5 }
 0x304   : > { %4896 = vmatprep.subr.mxu0 %v4170_v56  ;;  %v5919_v7 = vpop.xlane.xlu1 %4036 }
 0x305   : > { %4897 = vmatpush3.msra.mxu0 %v4154_v3  ;;  %v4190_v52 = vmul.f32 0.00390625, %v5919_v7 }
 0x306   : > { %4898 = vmatprep.subr.mxu0 %v4169_v31 }
 0x307   : > { %4899 = vmatpush3.msra.mxu0 %v4153_v9 }
 0x308   : > { %4900 = vmatprep.subr.mxu0 %v4168_v24  ;;  %v4039_v6 = vpop.xlane.xlu1 %4038 }
 0x309   : > { %4901 = vmatpush3.msra.mxu0 %v4152_v15  ;;  %v4191_v59 = vmul.f32 0.00390625, %v4039_v6 }
 0x30a   : > { %4430 = vmatmul.mubr.f32.vlgmr.msra.gmra.mxu0 %v4220_v42  ;;  %v4222_v42 = vld [vmem:[%s5955_s3 + $0x30] sm:$0x3f] }
 0x30c   : > { %v4041_v32 = vpop.xlane.xlu1 %4040 }
 0x30d   : > { %v4192_v1 = vmul.f32 0.00390625, %v4041_v32 }
 0x310   : > { %v4043_v26 = vpop.xlane.xlu1 %4042 }
 0x311   : > { %v4193_v44 = vmul.f32 0.00390625, %v4043_v26 }
 0x314   : > { %v4045_v25 = vpop.xlane.xlu1 %4044 }
 0x315   : > { %v4194_v22 = vmul.f32 0.00390625, %v4045_v25  ;;  %v4224_v25 = vld [vmem:[%s5956_s4] sm:$0x3f] }
 0x318   : > { %v4047_v38 = vpop.xlane.xlu1 %4046 }
 0x319   : > { %v4195_v8 = vmul.f32 0.00390625, %v4047_v38 }
 0x31c   : > { %v4049_v49 = vpop.xlane.xlu1 %4048 }
 0x31d   : > { %v4196_v0 = vmul.f32 0.00390625, %v4049_v49 }
 0x320   : > { %v4051_v37 = vpop.xlane.xlu1 %4050 }
 0x321   : > { %v4197_v40 = vmul.f32 0.00390625, %v4051_v37 }
 0x324   : > { %v4053_v11 = vpop.xlane.xlu1 %4052 }
 0x325   : > { %v4198_v19 = vmul.f32 0.00390625, %v4053_v11 }
 0x328   : > { %v4055_v45 = vpop.xlane.xlu1 %4054  ;;  %v4832_v6 = vpop.f32.mrf.mxu0 }
 0x329   : > { %v4199_v43 = vmul.f32 0.00390625, %v4055_v45 }
 0x32a   : > { %v4833_v35 = vpop.f32.mrf.mxu0 }
 0x32b   : > { %v4057_v17 = vpop.xlane.xlu0 %4056  ;;  %v4834_v26 = vadd.f32 %v4833_v35, %v4832_v6 }
 0x32c   : > { %v4200_v62 = vmul.f32 0.00390625, %v4057_v17 }
 0x32d   : > { %v4292_v37 = vadd.f32 %v4834_v26, %v4224_v25 }
 0x33b   : > { %v4065_v51 = vpop.xlane.xlu1 %4064 }
 0x33c   : > { %v4204_v27 = vmul.f32 0.00390625, %v4065_v51 }
 0x33f   : > { %v4067_v30 = vpop.xlane.xlu1 %4066 }
 0x340   : > { %v4205_v2 = vmul.f32 0.00390625, %v4067_v30 }
 0x343   : > { %v4069_v23 = vpop.xlane.xlu1 %4068 }
 0x344   : > { %v4206_v60 = vmul.f32 0.00390625, %v4069_v23 }
 0x347   : > { %v4071_v55 = vpop.xlane.xlu1 %4070 }
 0x348   : > { %v4207_v12 = vmul.f32 0.00390625, %v4071_v55 }
 0x34b   : > { %v4073_v4 = vpop.xlane.xlu1 %4072 }
 0x34c   : > { %v4208_v57 = vmul.f32 0.00390625, %v4073_v4 }
 0x34f   : > { %v4075_v39 = vpop.xlane.xlu1 %4074 }
 0x350   : > { %v4209_v18 = vmul.f32 0.00390625, %v4075_v39 }
 0x353   : > { %v4077_v46 = vpop.xlane.xlu1 %4076 }
 0x354   : > { %v4210_v36 = vmul.f32 0.00390625, %v4077_v46 }
 0x357   : > { %v4079_v58 = vpop.xlane.xlu1 %4078 }
 0x358   : > { %v4211_v63 = vmul.f32 0.00390625, %v4079_v58  ;;  %v4796_v58 = vld [vmem:[%s250_s27] ss:$0 sm:$0xff] }
 0x35b   : > { %v4081_v61 = vpop.xlane.xlu1 %4080 }
 0x35c   : > { %v4212_v20 = vmul.f32 0.00390625, %v4081_v61 }
 0x35f   : > { %v4083_v13 = vpop.xlane.xlu1 %4082 }
 0x360   : > { %v4213_v14 = vmul.f32 0.00390625, %v4083_v13 }
 0x363   : > { %v4085_v33 = vpop.xlane.xlu1 %4084 }
 0x364   : > { %v4214_v21 = vmul.f32 0.00390625, %v4085_v33 }
 0x367   : > { %v4087_v54 = vpop.xlane.xlu1 %4086 }
 0x368   : > { %v4215_v50 = vmul.f32 0.00390625, %v4087_v54 }
 0x36a   : > { %4905 = vmatprep.subr.mxu1 %v4215_v50 }
 0x36b   : > { %v4033_v28 = vpop.xlane.xlu1 %4032  ;;  %4906 = vmatpush3.msra.mxu1 %v4199_v43 }
 0x36c   : > { %4907 = vmatprep.subr.mxu1 %v4214_v21  ;;  %v4188_v48 = vmul.f32 0.00390625, %v4033_v28 }
 0x36d   : > { %4908 = vmatpush3.msra.mxu1 %v4198_v19 }
 0x36e   : > { %4909 = vmatprep.subr.mxu1 %v4213_v14 }
 0x36f   : > { %v4063_v53 = vpop.xlane.xlu1 %4062  ;;  %4910 = vmatpush3.msra.mxu1 %v4197_v40 }
 0x370   : > { %4911 = vmatprep.subr.mxu1 %v4212_v20  ;;  %v4203_v47 = vmul.f32 0.00390625, %v4063_v53 }
 0x371   : > { %4912 = vmatpush3.msra.mxu1 %v4196_v0 }
 0x372   : > { %4913 = vmatprep.subr.mxu1 %v4211_v63 }
 0x373   : > { %v4031_v41 = vpop.xlane.xlu1 %4030  ;;  %4914 = vmatpush3.msra.mxu1 %v4195_v8 }
 0x374   : > { %4915 = vmatprep.subr.mxu1 %v4210_v36  ;;  %v4187_v5 = vmul.f32 0.00390625, %v4031_v41 }
 0x375   : > { %4916 = vmatpush3.msra.mxu1 %v4194_v22 }
 0x376   : > { %4917 = vmatprep.subr.mxu1 %v4209_v18 }
 0x377   : > { %v4061_v16 = vpop.xlane.xlu1 %4060  ;;  %4918 = vmatpush3.msra.mxu1 %v4193_v44 }
 0x378   : > { %4919 = vmatprep.subr.mxu1 %v4208_v57  ;;  %v4202_v56 = vmul.f32 0.00390625, %v4061_v16 }
 0x379   : > { %4920 = vmatpush3.msra.mxu1 %v4192_v1 }
 0x37a   : > { %4921 = vmatprep.subr.mxu1 %v4207_v12 }
 0x37b   : > { %v4029_v34 = vpop.xlane.xlu1 %4028  ;;  %4922 = vmatpush3.msra.mxu1 %v4191_v59 }
 0x37c   : > { %4923 = vmatprep.subr.mxu1 %v4206_v60  ;;  %v4186_v3 = vmul.f32 0.00390625, %v4029_v34 }
 0x37d   : > { %4924 = vmatpush3.msra.mxu1 %v4190_v52 }
 0x37e   : > { %4925 = vmatprep.subr.mxu1 %v4205_v2 }
 0x37f   : > { %v4059_v29 = vpop.xlane.xlu1 %4058  ;;  %4926 = vmatpush3.msra.mxu1 %v4189_v10 }
 0x380   : > { %4927 = vmatprep.subr.mxu1 %v4204_v27  ;;  %v4201_v7 = vmul.f32 0.00390625, %v4059_v29 }
 0x381   : > { %4928 = vmatpush3.msra.mxu1 %v4188_v48 }
 0x382   : > { %4929 = vmatprep.subr.mxu1 %v4203_v47 }
 0x383   : > { %v4027_v31 = vpop.xlane.xlu1 %4026  ;;  %4930 = vmatpush3.msra.mxu1 %v4187_v5 }
 0x384   : > { %v4185_v9 = vmul.f32 0.00390625, %v4027_v31  ;;  %4931 = vmatprep.subr.mxu1 %v4202_v56 }
 0x385   : > { %4932 = vmatpush3.msra.mxu1 %v4186_v3 }
 0x386   : > { %4933 = vmatprep.subr.mxu1 %v4201_v7 }
 0x387   : > { %v4025_v24 = vpop.xlane.xlu1 %4024  ;;  %4934 = vmatpush3.msra.mxu1 %v4185_v9 }
 0x388   : > { %v4184_v15 = vmul.f32 0.00390625, %v4025_v24  ;;  %4935 = vmatprep.subr.mxu1 %v4200_v62 }
 0x38a   : > { %4936 = vmatpush3.msra.mxu1 %v4184_v15 }
 0x38b   : > { %4500 = vmatmul.mubr.f32.vlgmr.msra.gmra.mxu1 %v4222_v42 }
 0x397   : > { %v4867_v32 = vpop.f32.mrf.mxu1 }
 0x399   : > { %v4868_v38 = vpop.f32.mrf.mxu1 }
 0x39a   : > { %v4869_v11 = vadd.f32 %v4868_v38, %v4867_v32 }
 0x39c   : > { %v4362_v51 = vadd.f32 %v4869_v11, %v4292_v37 }
 0x3ca   : > { %v4902_v49 = vpop.f32.mrf.mxu0 }
 0x3cc   : > { %v4903_v45 = vpop.f32.mrf.mxu0 }
 0x3cd   : > { %v4904_v30 = vadd.f32 %v4903_v45, %v4902_v49 }
 0x3cf   : > { %v4432_v4 = vadd.f32 %v4904_v30, %v4362_v51 }
 0x44b   : > { %v4937_v23 = vpop.f32.mrf.mxu1 }
 0x44d   : > { %v4938_v55 = vpop.f32.mrf.mxu1 }
 0x44e   : > { %v4939_v39 = vadd.f32 %v4938_v55, %v4937_v23 }
 0x450   : > { %v4502_v46 = vadd.f32 %v4939_v39, %v4432_v4 }
 0x452   : > { %5036 = vtanh.f32 %v4502_v46 }
 0x45f   : > { %v5037_v61 = vpop.eup %5036 }
 0x460   : > { %v4513_v13 = vmul.f32 %v5037_v61, %v4796_v58 }
 0x462   : > { %4515 = vst.msk [vmem:[%s264_s6] sm:$0x3f] %vm4514_vm3, %v4513_v13 }
 0x463 PF: > { %s15_s20 = sadd.s32 1, %s5060_s20   ;;  %s5958_s18 = smov %s5056_s19 }
 0x464   : > { %p12_p5 = scmp.ge.s32.totalorder %s15_s20, 4   ;;  %s5959_s19 = smov %s5961_s21 }
 0x466   :  { %14 = sbr.rel (!%p12_p5) target bundleno = 2 (0x2), region = 81 }

</bundles_post_ra>
